<compile_context>
chip_gen: v7x
topology: tpu7x:2x2x1
jax: 0.10.0
libtpu: 0.0.40
codegen_flags: <defaults>
</compile_context>

<pallas_src>
import functools
import numpy as np
import jax
import jax.numpy as jnp
from jax import lax
from jax.experimental import pallas as pl
from jax.experimental.pallas import tpu as pltpu

# Small config consistent with GPTModel.__init__ / forward
CFG = dict(
    vocab_size=256,
    context_length=16,
    emb_dim=32,
    n_heads=4,
    n_layers=2,
    drop_rate=0.0,   # dropout is identity
    qkv_bias=False,
)


# ---------------- shared math helpers (used both in-kernel and in the JAX reference) ----

def _layernorm(x, scale, shift, eps=1e-5):
    # matches torch: mean/var over last dim, var unbiased=False
    mean = jnp.mean(x, axis=-1, keepdims=True)
    var = jnp.mean((x - mean) ** 2, axis=-1, keepdims=True)
    return scale * (x - mean) / jnp.sqrt(var + eps) + shift


def _gelu_tanh(x):
    # matches the module's custom GELU (tanh approximation)
    c = jnp.sqrt(jnp.float32(2.0 / jnp.pi))
    return 0.5 * x * (1.0 + jnp.tanh(c * (x + 0.044715 * x ** 3)))


# ---------------- fused Pallas kernel ----------------------------------------------------

def fused_gpt_kernel(idx_ref, tok_ref, pos_ref, mask_ref,
                     ln1s_ref, ln1b_ref, wq_ref, wk_ref, wv_ref, wo_ref, bo_ref,
                     ln2s_ref, ln2b_ref, w1_ref, b1_ref, w2_ref, b2_ref,
                     lnfs_ref, lnfb_ref, wout_ref,
                     out_ref, *, batch, seq_len, num_heads, num_layers):
    """Embedding + all transformer blocks + final LayerNorm + LM head, batch folded into rows."""
    B, T, H, L = batch, seq_len, num_heads, num_layers
    BT = B * T
    V, E = tok_ref.shape
    bf16 = jnp.bfloat16

    # ---- embedding gather (one-hot MXU matmul, exact) + positional add; drop_emb = identity
    ids = idx_ref[...]                                              # (BT, 1) int32
    cols = lax.broadcasted_iota(jnp.int32, (BT, V), 1)
    onehot = jnp.where(ids == cols, jnp.float32(1.0), jnp.float32(0.0))      # (BT, V) f32
    x = jnp.dot(onehot, tok_ref[...], preferred_element_type=jnp.float32)    # (BT, E) f32
    pos = pos_ref[...]                                              # (T, E) f32
    x = x + jnp.concatenate([pos] * B, axis=0)                      # (BT, E) f32

    neg = mask_ref[...]                                             # (BT, BT) additive mask

    # n_layers is tiny & static -> fully unrolled Python loop (static weight indices).
    # TODO(synk): switch to lax.fori_loop over the stacked-weight axis once L grows.
    for l in range(L):
        # ---------------- multi-head attention branch ----------------
        hn = _layernorm(x, ln1s_ref[l], ln1b_ref[l])                # (BT, E) f32
        hb = hn.astype(bf16)
        attn = jnp.zeros((BT, E), jnp.float32)
        for h in range(H):                                          # head-major weights: aligned
            lh = l * H + h                                          # operands, no transposes
            q = jnp.dot(hb, wq_ref[lh], preferred_element_type=jnp.float32)  # (BT, Dh); 1/sqrt(Dh)
            k = jnp.dot(hb, wk_ref[lh], preferred_element_type=jnp.float32)  # folded into wq
            v = jnp.dot(hb, wv_ref[lh], preferred_element_type=jnp.float32)
            s = lax.dot_general(q.astype(bf16), k.astype(bf16),
                                (((1,), (1,)), ((), ())),
                                preferred_element_type=jnp.float32)           # (BT, BT) = q @ k^T
            s = s + neg                                                       # block-diag causal
            m = jnp.max(s, axis=-1, keepdims=True)
            e = jnp.exp(s - m)
            p = e * pl.reciprocal(jnp.sum(e, axis=-1, keepdims=True), approx=True)
            ctx = jnp.dot(p.astype(bf16), v.astype(bf16),
                          preferred_element_type=jnp.float32)                 # (BT, Dh)
            attn = attn + jnp.dot(ctx.astype(bf16), wo_ref[lh],
                                  preferred_element_type=jnp.float32)         # (BT, E) head sum
        x = x + attn + bo_ref[l]                                    # out_proj bias + residual

        # ---------------- feed-forward branch ----------------
        hn = _layernorm(x, ln2s_ref[l], ln2b_ref[l])                # (BT, E) f32
        h1 = jnp.dot(hn.astype(bf16), w1_ref[l],
                     preferred_element_type=jnp.float32) + b1_ref[l]          # (BT, 4E)
        h1 = _gelu_tanh(h1)                                         # f32 GELU
        ff = jnp.dot(h1.astype(bf16), w2_ref[l],
                     preferred_element_type=jnp.float32) + b2_ref[l]          # (BT, E)
        x = x + ff                                                  # residual

    # ---------------- final norm + LM head ----------------
    hn = _layernorm(x, lnfs_ref[...], lnfb_ref[...])                # (BT, E) f32
    out_ref[...] = jnp.dot(hn.astype(bf16), wout_ref[...],
                           preferred_element_type=jnp.float32)      # (BT, V) lane-dense


# ---------------- parameter prep & pallas_call wrapper ------------------------------------

def prep_kernel_params(params, cfg, seq_len):
    """Stack per-layer weights along a leading axis; head-major Q/K/V/out-proj; bf16 MXU operands."""
    E = cfg['emb_dim']
    H = cfg['n_heads']
    Dh = E // H
    L = cfg['n_layers']
    blocks = params['blocks']
    bf16 = jnp.bfloat16
    qscale = jnp.float32(1.0 / np.sqrt(Dh))

    def head_in(w):                      # (E_in, E_out) -> (H, E_in, Dh)
        return jnp.transpose(w.reshape(E, H, Dh), (1, 0, 2))

    def stack(fn):
        return jnp.stack([fn(bp) for bp in blocks], axis=0)

    return dict(
        tok=params['tok_emb'],                                          # (V, E)  f32 VMEM-resident
        pos=params['pos_emb'][:seq_len],                                # (T, E)  f32
        ln1_s=stack(lambda bp: bp['ln1_s'].reshape(1, E)),              # (L,1,E) f32
        ln1_b=stack(lambda bp: bp['ln1_b'].reshape(1, E)),
        wq=stack(lambda bp: head_in(bp['wq'] * qscale)).reshape(L * H, E, Dh).astype(bf16),
        wk=stack(lambda bp: head_in(bp['wk'])).reshape(L * H, E, Dh).astype(bf16),
        wv=stack(lambda bp: head_in(bp['wv'])).reshape(L * H, E, Dh).astype(bf16),
        wo=stack(lambda bp: bp['wo'].reshape(H, Dh, E)).reshape(L * H, Dh, E).astype(bf16),
        bo=stack(lambda bp: bp['bo'].reshape(1, E)),                    # (L,1,E)  f32
        ln2_s=stack(lambda bp: bp['ln2_s'].reshape(1, E)),
        ln2_b=stack(lambda bp: bp['ln2_b'].reshape(1, E)),
        w1=stack(lambda bp: bp['w1']).astype(bf16),                     # (L,E,4E) bf16
        b1=stack(lambda bp: bp['b1'].reshape(1, 4 * E)),                # (L,1,4E) f32
        w2=stack(lambda bp: bp['w2']).astype(bf16),                     # (L,4E,E) bf16
        b2=stack(lambda bp: bp['b2'].reshape(1, E)),                    # (L,1,E)  f32
        lnf_s=params['final_ln_s'].reshape(1, E),                       # (1,E)    f32
        lnf_b=params['final_ln_b'].reshape(1, E),
        wout=params['out_w'].astype(bf16),                              # (E,V)    bf16
    )


def _block_diag_causal_mask(batch, seq_len):
    """Additive mask over folded (B*T, B*T) rows: 0 where same batch & causal, else -1e30."""
    bt = batch * seq_len
    r = np.arange(bt)
    same = (r[:, None] // seq_len) == (r[None, :] // seq_len)
    causal = r[None, :] <= r[:, None]
    return jnp.asarray(np.where(same & causal, 0.0, -1e30).astype(np.float32))


def _resident_spec(arr):
    # Whole array resident in VMEM; constant block index (single grid step).
    zeros = (0,) * arr.ndim
    return pl.BlockSpec(arr.shape, lambda i: zeros)


def gpt_forward_pallas(params, in_idx, cfg):
    B, T = in_idx.shape
    V = cfg['vocab_size']
    BT = B * T

    kp = prep_kernel_params(params, cfg, T)
    mask = _block_diag_causal_mask(B, T)
    idx2d = in_idx.reshape(BT, 1).astype(jnp.int32)

    inputs = [idx2d, kp['tok'], kp['pos'], mask,
              kp['ln1_s'], kp['ln1_b'], kp['wq'], kp['wk'], kp['wv'], kp['wo'], kp['bo'],
              kp['ln2_s'], kp['ln2_b'], kp['w1'], kp['b1'], kp['w2'], kp['b2'],
              kp['lnf_s'], kp['lnf_b'], kp['wout']]

    kern = functools.partial(fused_gpt_kernel,
                             batch=B, seq_len=T,
                             num_heads=cfg['n_heads'], num_layers=cfg['n_layers'])

    logits = pl.pallas_call(
        kern,
        grid=(1,),                                               # single fused invocation
        in_specs=[_resident_spec(a) for a in inputs],
        out_specs=pl.BlockSpec((BT, V), lambda i: (0, 0)),       # lane-dense (V = 256)
        out_shape=jax.ShapeDtypeStruct((BT, V), jnp.float32),
        compiler_params=pltpu.CompilerParams(
            dimension_semantics=("arbitrary",)),
    )(*inputs)
    return logits.reshape(B, T, V)


# ---------------- parameters -------------------------------------------------------------

def init_params(key, cfg):
    E = cfg['emb_dim']
    V = cfg['vocab_size']
    C = cfg['context_length']
    keys = jax.random.split(key, 4 + cfg['n_layers'])

    def nrm(k, shape):
        return 0.02 * jax.random.normal(k, shape, jnp.float32)

    params = dict(
        tok_emb=nrm(keys[0], (V, E)),
        pos_emb=nrm(keys[1], (C, E)),
        out_w=nrm(keys[2], (E, V)),                       # out_head (no bias)
        final_ln_s=jnp.ones((1, 1, E), jnp.float32),
        final_ln_b=jnp.zeros((1, 1, E), jnp.float32),
        blocks=[],
    )
    for i in range(cfg['n_layers']):
        bk = jax.random.split(keys[4 + i], 6)
        params['blocks'].append(dict(
            ln1_s=jnp.ones((1, 1, E), jnp.float32), ln1_b=jnp.zeros((1, 1, E), jnp.float32),
            wq=nrm(bk[0], (E, E)), wk=nrm(bk[1], (E, E)), wv=nrm(bk[2], (E, E)),
            wo=nrm(bk[3], (E, E)), bo=jnp.zeros((1, E), jnp.float32),
            ln2_s=jnp.ones((1, 1, E), jnp.float32), ln2_b=jnp.zeros((1, 1, E), jnp.float32),
            w1=nrm(bk[4], (E, 4 * E)), b1=jnp.zeros((1, 4 * E), jnp.float32),
            w2=nrm(bk[5], (4 * E, E)), b2=jnp.zeros((1, E), jnp.float32),
        ))
    return params


# ---------------- pure-JAX reference (f32, for correctness check) ------------------------

def gpt_forward_ref(params, in_idx, cfg):
    B, T = in_idx.shape
    E = cfg['emb_dim']
    H = cfg['n_heads']
    Dh = E // H
    x = jnp.take(params['tok_emb'], in_idx, axis=0) + params['pos_emb'][:T][None]
    mask = jnp.triu(jnp.ones((T, T), jnp.float32), k=1)
    for bp in params['blocks']:
        h = _layernorm(x, bp['ln1_s'], bp['ln1_b'])
        q = (h @ bp['wq']).reshape(B, T, H, Dh).transpose(0, 2, 1, 3)
        k = (h @ bp['wk']).reshape(B, T, H, Dh).transpose(0, 2, 1, 3)
        v = (h @ bp['wv']).reshape(B, T, H, Dh).transpose(0, 2, 1, 3)
        s = jnp.einsum('bhtd,bhsd->bhts', q, k)
        s = jnp.where(mask[None, None] > 0, -jnp.inf, s) / jnp.sqrt(jnp.float32(Dh))
        p = jax.nn.softmax(s, axis=-1)
        ctx = jnp.einsum('bhts,bhsd->bhtd', p, v).transpose(0, 2, 1, 3).reshape(B, T, E)
        x = x + (ctx @ bp['wo'] + bp['bo'])
        h = _layernorm(x, bp['ln2_s'], bp['ln2_b'])
        x = x + (_gelu_tanh(h @ bp['w1'] + bp['b1']) @ bp['w2'] + bp['b2'])
    x = _layernorm(x, params['final_ln_s'], params['final_ln_b'])
    return x @ params['out_w']


# ---------------- main --------------------------------------------------------------------

if __name__ == "__main__":
    key = jax.random.PRNGKey(0)
    pkey, dkey = jax.random.split(key)

    params = init_params(pkey, CFG)

    B, T = 2, 8   # batch=2, seq=8 (<= context_length)
    in_idx = jax.random.randint(dkey, (B, T), 0, CFG['vocab_size'], dtype=jnp.int32)

    logits = gpt_forward_pallas(params, in_idx, CFG)
    logits = jax.block_until_ready(logits)

    ref = jax.block_until_ready(gpt_forward_ref(params, in_idx, CFG))

    assert logits.shape == (B, T, CFG['vocab_size'])
    assert bool(jnp.all(jnp.isfinite(logits)))
    # kernel uses bf16 MXU operands (f32 accumulation) and an approx reciprocal; reference is pure f32
    assert np.allclose(np.asarray(logits), np.asarray(ref), atol=2e-2, rtol=2e-2)

    print("KERNEL_OK")
</pallas_src>

<mosaic_0001>
module attributes {stable_mosaic.version = 11 : i64} {
  func.func @fused_gpt_kernel(%arg0: i32, %arg1: memref<16x1xi32, #tpu.memory_space<vmem>>, %arg2: memref<256x32xf32, #tpu.memory_space<vmem>>, %arg3: memref<8x32xf32, #tpu.memory_space<vmem>>, %arg4: memref<16x16xf32, #tpu.memory_space<vmem>>, %arg5: memref<2x1x32xf32, #tpu.memory_space<vmem>>, %arg6: memref<2x1x32xf32, #tpu.memory_space<vmem>>, %arg7: memref<8x32x8xbf16, #tpu.memory_space<vmem>>, %arg8: memref<8x32x8xbf16, #tpu.memory_space<vmem>>, %arg9: memref<8x32x8xbf16, #tpu.memory_space<vmem>>, %arg10: memref<8x8x32xbf16, #tpu.memory_space<vmem>>, %arg11: memref<2x1x32xf32, #tpu.memory_space<vmem>>, %arg12: memref<2x1x32xf32, #tpu.memory_space<vmem>>, %arg13: memref<2x1x32xf32, #tpu.memory_space<vmem>>, %arg14: memref<2x32x128xbf16, #tpu.memory_space<vmem>>, %arg15: memref<2x1x128xf32, #tpu.memory_space<vmem>>, %arg16: memref<2x128x32xbf16, #tpu.memory_space<vmem>>, %arg17: memref<2x1x32xf32, #tpu.memory_space<vmem>>, %arg18: memref<1x32xf32, #tpu.memory_space<vmem>>, %arg19: memref<1x32xf32, #tpu.memory_space<vmem>>, %arg20: memref<32x256xbf16, #tpu.memory_space<vmem>>, %arg21: memref<16x256xf32, #tpu.memory_space<vmem>>) attributes {dimension_semantics = [#tpu.dimension_semantics<arbitrary>], iteration_bounds = array<i64: 1>, scalar_prefetch = 0 : i64, scratch_operands = 0 : i64, tpu.core_type = #tpu.core_type<tc>, window_params = [{pipeline_mode = #tpu.pipeline_mode<synchronous>, transform_indices = @transform_0, window_bounds = array<i64: 16, 1>}, {pipeline_mode = #tpu.pipeline_mode<synchronous>, transform_indices = @transform_1, window_bounds = array<i64: 256, 32>}, {pipeline_mode = #tpu.pipeline_mode<synchronous>, transform_indices = @transform_2, window_bounds = array<i64: 8, 32>}, {pipeline_mode = #tpu.pipeline_mode<synchronous>, transform_indices = @transform_3, window_bounds = array<i64: 16, 16>}, {pipeline_mode = #tpu.pipeline_mode<synchronous>, transform_indices = @transform_4, window_bounds = array<i64: 2, 1, 32>}, {pipeline_mode = #tpu.pipeline_mode<synchronous>, transform_indices = @transform_5, window_bounds = array<i64: 2, 1, 32>}, {pipeline_mode = #tpu.pipeline_mode<synchronous>, transform_indices = @transform_6, window_bounds = array<i64: 8, 32, 8>}, {pipeline_mode = #tpu.pipeline_mode<synchronous>, transform_indices = @transform_7, window_bounds = array<i64: 8, 32, 8>}, {pipeline_mode = #tpu.pipeline_mode<synchronous>, transform_indices = @transform_8, window_bounds = array<i64: 8, 32, 8>}, {pipeline_mode = #tpu.pipeline_mode<synchronous>, transform_indices = @transform_9, window_bounds = array<i64: 8, 8, 32>}, {pipeline_mode = #tpu.pipeline_mode<synchronous>, transform_indices = @transform_10, window_bounds = array<i64: 2, 1, 32>}, {pipeline_mode = #tpu.pipeline_mode<synchronous>, transform_indices = @transform_11, window_bounds = array<i64: 2, 1, 32>}, {pipeline_mode = #tpu.pipeline_mode<synchronous>, transform_indices = @transform_12, window_bounds = array<i64: 2, 1, 32>}, {pipeline_mode = #tpu.pipeline_mode<synchronous>, transform_indices = @transform_13, window_bounds = array<i64: 2, 32, 128>}, {pipeline_mode = #tpu.pipeline_mode<synchronous>, transform_indices = @transform_14, window_bounds = array<i64: 2, 1, 128>}, {pipeline_mode = #tpu.pipeline_mode<synchronous>, transform_indices = @transform_15, window_bounds = array<i64: 2, 128, 32>}, {pipeline_mode = #tpu.pipeline_mode<synchronous>, transform_indices = @transform_16, window_bounds = array<i64: 2, 1, 32>}, {pipeline_mode = #tpu.pipeline_mode<synchronous>, transform_indices = @transform_17, window_bounds = array<i64: 1, 32>}, {pipeline_mode = #tpu.pipeline_mode<synchronous>, transform_indices = @transform_18, window_bounds = array<i64: 1, 32>}, {pipeline_mode = #tpu.pipeline_mode<synchronous>, transform_indices = @transform_19, window_bounds = array<i64: 32, 256>}, {pipeline_mode = #tpu.pipeline_mode<synchronous>, transform_indices = @transform_20, window_bounds = array<i64: 16, 256>}]} {
    %c0 = arith.constant 0 : index
    %c0_0 = arith.constant 0 : index
    %0 = vector.load %arg1[%c0, %c0_0] : memref<16x1xi32, #tpu.memory_space<vmem>>, vector<16x1xi32>
    %1 = tpu.iota {dimensions = array<i32: 1>} : vector<16x256xi32>
    %2 = vector.broadcast %0 : vector<16x1xi32> to vector<16x256xi32>
    %3 = arith.cmpi eq, %2, %1 : vector<16x256xi32>
    %cst = arith.constant 1.000000e+00 : f32
    %cst_1 = arith.constant 0.000000e+00 : f32
    %4 = vector.broadcast %cst : f32 to vector<16x256xf32>
    %5 = vector.broadcast %cst_1 : f32 to vector<16x256xf32>
    %6 = arith.select %3, %4, %5 : vector<16x256xi1>, vector<16x256xf32>
    %c0_2 = arith.constant 0 : index
    %c0_3 = arith.constant 0 : index
    %7 = vector.load %arg2[%c0_2, %c0_3] : memref<256x32xf32, #tpu.memory_space<vmem>>, vector<256x32xf32>
    %cst_4 = arith.constant dense<0.000000e+00> : vector<16x32xf32>
    %8 = tpu.matmul %6, %7, %cst_4 {dimension_numbers = #tpu.dot_dimension_numbers<[1], [0], [0], [1], [0, 0, 1, 1], [], []>} : vector<16x256xf32>, vector<256x32xf32>, vector<16x32xf32> -> vector<16x32xf32>
    %c0_5 = arith.constant 0 : index
    %c0_6 = arith.constant 0 : index
    %9 = vector.load %arg3[%c0_5, %c0_6] : memref<8x32xf32, #tpu.memory_space<vmem>>, vector<8x32xf32>
    %10 = tpu.concatenate %9, %9 in 0 : vector<8x32xf32>, vector<8x32xf32> -> vector<16x32xf32>
    %11 = arith.addf %8, %10 : vector<16x32xf32>
    %c0_7 = arith.constant 0 : index
    %c0_8 = arith.constant 0 : index
    %12 = vector.load %arg4[%c0_7, %c0_8] : memref<16x16xf32, #tpu.memory_space<vmem>>, vector<16x16xf32>
    %c0_9 = arith.constant 0 : index
    %c0_10 = arith.constant 0 : index
    %c0_11 = arith.constant 0 : index
    %13 = vector.load %arg5[%c0_9, %c0_10, %c0_11] : memref<2x1x32xf32, #tpu.memory_space<vmem>>, vector<1x1x32xf32>
    %14 = vector.shape_cast %13 : vector<1x1x32xf32> to vector<1x32xf32>
    %c0_12 = arith.constant 0 : index
    %c0_13 = arith.constant 0 : index
    %c0_14 = arith.constant 0 : index
    %15 = vector.load %arg6[%c0_12, %c0_13, %c0_14] : memref<2x1x32xf32, #tpu.memory_space<vmem>>, vector<1x1x32xf32>
    %16 = vector.shape_cast %15 : vector<1x1x32xf32> to vector<1x32xf32>
    %cst_15 = arith.constant dense<0.000000e+00> : vector<16xf32>
    %17 = vector.multi_reduction <add>, %11, %cst_15 [1] : vector<16x32xf32> to vector<16xf32>
    %18 = vector.shape_cast %17 : vector<16xf32> to vector<16x1xf32>
    %cst_16 = arith.constant 3.200000e+01 : f32
    %19 = vector.broadcast %cst_16 : f32 to vector<16x1xf32>
    %20 = arith.divf %18, %19 : vector<16x1xf32>
    %21 = vector.broadcast %20 : vector<16x1xf32> to vector<16x32xf32>
    %22 = arith.subf %11, %21 : vector<16x32xf32>
    %23 = arith.mulf %22, %22 : vector<16x32xf32>
    %cst_17 = arith.constant dense<0.000000e+00> : vector<16xf32>
    %24 = vector.multi_reduction <add>, %23, %cst_17 [1] : vector<16x32xf32> to vector<16xf32>
    %25 = vector.shape_cast %24 : vector<16xf32> to vector<16x1xf32>
    %cst_18 = arith.constant 3.200000e+01 : f32
    %26 = vector.broadcast %cst_18 : f32 to vector<16x1xf32>
    %27 = arith.divf %25, %26 : vector<16x1xf32>
    %28 = vector.broadcast %20 : vector<16x1xf32> to vector<16x32xf32>
    %29 = arith.subf %11, %28 : vector<16x32xf32>
    %30 = vector.broadcast %14 : vector<1x32xf32> to vector<16x32xf32>
    %31 = arith.mulf %30, %29 : vector<16x32xf32>
    %cst_19 = arith.constant 9.99999974E-6 : f32
    %32 = vector.broadcast %cst_19 : f32 to vector<16x1xf32>
    %33 = arith.addf %27, %32 : vector<16x1xf32>
    %34 = math.sqrt %33 : vector<16x1xf32>
    %35 = vector.broadcast %34 : vector<16x1xf32> to vector<16x32xf32>
    %36 = arith.divf %31, %35 : vector<16x32xf32>
    %37 = vector.broadcast %16 : vector<1x32xf32> to vector<16x32xf32>
    %38 = arith.addf %36, %37 : vector<16x32xf32>
    %39 = arith.truncf %38 : vector<16x32xf32> to vector<16x32xbf16>
    %cst_20 = arith.constant 0.000000e+00 : f32
    %40 = vector.broadcast %cst_20 : f32 to vector<16x32xf32>
    %c0_21 = arith.constant 0 : index
    %c0_22 = arith.constant 0 : index
    %c0_23 = arith.constant 0 : index
    %41 = vector.load %arg7[%c0_21, %c0_22, %c0_23] : memref<8x32x8xbf16, #tpu.memory_space<vmem>>, vector<1x32x8xbf16>
    %42 = vector.shape_cast %41 : vector<1x32x8xbf16> to vector<32x8xbf16>
    %cst_24 = arith.constant dense<0.000000e+00> : vector<16x8xf32>
    %43 = tpu.matmul %39, %42, %cst_24 {dimension_numbers = #tpu.dot_dimension_numbers<[1], [0], [0], [1], [0, 0, 1, 1], [], []>} : vector<16x32xbf16>, vector<32x8xbf16>, vector<16x8xf32> -> vector<16x8xf32>
    %c0_25 = arith.constant 0 : index
    %c0_26 = arith.constant 0 : index
    %c0_27 = arith.constant 0 : index
    %44 = vector.load %arg8[%c0_25, %c0_26, %c0_27] : memref<8x32x8xbf16, #tpu.memory_space<vmem>>, vector<1x32x8xbf16>
    %45 = vector.shape_cast %44 : vector<1x32x8xbf16> to vector<32x8xbf16>
    %cst_28 = arith.constant dense<0.000000e+00> : vector<16x8xf32>
    %46 = tpu.matmul %39, %45, %cst_28 {dimension_numbers = #tpu.dot_dimension_numbers<[1], [0], [0], [1], [0, 0, 1, 1], [], []>} : vector<16x32xbf16>, vector<32x8xbf16>, vector<16x8xf32> -> vector<16x8xf32>
    %c0_29 = arith.constant 0 : index
    %c0_30 = arith.constant 0 : index
    %c0_31 = arith.constant 0 : index
    %47 = vector.load %arg9[%c0_29, %c0_30, %c0_31] : memref<8x32x8xbf16, #tpu.memory_space<vmem>>, vector<1x32x8xbf16>
    %48 = vector.shape_cast %47 : vector<1x32x8xbf16> to vector<32x8xbf16>
    %cst_32 = arith.constant dense<0.000000e+00> : vector<16x8xf32>
    %49 = tpu.matmul %39, %48, %cst_32 {dimension_numbers = #tpu.dot_dimension_numbers<[1], [0], [0], [1], [0, 0, 1, 1], [], []>} : vector<16x32xbf16>, vector<32x8xbf16>, vector<16x8xf32> -> vector<16x8xf32>
    %50 = arith.truncf %43 : vector<16x8xf32> to vector<16x8xbf16>
    %51 = arith.truncf %46 : vector<16x8xf32> to vector<16x8xbf16>
    %cst_33 = arith.constant dense<0.000000e+00> : vector<16x16xf32>
    %52 = tpu.matmul %50, %51, %cst_33 {dimension_numbers = #tpu.dot_dimension_numbers<[1], [1], [0], [0], [0, 0, 1, 0], [], []>} : vector<16x8xbf16>, vector<16x8xbf16>, vector<16x16xf32> -> vector<16x16xf32>
    %53 = arith.addf %52, %12 : vector<16x16xf32>
    %cst_34 = arith.constant dense<0xFF800000> : vector<16xf32>
    %54 = vector.multi_reduction <maximumf>, %53, %cst_34 [1] : vector<16x16xf32> to vector<16xf32>
    %55 = vector.shape_cast %54 : vector<16xf32> to vector<16x1xf32>
    %56 = vector.broadcast %55 : vector<16x1xf32> to vector<16x16xf32>
    %57 = arith.subf %53, %56 : vector<16x16xf32>
    %58 = math.exp %57 : vector<16x16xf32>
    %cst_35 = arith.constant dense<0.000000e+00> : vector<16xf32>
    %59 = vector.multi_reduction <add>, %58, %cst_35 [1] : vector<16x16xf32> to vector<16xf32>
    %60 = vector.shape_cast %59 : vector<16xf32> to vector<16x1xf32>
    %61 = tpu.reciprocal %60 {approx = true} : vector<16x1xf32> -> vector<16x1xf32>
    %62 = vector.broadcast %61 : vector<16x1xf32> to vector<16x16xf32>
    %63 = arith.mulf %58, %62 : vector<16x16xf32>
    %64 = arith.truncf %63 : vector<16x16xf32> to vector<16x16xbf16>
    %65 = arith.truncf %49 : vector<16x8xf32> to vector<16x8xbf16>
    %cst_36 = arith.constant dense<0.000000e+00> : vector<16x8xf32>
    %66 = tpu.matmul %64, %65, %cst_36 {dimension_numbers = #tpu.dot_dimension_numbers<[1], [0], [0], [1], [0, 0, 1, 1], [], []>} : vector<16x16xbf16>, vector<16x8xbf16>, vector<16x8xf32> -> vector<16x8xf32>
    %67 = arith.truncf %66 : vector<16x8xf32> to vector<16x8xbf16>
    %c0_37 = arith.constant 0 : index
    %c0_38 = arith.constant 0 : index
    %c0_39 = arith.constant 0 : index
    %68 = vector.load %arg10[%c0_37, %c0_38, %c0_39] : memref<8x8x32xbf16, #tpu.memory_space<vmem>>, vector<1x8x32xbf16>
    %69 = vector.shape_cast %68 : vector<1x8x32xbf16> to vector<8x32xbf16>
    %cst_40 = arith.constant dense<0.000000e+00> : vector<16x32xf32>
    %70 = tpu.matmul %67, %69, %cst_40 {dimension_numbers = #tpu.dot_dimension_numbers<[1], [0], [0], [1], [0, 0, 1, 1], [], []>} : vector<16x8xbf16>, vector<8x32xbf16>, vector<16x32xf32> -> vector<16x32xf32>
    %71 = arith.addf %40, %70 : vector<16x32xf32>
    %c1 = arith.constant 1 : index
    %c0_41 = arith.constant 0 : index
    %c0_42 = arith.constant 0 : index
    %72 = vector.load %arg7[%c1, %c0_41, %c0_42] : memref<8x32x8xbf16, #tpu.memory_space<vmem>>, vector<1x32x8xbf16>
    %73 = vector.shape_cast %72 : vector<1x32x8xbf16> to vector<32x8xbf16>
    %cst_43 = arith.constant dense<0.000000e+00> : vector<16x8xf32>
    %74 = tpu.matmul %39, %73, %cst_43 {dimension_numbers = #tpu.dot_dimension_numbers<[1], [0], [0], [1], [0, 0, 1, 1], [], []>} : vector<16x32xbf16>, vector<32x8xbf16>, vector<16x8xf32> -> vector<16x8xf32>
    %c1_44 = arith.constant 1 : index
    %c0_45 = arith.constant 0 : index
    %c0_46 = arith.constant 0 : index
    %75 = vector.load %arg8[%c1_44, %c0_45, %c0_46] : memref<8x32x8xbf16, #tpu.memory_space<vmem>>, vector<1x32x8xbf16>
    %76 = vector.shape_cast %75 : vector<1x32x8xbf16> to vector<32x8xbf16>
    %cst_47 = arith.constant dense<0.000000e+00> : vector<16x8xf32>
    %77 = tpu.matmul %39, %76, %cst_47 {dimension_numbers = #tpu.dot_dimension_numbers<[1], [0], [0], [1], [0, 0, 1, 1], [], []>} : vector<16x32xbf16>, vector<32x8xbf16>, vector<16x8xf32> -> vector<16x8xf32>
    %c1_48 = arith.constant 1 : index
    %c0_49 = arith.constant 0 : index
    %c0_50 = arith.constant 0 : index
    %78 = vector.load %arg9[%c1_48, %c0_49, %c0_50] : memref<8x32x8xbf16, #tpu.memory_space<vmem>>, vector<1x32x8xbf16>
    %79 = vector.shape_cast %78 : vector<1x32x8xbf16> to vector<32x8xbf16>
    %cst_51 = arith.constant dense<0.000000e+00> : vector<16x8xf32>
    %80 = tpu.matmul %39, %79, %cst_51 {dimension_numbers = #tpu.dot_dimension_numbers<[1], [0], [0], [1], [0, 0, 1, 1], [], []>} : vector<16x32xbf16>, vector<32x8xbf16>, vector<16x8xf32> -> vector<16x8xf32>
    %81 = arith.truncf %74 : vector<16x8xf32> to vector<16x8xbf16>
    %82 = arith.truncf %77 : vector<16x8xf32> to vector<16x8xbf16>
    %cst_52 = arith.constant dense<0.000000e+00> : vector<16x16xf32>
    %83 = tpu.matmul %81, %82, %cst_52 {dimension_numbers = #tpu.dot_dimension_numbers<[1], [1], [0], [0], [0, 0, 1, 0], [], []>} : vector<16x8xbf16>, vector<16x8xbf16>, vector<16x16xf32> -> vector<16x16xf32>
    %84 = arith.addf %83, %12 : vector<16x16xf32>
    %cst_53 = arith.constant dense<0xFF800000> : vector<16xf32>
    %85 = vector.multi_reduction <maximumf>, %84, %cst_53 [1] : vector<16x16xf32> to vector<16xf32>
    %86 = vector.shape_cast %85 : vector<16xf32> to vector<16x1xf32>
    %87 = vector.broadcast %86 : vector<16x1xf32> to vector<16x16xf32>
    %88 = arith.subf %84, %87 : vector<16x16xf32>
    %89 = math.exp %88 : vector<16x16xf32>
    %cst_54 = arith.constant dense<0.000000e+00> : vector<16xf32>
    %90 = vector.multi_reduction <add>, %89, %cst_54 [1] : vector<16x16xf32> to vector<16xf32>
    %91 = vector.shape_cast %90 : vector<16xf32> to vector<16x1xf32>
    %92 = tpu.reciprocal %91 {approx = true} : vector<16x1xf32> -> vector<16x1xf32>
    %93 = vector.broadcast %92 : vector<16x1xf32> to vector<16x16xf32>
    %94 = arith.mulf %89, %93 : vector<16x16xf32>
    %95 = arith.truncf %94 : vector<16x16xf32> to vector<16x16xbf16>
    %96 = arith.truncf %80 : vector<16x8xf32> to vector<16x8xbf16>
    %cst_55 = arith.constant dense<0.000000e+00> : vector<16x8xf32>
    %97 = tpu.matmul %95, %96, %cst_55 {dimension_numbers = #tpu.dot_dimension_numbers<[1], [0], [0], [1], [0, 0, 1, 1], [], []>} : vector<16x16xbf16>, vector<16x8xbf16>, vector<16x8xf32> -> vector<16x8xf32>
    %98 = arith.truncf %97 : vector<16x8xf32> to vector<16x8xbf16>
    %c1_56 = arith.constant 1 : index
    %c0_57 = arith.constant 0 : index
    %c0_58 = arith.constant 0 : index
    %99 = vector.load %arg10[%c1_56, %c0_57, %c0_58] : memref<8x8x32xbf16, #tpu.memory_space<vmem>>, vector<1x8x32xbf16>
    %100 = vector.shape_cast %99 : vector<1x8x32xbf16> to vector<8x32xbf16>
    %cst_59 = arith.constant dense<0.000000e+00> : vector<16x32xf32>
    %101 = tpu.matmul %98, %100, %cst_59 {dimension_numbers = #tpu.dot_dimension_numbers<[1], [0], [0], [1], [0, 0, 1, 1], [], []>} : vector<16x8xbf16>, vector<8x32xbf16>, vector<16x32xf32> -> vector<16x32xf32>
    %102 = arith.addf %71, %101 : vector<16x32xf32>
    %c2 = arith.constant 2 : index
    %c0_60 = arith.constant 0 : index
    %c0_61 = arith.constant 0 : index
    %103 = vector.load %arg7[%c2, %c0_60, %c0_61] : memref<8x32x8xbf16, #tpu.memory_space<vmem>>, vector<1x32x8xbf16>
    %104 = vector.shape_cast %103 : vector<1x32x8xbf16> to vector<32x8xbf16>
    %cst_62 = arith.constant dense<0.000000e+00> : vector<16x8xf32>
    %105 = tpu.matmul %39, %104, %cst_62 {dimension_numbers = #tpu.dot_dimension_numbers<[1], [0], [0], [1], [0, 0, 1, 1], [], []>} : vector<16x32xbf16>, vector<32x8xbf16>, vector<16x8xf32> -> vector<16x8xf32>
    %c2_63 = arith.constant 2 : index
    %c0_64 = arith.constant 0 : index
    %c0_65 = arith.constant 0 : index
    %106 = vector.load %arg8[%c2_63, %c0_64, %c0_65] : memref<8x32x8xbf16, #tpu.memory_space<vmem>>, vector<1x32x8xbf16>
    %107 = vector.shape_cast %106 : vector<1x32x8xbf16> to vector<32x8xbf16>
    %cst_66 = arith.constant dense<0.000000e+00> : vector<16x8xf32>
    %108 = tpu.matmul %39, %107, %cst_66 {dimension_numbers = #tpu.dot_dimension_numbers<[1], [0], [0], [1], [0, 0, 1, 1], [], []>} : vector<16x32xbf16>, vector<32x8xbf16>, vector<16x8xf32> -> vector<16x8xf32>
    %c2_67 = arith.constant 2 : index
    %c0_68 = arith.constant 0 : index
    %c0_69 = arith.constant 0 : index
    %109 = vector.load %arg9[%c2_67, %c0_68, %c0_69] : memref<8x32x8xbf16, #tpu.memory_space<vmem>>, vector<1x32x8xbf16>
    %110 = vector.shape_cast %109 : vector<1x32x8xbf16> to vector<32x8xbf16>
    %cst_70 = arith.constant dense<0.000000e+00> : vector<16x8xf32>
    %111 = tpu.matmul %39, %110, %cst_70 {dimension_numbers = #tpu.dot_dimension_numbers<[1], [0], [0], [1], [0, 0, 1, 1], [], []>} : vector<16x32xbf16>, vector<32x8xbf16>, vector<16x8xf32> -> vector<16x8xf32>
    %112 = arith.truncf %105 : vector<16x8xf32> to vector<16x8xbf16>
    %113 = arith.truncf %108 : vector<16x8xf32> to vector<16x8xbf16>
    %cst_71 = arith.constant dense<0.000000e+00> : vector<16x16xf32>
    %114 = tpu.matmul %112, %113, %cst_71 {dimension_numbers = #tpu.dot_dimension_numbers<[1], [1], [0], [0], [0, 0, 1, 0], [], []>} : vector<16x8xbf16>, vector<16x8xbf16>, vector<16x16xf32> -> vector<16x16xf32>
    %115 = arith.addf %114, %12 : vector<16x16xf32>
    %cst_72 = arith.constant dense<0xFF800000> : vector<16xf32>
    %116 = vector.multi_reduction <maximumf>, %115, %cst_72 [1] : vector<16x16xf32> to vector<16xf32>
    %117 = vector.shape_cast %116 : vector<16xf32> to vector<16x1xf32>
    %118 = vector.broadcast %117 : vector<16x1xf32> to vector<16x16xf32>
    %119 = arith.subf %115, %118 : vector<16x16xf32>
    %120 = math.exp %119 : vector<16x16xf32>
    %cst_73 = arith.constant dense<0.000000e+00> : vector<16xf32>
    %121 = vector.multi_reduction <add>, %120, %cst_73 [1] : vector<16x16xf32> to vector<16xf32>
    %122 = vector.shape_cast %121 : vector<16xf32> to vector<16x1xf32>
    %123 = tpu.reciprocal %122 {approx = true} : vector<16x1xf32> -> vector<16x1xf32>
    %124 = vector.broadcast %123 : vector<16x1xf32> to vector<16x16xf32>
    %125 = arith.mulf %120, %124 : vector<16x16xf32>
    %126 = arith.truncf %125 : vector<16x16xf32> to vector<16x16xbf16>
    %127 = arith.truncf %111 : vector<16x8xf32> to vector<16x8xbf16>
    %cst_74 = arith.constant dense<0.000000e+00> : vector<16x8xf32>
    %128 = tpu.matmul %126, %127, %cst_74 {dimension_numbers = #tpu.dot_dimension_numbers<[1], [0], [0], [1], [0, 0, 1, 1], [], []>} : vector<16x16xbf16>, vector<16x8xbf16>, vector<16x8xf32> -> vector<16x8xf32>
    %129 = arith.truncf %128 : vector<16x8xf32> to vector<16x8xbf16>
    %c2_75 = arith.constant 2 : index
    %c0_76 = arith.constant 0 : index
    %c0_77 = arith.constant 0 : index
    %130 = vector.load %arg10[%c2_75, %c0_76, %c0_77] : memref<8x8x32xbf16, #tpu.memory_space<vmem>>, vector<1x8x32xbf16>
    %131 = vector.shape_cast %130 : vector<1x8x32xbf16> to vector<8x32xbf16>
    %cst_78 = arith.constant dense<0.000000e+00> : vector<16x32xf32>
    %132 = tpu.matmul %129, %131, %cst_78 {dimension_numbers = #tpu.dot_dimension_numbers<[1], [0], [0], [1], [0, 0, 1, 1], [], []>} : vector<16x8xbf16>, vector<8x32xbf16>, vector<16x32xf32> -> vector<16x32xf32>
    %133 = arith.addf %102, %132 : vector<16x32xf32>
    %c3 = arith.constant 3 : index
    %c0_79 = arith.constant 0 : index
    %c0_80 = arith.constant 0 : index
    %134 = vector.load %arg7[%c3, %c0_79, %c0_80] : memref<8x32x8xbf16, #tpu.memory_space<vmem>>, vector<1x32x8xbf16>
    %135 = vector.shape_cast %134 : vector<1x32x8xbf16> to vector<32x8xbf16>
    %cst_81 = arith.constant dense<0.000000e+00> : vector<16x8xf32>
    %136 = tpu.matmul %39, %135, %cst_81 {dimension_numbers = #tpu.dot_dimension_numbers<[1], [0], [0], [1], [0, 0, 1, 1], [], []>} : vector<16x32xbf16>, vector<32x8xbf16>, vector<16x8xf32> -> vector<16x8xf32>
    %c3_82 = arith.constant 3 : index
    %c0_83 = arith.constant 0 : index
    %c0_84 = arith.constant 0 : index
    %137 = vector.load %arg8[%c3_82, %c0_83, %c0_84] : memref<8x32x8xbf16, #tpu.memory_space<vmem>>, vector<1x32x8xbf16>
    %138 = vector.shape_cast %137 : vector<1x32x8xbf16> to vector<32x8xbf16>
    %cst_85 = arith.constant dense<0.000000e+00> : vector<16x8xf32>
    %139 = tpu.matmul %39, %138, %cst_85 {dimension_numbers = #tpu.dot_dimension_numbers<[1], [0], [0], [1], [0, 0, 1, 1], [], []>} : vector<16x32xbf16>, vector<32x8xbf16>, vector<16x8xf32> -> vector<16x8xf32>
    %c3_86 = arith.constant 3 : index
    %c0_87 = arith.constant 0 : index
    %c0_88 = arith.constant 0 : index
    %140 = vector.load %arg9[%c3_86, %c0_87, %c0_88] : memref<8x32x8xbf16, #tpu.memory_space<vmem>>, vector<1x32x8xbf16>
    %141 = vector.shape_cast %140 : vector<1x32x8xbf16> to vector<32x8xbf16>
    %cst_89 = arith.constant dense<0.000000e+00> : vector<16x8xf32>
    %142 = tpu.matmul %39, %141, %cst_89 {dimension_numbers = #tpu.dot_dimension_numbers<[1], [0], [0], [1], [0, 0, 1, 1], [], []>} : vector<16x32xbf16>, vector<32x8xbf16>, vector<16x8xf32> -> vector<16x8xf32>
    %143 = arith.truncf %136 : vector<16x8xf32> to vector<16x8xbf16>
    %144 = arith.truncf %139 : vector<16x8xf32> to vector<16x8xbf16>
    %cst_90 = arith.constant dense<0.000000e+00> : vector<16x16xf32>
    %145 = tpu.matmul %143, %144, %cst_90 {dimension_numbers = #tpu.dot_dimension_numbers<[1], [1], [0], [0], [0, 0, 1, 0], [], []>} : vector<16x8xbf16>, vector<16x8xbf16>, vector<16x16xf32> -> vector<16x16xf32>
    %146 = arith.addf %145, %12 : vector<16x16xf32>
    %cst_91 = arith.constant dense<0xFF800000> : vector<16xf32>
    %147 = vector.multi_reduction <maximumf>, %146, %cst_91 [1] : vector<16x16xf32> to vector<16xf32>
    %148 = vector.shape_cast %147 : vector<16xf32> to vector<16x1xf32>
    %149 = vector.broadcast %148 : vector<16x1xf32> to vector<16x16xf32>
    %150 = arith.subf %146, %149 : vector<16x16xf32>
    %151 = math.exp %150 : vector<16x16xf32>
    %cst_92 = arith.constant dense<0.000000e+00> : vector<16xf32>
    %152 = vector.multi_reduction <add>, %151, %cst_92 [1] : vector<16x16xf32> to vector<16xf32>
    %153 = vector.shape_cast %152 : vector<16xf32> to vector<16x1xf32>
    %154 = tpu.reciprocal %153 {approx = true} : vector<16x1xf32> -> vector<16x1xf32>
    %155 = vector.broadcast %154 : vector<16x1xf32> to vector<16x16xf32>
    %156 = arith.mulf %151, %155 : vector<16x16xf32>
    %157 = arith.truncf %156 : vector<16x16xf32> to vector<16x16xbf16>
    %158 = arith.truncf %142 : vector<16x8xf32> to vector<16x8xbf16>
    %cst_93 = arith.constant dense<0.000000e+00> : vector<16x8xf32>
    %159 = tpu.matmul %157, %158, %cst_93 {dimension_numbers = #tpu.dot_dimension_numbers<[1], [0], [0], [1], [0, 0, 1, 1], [], []>} : vector<16x16xbf16>, vector<16x8xbf16>, vector<16x8xf32> -> vector<16x8xf32>
    %160 = arith.truncf %159 : vector<16x8xf32> to vector<16x8xbf16>
    %c3_94 = arith.constant 3 : index
    %c0_95 = arith.constant 0 : index
    %c0_96 = arith.constant 0 : index
    %161 = vector.load %arg10[%c3_94, %c0_95, %c0_96] : memref<8x8x32xbf16, #tpu.memory_space<vmem>>, vector<1x8x32xbf16>
    %162 = vector.shape_cast %161 : vector<1x8x32xbf16> to vector<8x32xbf16>
    %cst_97 = arith.constant dense<0.000000e+00> : vector<16x32xf32>
    %163 = tpu.matmul %160, %162, %cst_97 {dimension_numbers = #tpu.dot_dimension_numbers<[1], [0], [0], [1], [0, 0, 1, 1], [], []>} : vector<16x8xbf16>, vector<8x32xbf16>, vector<16x32xf32> -> vector<16x32xf32>
    %164 = arith.addf %133, %163 : vector<16x32xf32>
    %165 = arith.addf %11, %164 : vector<16x32xf32>
    %c0_98 = arith.constant 0 : index
    %c0_99 = arith.constant 0 : index
    %c0_100 = arith.constant 0 : index
    %166 = vector.load %arg11[%c0_98, %c0_99, %c0_100] : memref<2x1x32xf32, #tpu.memory_space<vmem>>, vector<1x1x32xf32>
    %167 = vector.shape_cast %166 : vector<1x1x32xf32> to vector<1x32xf32>
    %168 = vector.broadcast %167 : vector<1x32xf32> to vector<16x32xf32>
    %169 = arith.addf %165, %168 : vector<16x32xf32>
    %c0_101 = arith.constant 0 : index
    %c0_102 = arith.constant 0 : index
    %c0_103 = arith.constant 0 : index
    %170 = vector.load %arg12[%c0_101, %c0_102, %c0_103] : memref<2x1x32xf32, #tpu.memory_space<vmem>>, vector<1x1x32xf32>
    %171 = vector.shape_cast %170 : vector<1x1x32xf32> to vector<1x32xf32>
    %c0_104 = arith.constant 0 : index
    %c0_105 = arith.constant 0 : index
    %c0_106 = arith.constant 0 : index
    %172 = vector.load %arg13[%c0_104, %c0_105, %c0_106] : memref<2x1x32xf32, #tpu.memory_space<vmem>>, vector<1x1x32xf32>
    %173 = vector.shape_cast %172 : vector<1x1x32xf32> to vector<1x32xf32>
    %cst_107 = arith.constant dense<0.000000e+00> : vector<16xf32>
    %174 = vector.multi_reduction <add>, %169, %cst_107 [1] : vector<16x32xf32> to vector<16xf32>
    %175 = vector.shape_cast %174 : vector<16xf32> to vector<16x1xf32>
    %cst_108 = arith.constant 3.200000e+01 : f32
    %176 = vector.broadcast %cst_108 : f32 to vector<16x1xf32>
    %177 = arith.divf %175, %176 : vector<16x1xf32>
    %178 = vector.broadcast %177 : vector<16x1xf32> to vector<16x32xf32>
    %179 = arith.subf %169, %178 : vector<16x32xf32>
    %180 = arith.mulf %179, %179 : vector<16x32xf32>
    %cst_109 = arith.constant dense<0.000000e+00> : vector<16xf32>
    %181 = vector.multi_reduction <add>, %180, %cst_109 [1] : vector<16x32xf32> to vector<16xf32>
    %182 = vector.shape_cast %181 : vector<16xf32> to vector<16x1xf32>
    %cst_110 = arith.constant 3.200000e+01 : f32
    %183 = vector.broadcast %cst_110 : f32 to vector<16x1xf32>
    %184 = arith.divf %182, %183 : vector<16x1xf32>
    %185 = vector.broadcast %177 : vector<16x1xf32> to vector<16x32xf32>
    %186 = arith.subf %169, %185 : vector<16x32xf32>
    %187 = vector.broadcast %171 : vector<1x32xf32> to vector<16x32xf32>
    %188 = arith.mulf %187, %186 : vector<16x32xf32>
    %cst_111 = arith.constant 9.99999974E-6 : f32
    %189 = vector.broadcast %cst_111 : f32 to vector<16x1xf32>
    %190 = arith.addf %184, %189 : vector<16x1xf32>
    %191 = math.sqrt %190 : vector<16x1xf32>
    %192 = vector.broadcast %191 : vector<16x1xf32> to vector<16x32xf32>
    %193 = arith.divf %188, %192 : vector<16x32xf32>
    %194 = vector.broadcast %173 : vector<1x32xf32> to vector<16x32xf32>
    %195 = arith.addf %193, %194 : vector<16x32xf32>
    %196 = arith.truncf %195 : vector<16x32xf32> to vector<16x32xbf16>
    %c0_112 = arith.constant 0 : index
    %c0_113 = arith.constant 0 : index
    %c0_114 = arith.constant 0 : index
    %197 = vector.load %arg14[%c0_112, %c0_113, %c0_114] : memref<2x32x128xbf16, #tpu.memory_space<vmem>>, vector<1x32x128xbf16>
    %198 = vector.shape_cast %197 : vector<1x32x128xbf16> to vector<32x128xbf16>
    %cst_115 = arith.constant dense<0.000000e+00> : vector<16x128xf32>
    %199 = tpu.matmul %196, %198, %cst_115 {dimension_numbers = #tpu.dot_dimension_numbers<[1], [0], [0], [1], [0, 0, 1, 1], [], []>} : vector<16x32xbf16>, vector<32x128xbf16>, vector<16x128xf32> -> vector<16x128xf32>
    %c0_116 = arith.constant 0 : index
    %c0_117 = arith.constant 0 : index
    %c0_118 = arith.constant 0 : index
    %200 = vector.load %arg15[%c0_116, %c0_117, %c0_118] : memref<2x1x128xf32, #tpu.memory_space<vmem>>, vector<1x1x128xf32>
    %201 = vector.shape_cast %200 : vector<1x1x128xf32> to vector<1x128xf32>
    %202 = vector.broadcast %201 : vector<1x128xf32> to vector<16x128xf32>
    %203 = arith.addf %199, %202 : vector<16x128xf32>
    %cst_119 = arith.constant 0.636619746 : f32
    %204 = math.sqrt %cst_119 : f32
    %cst_120 = arith.constant 5.000000e-01 : f32
    %205 = vector.broadcast %cst_120 : f32 to vector<16x128xf32>
    %206 = arith.mulf %205, %203 : vector<16x128xf32>
    %207 = arith.mulf %203, %203 : vector<16x128xf32>
    %208 = arith.mulf %203, %207 : vector<16x128xf32>
    %cst_121 = arith.constant 4.471500e-02 : f32
    %209 = vector.broadcast %cst_121 : f32 to vector<16x128xf32>
    %210 = arith.mulf %209, %208 : vector<16x128xf32>
    %211 = arith.addf %203, %210 : vector<16x128xf32>
    %212 = vector.broadcast %204 : f32 to vector<16x128xf32>
    %213 = arith.mulf %212, %211 : vector<16x128xf32>
    %214 = math.tanh %213 : vector<16x128xf32>
    %cst_122 = arith.constant 1.000000e+00 : f32
    %215 = vector.broadcast %cst_122 : f32 to vector<16x128xf32>
    %216 = arith.addf %215, %214 : vector<16x128xf32>
    %217 = arith.mulf %206, %216 : vector<16x128xf32>
    %218 = arith.truncf %217 : vector<16x128xf32> to vector<16x128xbf16>
    %c0_123 = arith.constant 0 : index
    %c0_124 = arith.constant 0 : index
    %c0_125 = arith.constant 0 : index
    %219 = vector.load %arg16[%c0_123, %c0_124, %c0_125] : memref<2x128x32xbf16, #tpu.memory_space<vmem>>, vector<1x128x32xbf16>
    %220 = vector.shape_cast %219 : vector<1x128x32xbf16> to vector<128x32xbf16>
    %cst_126 = arith.constant dense<0.000000e+00> : vector<16x32xf32>
    %221 = tpu.matmul %218, %220, %cst_126 {dimension_numbers = #tpu.dot_dimension_numbers<[1], [0], [0], [1], [0, 0, 1, 1], [], []>} : vector<16x128xbf16>, vector<128x32xbf16>, vector<16x32xf32> -> vector<16x32xf32>
    %c0_127 = arith.constant 0 : index
    %c0_128 = arith.constant 0 : index
    %c0_129 = arith.constant 0 : index
    %222 = vector.load %arg17[%c0_127, %c0_128, %c0_129] : memref<2x1x32xf32, #tpu.memory_space<vmem>>, vector<1x1x32xf32>
    %223 = vector.shape_cast %222 : vector<1x1x32xf32> to vector<1x32xf32>
    %224 = vector.broadcast %223 : vector<1x32xf32> to vector<16x32xf32>
    %225 = arith.addf %221, %224 : vector<16x32xf32>
    %226 = arith.addf %169, %225 : vector<16x32xf32>
    %c1_130 = arith.constant 1 : index
    %c0_131 = arith.constant 0 : index
    %c0_132 = arith.constant 0 : index
    %227 = vector.load %arg5[%c1_130, %c0_131, %c0_132] : memref<2x1x32xf32, #tpu.memory_space<vmem>>, vector<1x1x32xf32>
    %228 = vector.shape_cast %227 : vector<1x1x32xf32> to vector<1x32xf32>
    %c1_133 = arith.constant 1 : index
    %c0_134 = arith.constant 0 : index
    %c0_135 = arith.constant 0 : index
    %229 = vector.load %arg6[%c1_133, %c0_134, %c0_135] : memref<2x1x32xf32, #tpu.memory_space<vmem>>, vector<1x1x32xf32>
    %230 = vector.shape_cast %229 : vector<1x1x32xf32> to vector<1x32xf32>
    %cst_136 = arith.constant dense<0.000000e+00> : vector<16xf32>
    %231 = vector.multi_reduction <add>, %226, %cst_136 [1] : vector<16x32xf32> to vector<16xf32>
    %232 = vector.shape_cast %231 : vector<16xf32> to vector<16x1xf32>
    %cst_137 = arith.constant 3.200000e+01 : f32
    %233 = vector.broadcast %cst_137 : f32 to vector<16x1xf32>
    %234 = arith.divf %232, %233 : vector<16x1xf32>
    %235 = vector.broadcast %234 : vector<16x1xf32> to vector<16x32xf32>
    %236 = arith.subf %226, %235 : vector<16x32xf32>
    %237 = arith.mulf %236, %236 : vector<16x32xf32>
    %cst_138 = arith.constant dense<0.000000e+00> : vector<16xf32>
    %238 = vector.multi_reduction <add>, %237, %cst_138 [1] : vector<16x32xf32> to vector<16xf32>
    %239 = vector.shape_cast %238 : vector<16xf32> to vector<16x1xf32>
    %cst_139 = arith.constant 3.200000e+01 : f32
    %240 = vector.broadcast %cst_139 : f32 to vector<16x1xf32>
    %241 = arith.divf %239, %240 : vector<16x1xf32>
    %242 = vector.broadcast %234 : vector<16x1xf32> to vector<16x32xf32>
    %243 = arith.subf %226, %242 : vector<16x32xf32>
    %244 = vector.broadcast %228 : vector<1x32xf32> to vector<16x32xf32>
    %245 = arith.mulf %244, %243 : vector<16x32xf32>
    %cst_140 = arith.constant 9.99999974E-6 : f32
    %246 = vector.broadcast %cst_140 : f32 to vector<16x1xf32>
    %247 = arith.addf %241, %246 : vector<16x1xf32>
    %248 = math.sqrt %247 : vector<16x1xf32>
    %249 = vector.broadcast %248 : vector<16x1xf32> to vector<16x32xf32>
    %250 = arith.divf %245, %249 : vector<16x32xf32>
    %251 = vector.broadcast %230 : vector<1x32xf32> to vector<16x32xf32>
    %252 = arith.addf %250, %251 : vector<16x32xf32>
    %253 = arith.truncf %252 : vector<16x32xf32> to vector<16x32xbf16>
    %cst_141 = arith.constant 0.000000e+00 : f32
    %254 = vector.broadcast %cst_141 : f32 to vector<16x32xf32>
    %c4 = arith.constant 4 : index
    %c0_142 = arith.constant 0 : index
    %c0_143 = arith.constant 0 : index
    %255 = vector.load %arg7[%c4, %c0_142, %c0_143] : memref<8x32x8xbf16, #tpu.memory_space<vmem>>, vector<1x32x8xbf16>
    %256 = vector.shape_cast %255 : vector<1x32x8xbf16> to vector<32x8xbf16>
    %cst_144 = arith.constant dense<0.000000e+00> : vector<16x8xf32>
    %257 = tpu.matmul %253, %256, %cst_144 {dimension_numbers = #tpu.dot_dimension_numbers<[1], [0], [0], [1], [0, 0, 1, 1], [], []>} : vector<16x32xbf16>, vector<32x8xbf16>, vector<16x8xf32> -> vector<16x8xf32>
    %c4_145 = arith.constant 4 : index
    %c0_146 = arith.constant 0 : index
    %c0_147 = arith.constant 0 : index
    %258 = vector.load %arg8[%c4_145, %c0_146, %c0_147] : memref<8x32x8xbf16, #tpu.memory_space<vmem>>, vector<1x32x8xbf16>
    %259 = vector.shape_cast %258 : vector<1x32x8xbf16> to vector<32x8xbf16>
    %cst_148 = arith.constant dense<0.000000e+00> : vector<16x8xf32>
    %260 = tpu.matmul %253, %259, %cst_148 {dimension_numbers = #tpu.dot_dimension_numbers<[1], [0], [0], [1], [0, 0, 1, 1], [], []>} : vector<16x32xbf16>, vector<32x8xbf16>, vector<16x8xf32> -> vector<16x8xf32>
    %c4_149 = arith.constant 4 : index
    %c0_150 = arith.constant 0 : index
    %c0_151 = arith.constant 0 : index
    %261 = vector.load %arg9[%c4_149, %c0_150, %c0_151] : memref<8x32x8xbf16, #tpu.memory_space<vmem>>, vector<1x32x8xbf16>
    %262 = vector.shape_cast %261 : vector<1x32x8xbf16> to vector<32x8xbf16>
    %cst_152 = arith.constant dense<0.000000e+00> : vector<16x8xf32>
    %263 = tpu.matmul %253, %262, %cst_152 {dimension_numbers = #tpu.dot_dimension_numbers<[1], [0], [0], [1], [0, 0, 1, 1], [], []>} : vector<16x32xbf16>, vector<32x8xbf16>, vector<16x8xf32> -> vector<16x8xf32>
    %264 = arith.truncf %257 : vector<16x8xf32> to vector<16x8xbf16>
    %265 = arith.truncf %260 : vector<16x8xf32> to vector<16x8xbf16>
    %cst_153 = arith.constant dense<0.000000e+00> : vector<16x16xf32>
    %266 = tpu.matmul %264, %265, %cst_153 {dimension_numbers = #tpu.dot_dimension_numbers<[1], [1], [0], [0], [0, 0, 1, 0], [], []>} : vector<16x8xbf16>, vector<16x8xbf16>, vector<16x16xf32> -> vector<16x16xf32>
    %267 = arith.addf %266, %12 : vector<16x16xf32>
    %cst_154 = arith.constant dense<0xFF800000> : vector<16xf32>
    %268 = vector.multi_reduction <maximumf>, %267, %cst_154 [1] : vector<16x16xf32> to vector<16xf32>
    %269 = vector.shape_cast %268 : vector<16xf32> to vector<16x1xf32>
    %270 = vector.broadcast %269 : vector<16x1xf32> to vector<16x16xf32>
    %271 = arith.subf %267, %270 : vector<16x16xf32>
    %272 = math.exp %271 : vector<16x16xf32>
    %cst_155 = arith.constant dense<0.000000e+00> : vector<16xf32>
    %273 = vector.multi_reduction <add>, %272, %cst_155 [1] : vector<16x16xf32> to vector<16xf32>
    %274 = vector.shape_cast %273 : vector<16xf32> to vector<16x1xf32>
    %275 = tpu.reciprocal %274 {approx = true} : vector<16x1xf32> -> vector<16x1xf32>
    %276 = vector.broadcast %275 : vector<16x1xf32> to vector<16x16xf32>
    %277 = arith.mulf %272, %276 : vector<16x16xf32>
    %278 = arith.truncf %277 : vector<16x16xf32> to vector<16x16xbf16>
    %279 = arith.truncf %263 : vector<16x8xf32> to vector<16x8xbf16>
    %cst_156 = arith.constant dense<0.000000e+00> : vector<16x8xf32>
    %280 = tpu.matmul %278, %279, %cst_156 {dimension_numbers = #tpu.dot_dimension_numbers<[1], [0], [0], [1], [0, 0, 1, 1], [], []>} : vector<16x16xbf16>, vector<16x8xbf16>, vector<16x8xf32> -> vector<16x8xf32>
    %281 = arith.truncf %280 : vector<16x8xf32> to vector<16x8xbf16>
    %c4_157 = arith.constant 4 : index
    %c0_158 = arith.constant 0 : index
    %c0_159 = arith.constant 0 : index
    %282 = vector.load %arg10[%c4_157, %c0_158, %c0_159] : memref<8x8x32xbf16, #tpu.memory_space<vmem>>, vector<1x8x32xbf16>
    %283 = vector.shape_cast %282 : vector<1x8x32xbf16> to vector<8x32xbf16>
    %cst_160 = arith.constant dense<0.000000e+00> : vector<16x32xf32>
    %284 = tpu.matmul %281, %283, %cst_160 {dimension_numbers = #tpu.dot_dimension_numbers<[1], [0], [0], [1], [0, 0, 1, 1], [], []>} : vector<16x8xbf16>, vector<8x32xbf16>, vector<16x32xf32> -> vector<16x32xf32>
    %285 = arith.addf %254, %284 : vector<16x32xf32>
    %c5 = arith.constant 5 : index
    %c0_161 = arith.constant 0 : index
    %c0_162 = arith.constant 0 : index
    %286 = vector.load %arg7[%c5, %c0_161, %c0_162] : memref<8x32x8xbf16, #tpu.memory_space<vmem>>, vector<1x32x8xbf16>
    %287 = vector.shape_cast %286 : vector<1x32x8xbf16> to vector<32x8xbf16>
    %cst_163 = arith.constant dense<0.000000e+00> : vector<16x8xf32>
    %288 = tpu.matmul %253, %287, %cst_163 {dimension_numbers = #tpu.dot_dimension_numbers<[1], [0], [0], [1], [0, 0, 1, 1], [], []>} : vector<16x32xbf16>, vector<32x8xbf16>, vector<16x8xf32> -> vector<16x8xf32>
    %c5_164 = arith.constant 5 : index
    %c0_165 = arith.constant 0 : index
    %c0_166 = arith.constant 0 : index
    %289 = vector.load %arg8[%c5_164, %c0_165, %c0_166] : memref<8x32x8xbf16, #tpu.memory_space<vmem>>, vector<1x32x8xbf16>
    %290 = vector.shape_cast %289 : vector<1x32x8xbf16> to vector<32x8xbf16>
    %cst_167 = arith.constant dense<0.000000e+00> : vector<16x8xf32>
    %291 = tpu.matmul %253, %290, %cst_167 {dimension_numbers = #tpu.dot_dimension_numbers<[1], [0], [0], [1], [0, 0, 1, 1], [], []>} : vector<16x32xbf16>, vector<32x8xbf16>, vector<16x8xf32> -> vector<16x8xf32>
    %c5_168 = arith.constant 5 : index
    %c0_169 = arith.constant 0 : index
    %c0_170 = arith.constant 0 : index
    %292 = vector.load %arg9[%c5_168, %c0_169, %c0_170] : memref<8x32x8xbf16, #tpu.memory_space<vmem>>, vector<1x32x8xbf16>
    %293 = vector.shape_cast %292 : vector<1x32x8xbf16> to vector<32x8xbf16>
    %cst_171 = arith.constant dense<0.000000e+00> : vector<16x8xf32>
    %294 = tpu.matmul %253, %293, %cst_171 {dimension_numbers = #tpu.dot_dimension_numbers<[1], [0], [0], [1], [0, 0, 1, 1], [], []>} : vector<16x32xbf16>, vector<32x8xbf16>, vector<16x8xf32> -> vector<16x8xf32>
    %295 = arith.truncf %288 : vector<16x8xf32> to vector<16x8xbf16>
    %296 = arith.truncf %291 : vector<16x8xf32> to vector<16x8xbf16>
    %cst_172 = arith.constant dense<0.000000e+00> : vector<16x16xf32>
    %297 = tpu.matmul %295, %296, %cst_172 {dimension_numbers = #tpu.dot_dimension_numbers<[1], [1], [0], [0], [0, 0, 1, 0], [], []>} : vector<16x8xbf16>, vector<16x8xbf16>, vector<16x16xf32> -> vector<16x16xf32>
    %298 = arith.addf %297, %12 : vector<16x16xf32>
    %cst_173 = arith.constant dense<0xFF800000> : vector<16xf32>
    %299 = vector.multi_reduction <maximumf>, %298, %cst_173 [1] : vector<16x16xf32> to vector<16xf32>
    %300 = vector.shape_cast %299 : vector<16xf32> to vector<16x1xf32>
    %301 = vector.broadcast %300 : vector<16x1xf32> to vector<16x16xf32>
    %302 = arith.subf %298, %301 : vector<16x16xf32>
    %303 = math.exp %302 : vector<16x16xf32>
    %cst_174 = arith.constant dense<0.000000e+00> : vector<16xf32>
    %304 = vector.multi_reduction <add>, %303, %cst_174 [1] : vector<16x16xf32> to vector<16xf32>
    %305 = vector.shape_cast %304 : vector<16xf32> to vector<16x1xf32>
    %306 = tpu.reciprocal %305 {approx = true} : vector<16x1xf32> -> vector<16x1xf32>
    %307 = vector.broadcast %306 : vector<16x1xf32> to vector<16x16xf32>
    %308 = arith.mulf %303, %307 : vector<16x16xf32>
    %309 = arith.truncf %308 : vector<16x16xf32> to vector<16x16xbf16>
    %310 = arith.truncf %294 : vector<16x8xf32> to vector<16x8xbf16>
    %cst_175 = arith.constant dense<0.000000e+00> : vector<16x8xf32>
    %311 = tpu.matmul %309, %310, %cst_175 {dimension_numbers = #tpu.dot_dimension_numbers<[1], [0], [0], [1], [0, 0, 1, 1], [], []>} : vector<16x16xbf16>, vector<16x8xbf16>, vector<16x8xf32> -> vector<16x8xf32>
    %312 = arith.truncf %311 : vector<16x8xf32> to vector<16x8xbf16>
    %c5_176 = arith.constant 5 : index
    %c0_177 = arith.constant 0 : index
    %c0_178 = arith.constant 0 : index
    %313 = vector.load %arg10[%c5_176, %c0_177, %c0_178] : memref<8x8x32xbf16, #tpu.memory_space<vmem>>, vector<1x8x32xbf16>
    %314 = vector.shape_cast %313 : vector<1x8x32xbf16> to vector<8x32xbf16>
    %cst_179 = arith.constant dense<0.000000e+00> : vector<16x32xf32>
    %315 = tpu.matmul %312, %314, %cst_179 {dimension_numbers = #tpu.dot_dimension_numbers<[1], [0], [0], [1], [0, 0, 1, 1], [], []>} : vector<16x8xbf16>, vector<8x32xbf16>, vector<16x32xf32> -> vector<16x32xf32>
    %316 = arith.addf %285, %315 : vector<16x32xf32>
    %c6 = arith.constant 6 : index
    %c0_180 = arith.constant 0 : index
    %c0_181 = arith.constant 0 : index
    %317 = vector.load %arg7[%c6, %c0_180, %c0_181] : memref<8x32x8xbf16, #tpu.memory_space<vmem>>, vector<1x32x8xbf16>
    %318 = vector.shape_cast %317 : vector<1x32x8xbf16> to vector<32x8xbf16>
    %cst_182 = arith.constant dense<0.000000e+00> : vector<16x8xf32>
    %319 = tpu.matmul %253, %318, %cst_182 {dimension_numbers = #tpu.dot_dimension_numbers<[1], [0], [0], [1], [0, 0, 1, 1], [], []>} : vector<16x32xbf16>, vector<32x8xbf16>, vector<16x8xf32> -> vector<16x8xf32>
    %c6_183 = arith.constant 6 : index
    %c0_184 = arith.constant 0 : index
    %c0_185 = arith.constant 0 : index
    %320 = vector.load %arg8[%c6_183, %c0_184, %c0_185] : memref<8x32x8xbf16, #tpu.memory_space<vmem>>, vector<1x32x8xbf16>
    %321 = vector.shape_cast %320 : vector<1x32x8xbf16> to vector<32x8xbf16>
    %cst_186 = arith.constant dense<0.000000e+00> : vector<16x8xf32>
    %322 = tpu.matmul %253, %321, %cst_186 {dimension_numbers = #tpu.dot_dimension_numbers<[1], [0], [0], [1], [0, 0, 1, 1], [], []>} : vector<16x32xbf16>, vector<32x8xbf16>, vector<16x8xf32> -> vector<16x8xf32>
    %c6_187 = arith.constant 6 : index
    %c0_188 = arith.constant 0 : index
    %c0_189 = arith.constant 0 : index
    %323 = vector.load %arg9[%c6_187, %c0_188, %c0_189] : memref<8x32x8xbf16, #tpu.memory_space<vmem>>, vector<1x32x8xbf16>
    %324 = vector.shape_cast %323 : vector<1x32x8xbf16> to vector<32x8xbf16>
    %cst_190 = arith.constant dense<0.000000e+00> : vector<16x8xf32>
    %325 = tpu.matmul %253, %324, %cst_190 {dimension_numbers = #tpu.dot_dimension_numbers<[1], [0], [0], [1], [0, 0, 1, 1], [], []>} : vector<16x32xbf16>, vector<32x8xbf16>, vector<16x8xf32> -> vector<16x8xf32>
    %326 = arith.truncf %319 : vector<16x8xf32> to vector<16x8xbf16>
    %327 = arith.truncf %322 : vector<16x8xf32> to vector<16x8xbf16>
    %cst_191 = arith.constant dense<0.000000e+00> : vector<16x16xf32>
    %328 = tpu.matmul %326, %327, %cst_191 {dimension_numbers = #tpu.dot_dimension_numbers<[1], [1], [0], [0], [0, 0, 1, 0], [], []>} : vector<16x8xbf16>, vector<16x8xbf16>, vector<16x16xf32> -> vector<16x16xf32>
    %329 = arith.addf %328, %12 : vector<16x16xf32>
    %cst_192 = arith.constant dense<0xFF800000> : vector<16xf32>
    %330 = vector.multi_reduction <maximumf>, %329, %cst_192 [1] : vector<16x16xf32> to vector<16xf32>
    %331 = vector.shape_cast %330 : vector<16xf32> to vector<16x1xf32>
    %332 = vector.broadcast %331 : vector<16x1xf32> to vector<16x16xf32>
    %333 = arith.subf %329, %332 : vector<16x16xf32>
    %334 = math.exp %333 : vector<16x16xf32>
    %cst_193 = arith.constant dense<0.000000e+00> : vector<16xf32>
    %335 = vector.multi_reduction <add>, %334, %cst_193 [1] : vector<16x16xf32> to vector<16xf32>
    %336 = vector.shape_cast %335 : vector<16xf32> to vector<16x1xf32>
    %337 = tpu.reciprocal %336 {approx = true} : vector<16x1xf32> -> vector<16x1xf32>
    %338 = vector.broadcast %337 : vector<16x1xf32> to vector<16x16xf32>
    %339 = arith.mulf %334, %338 : vector<16x16xf32>
    %340 = arith.truncf %339 : vector<16x16xf32> to vector<16x16xbf16>
    %341 = arith.truncf %325 : vector<16x8xf32> to vector<16x8xbf16>
    %cst_194 = arith.constant dense<0.000000e+00> : vector<16x8xf32>
    %342 = tpu.matmul %340, %341, %cst_194 {dimension_numbers = #tpu.dot_dimension_numbers<[1], [0], [0], [1], [0, 0, 1, 1], [], []>} : vector<16x16xbf16>, vector<16x8xbf16>, vector<16x8xf32> -> vector<16x8xf32>
    %343 = arith.truncf %342 : vector<16x8xf32> to vector<16x8xbf16>
    %c6_195 = arith.constant 6 : index
    %c0_196 = arith.constant 0 : index
    %c0_197 = arith.constant 0 : index
    %344 = vector.load %arg10[%c6_195, %c0_196, %c0_197] : memref<8x8x32xbf16, #tpu.memory_space<vmem>>, vector<1x8x32xbf16>
    %345 = vector.shape_cast %344 : vector<1x8x32xbf16> to vector<8x32xbf16>
    %cst_198 = arith.constant dense<0.000000e+00> : vector<16x32xf32>
    %346 = tpu.matmul %343, %345, %cst_198 {dimension_numbers = #tpu.dot_dimension_numbers<[1], [0], [0], [1], [0, 0, 1, 1], [], []>} : vector<16x8xbf16>, vector<8x32xbf16>, vector<16x32xf32> -> vector<16x32xf32>
    %347 = arith.addf %316, %346 : vector<16x32xf32>
    %c7 = arith.constant 7 : index
    %c0_199 = arith.constant 0 : index
    %c0_200 = arith.constant 0 : index
    %348 = vector.load %arg7[%c7, %c0_199, %c0_200] : memref<8x32x8xbf16, #tpu.memory_space<vmem>>, vector<1x32x8xbf16>
    %349 = vector.shape_cast %348 : vector<1x32x8xbf16> to vector<32x8xbf16>
    %cst_201 = arith.constant dense<0.000000e+00> : vector<16x8xf32>
    %350 = tpu.matmul %253, %349, %cst_201 {dimension_numbers = #tpu.dot_dimension_numbers<[1], [0], [0], [1], [0, 0, 1, 1], [], []>} : vector<16x32xbf16>, vector<32x8xbf16>, vector<16x8xf32> -> vector<16x8xf32>
    %c7_202 = arith.constant 7 : index
    %c0_203 = arith.constant 0 : index
    %c0_204 = arith.constant 0 : index
    %351 = vector.load %arg8[%c7_202, %c0_203, %c0_204] : memref<8x32x8xbf16, #tpu.memory_space<vmem>>, vector<1x32x8xbf16>
    %352 = vector.shape_cast %351 : vector<1x32x8xbf16> to vector<32x8xbf16>
    %cst_205 = arith.constant dense<0.000000e+00> : vector<16x8xf32>
    %353 = tpu.matmul %253, %352, %cst_205 {dimension_numbers = #tpu.dot_dimension_numbers<[1], [0], [0], [1], [0, 0, 1, 1], [], []>} : vector<16x32xbf16>, vector<32x8xbf16>, vector<16x8xf32> -> vector<16x8xf32>
    %c7_206 = arith.constant 7 : index
    %c0_207 = arith.constant 0 : index
    %c0_208 = arith.constant 0 : index
    %354 = vector.load %arg9[%c7_206, %c0_207, %c0_208] : memref<8x32x8xbf16, #tpu.memory_space<vmem>>, vector<1x32x8xbf16>
    %355 = vector.shape_cast %354 : vector<1x32x8xbf16> to vector<32x8xbf16>
    %cst_209 = arith.constant dense<0.000000e+00> : vector<16x8xf32>
    %356 = tpu.matmul %253, %355, %cst_209 {dimension_numbers = #tpu.dot_dimension_numbers<[1], [0], [0], [1], [0, 0, 1, 1], [], []>} : vector<16x32xbf16>, vector<32x8xbf16>, vector<16x8xf32> -> vector<16x8xf32>
    %357 = arith.truncf %350 : vector<16x8xf32> to vector<16x8xbf16>
    %358 = arith.truncf %353 : vector<16x8xf32> to vector<16x8xbf16>
    %cst_210 = arith.constant dense<0.000000e+00> : vector<16x16xf32>
    %359 = tpu.matmul %357, %358, %cst_210 {dimension_numbers = #tpu.dot_dimension_numbers<[1], [1], [0], [0], [0, 0, 1, 0], [], []>} : vector<16x8xbf16>, vector<16x8xbf16>, vector<16x16xf32> -> vector<16x16xf32>
    %360 = arith.addf %359, %12 : vector<16x16xf32>
    %cst_211 = arith.constant dense<0xFF800000> : vector<16xf32>
    %361 = vector.multi_reduction <maximumf>, %360, %cst_211 [1] : vector<16x16xf32> to vector<16xf32>
    %362 = vector.shape_cast %361 : vector<16xf32> to vector<16x1xf32>
    %363 = vector.broadcast %362 : vector<16x1xf32> to vector<16x16xf32>
    %364 = arith.subf %360, %363 : vector<16x16xf32>
    %365 = math.exp %364 : vector<16x16xf32>
    %cst_212 = arith.constant dense<0.000000e+00> : vector<16xf32>
    %366 = vector.multi_reduction <add>, %365, %cst_212 [1] : vector<16x16xf32> to vector<16xf32>
    %367 = vector.shape_cast %366 : vector<16xf32> to vector<16x1xf32>
    %368 = tpu.reciprocal %367 {approx = true} : vector<16x1xf32> -> vector<16x1xf32>
    %369 = vector.broadcast %368 : vector<16x1xf32> to vector<16x16xf32>
    %370 = arith.mulf %365, %369 : vector<16x16xf32>
    %371 = arith.truncf %370 : vector<16x16xf32> to vector<16x16xbf16>
    %372 = arith.truncf %356 : vector<16x8xf32> to vector<16x8xbf16>
    %cst_213 = arith.constant dense<0.000000e+00> : vector<16x8xf32>
    %373 = tpu.matmul %371, %372, %cst_213 {dimension_numbers = #tpu.dot_dimension_numbers<[1], [0], [0], [1], [0, 0, 1, 1], [], []>} : vector<16x16xbf16>, vector<16x8xbf16>, vector<16x8xf32> -> vector<16x8xf32>
    %374 = arith.truncf %373 : vector<16x8xf32> to vector<16x8xbf16>
    %c7_214 = arith.constant 7 : index
    %c0_215 = arith.constant 0 : index
    %c0_216 = arith.constant 0 : index
    %375 = vector.load %arg10[%c7_214, %c0_215, %c0_216] : memref<8x8x32xbf16, #tpu.memory_space<vmem>>, vector<1x8x32xbf16>
    %376 = vector.shape_cast %375 : vector<1x8x32xbf16> to vector<8x32xbf16>
    %cst_217 = arith.constant dense<0.000000e+00> : vector<16x32xf32>
    %377 = tpu.matmul %374, %376, %cst_217 {dimension_numbers = #tpu.dot_dimension_numbers<[1], [0], [0], [1], [0, 0, 1, 1], [], []>} : vector<16x8xbf16>, vector<8x32xbf16>, vector<16x32xf32> -> vector<16x32xf32>
    %378 = arith.addf %347, %377 : vector<16x32xf32>
    %379 = arith.addf %226, %378 : vector<16x32xf32>
    %c1_218 = arith.constant 1 : index
    %c0_219 = arith.constant 0 : index
    %c0_220 = arith.constant 0 : index
    %380 = vector.load %arg11[%c1_218, %c0_219, %c0_220] : memref<2x1x32xf32, #tpu.memory_space<vmem>>, vector<1x1x32xf32>
    %381 = vector.shape_cast %380 : vector<1x1x32xf32> to vector<1x32xf32>
    %382 = vector.broadcast %381 : vector<1x32xf32> to vector<16x32xf32>
    %383 = arith.addf %379, %382 : vector<16x32xf32>
    %c1_221 = arith.constant 1 : index
    %c0_222 = arith.constant 0 : index
    %c0_223 = arith.constant 0 : index
    %384 = vector.load %arg12[%c1_221, %c0_222, %c0_223] : memref<2x1x32xf32, #tpu.memory_space<vmem>>, vector<1x1x32xf32>
    %385 = vector.shape_cast %384 : vector<1x1x32xf32> to vector<1x32xf32>
    %c1_224 = arith.constant 1 : index
    %c0_225 = arith.constant 0 : index
    %c0_226 = arith.constant 0 : index
    %386 = vector.load %arg13[%c1_224, %c0_225, %c0_226] : memref<2x1x32xf32, #tpu.memory_space<vmem>>, vector<1x1x32xf32>
    %387 = vector.shape_cast %386 : vector<1x1x32xf32> to vector<1x32xf32>
    %cst_227 = arith.constant dense<0.000000e+00> : vector<16xf32>
    %388 = vector.multi_reduction <add>, %383, %cst_227 [1] : vector<16x32xf32> to vector<16xf32>
    %389 = vector.shape_cast %388 : vector<16xf32> to vector<16x1xf32>
    %cst_228 = arith.constant 3.200000e+01 : f32
    %390 = vector.broadcast %cst_228 : f32 to vector<16x1xf32>
    %391 = arith.divf %389, %390 : vector<16x1xf32>
    %392 = vector.broadcast %391 : vector<16x1xf32> to vector<16x32xf32>
    %393 = arith.subf %383, %392 : vector<16x32xf32>
    %394 = arith.mulf %393, %393 : vector<16x32xf32>
    %cst_229 = arith.constant dense<0.000000e+00> : vector<16xf32>
    %395 = vector.multi_reduction <add>, %394, %cst_229 [1] : vector<16x32xf32> to vector<16xf32>
    %396 = vector.shape_cast %395 : vector<16xf32> to vector<16x1xf32>
    %cst_230 = arith.constant 3.200000e+01 : f32
    %397 = vector.broadcast %cst_230 : f32 to vector<16x1xf32>
    %398 = arith.divf %396, %397 : vector<16x1xf32>
    %399 = vector.broadcast %391 : vector<16x1xf32> to vector<16x32xf32>
    %400 = arith.subf %383, %399 : vector<16x32xf32>
    %401 = vector.broadcast %385 : vector<1x32xf32> to vector<16x32xf32>
    %402 = arith.mulf %401, %400 : vector<16x32xf32>
    %cst_231 = arith.constant 9.99999974E-6 : f32
    %403 = vector.broadcast %cst_231 : f32 to vector<16x1xf32>
    %404 = arith.addf %398, %403 : vector<16x1xf32>
    %405 = math.sqrt %404 : vector<16x1xf32>
    %406 = vector.broadcast %405 : vector<16x1xf32> to vector<16x32xf32>
    %407 = arith.divf %402, %406 : vector<16x32xf32>
    %408 = vector.broadcast %387 : vector<1x32xf32> to vector<16x32xf32>
    %409 = arith.addf %407, %408 : vector<16x32xf32>
    %410 = arith.truncf %409 : vector<16x32xf32> to vector<16x32xbf16>
    %c1_232 = arith.constant 1 : index
    %c0_233 = arith.constant 0 : index
    %c0_234 = arith.constant 0 : index
    %411 = vector.load %arg14[%c1_232, %c0_233, %c0_234] : memref<2x32x128xbf16, #tpu.memory_space<vmem>>, vector<1x32x128xbf16>
    %412 = vector.shape_cast %411 : vector<1x32x128xbf16> to vector<32x128xbf16>
    %cst_235 = arith.constant dense<0.000000e+00> : vector<16x128xf32>
    %413 = tpu.matmul %410, %412, %cst_235 {dimension_numbers = #tpu.dot_dimension_numbers<[1], [0], [0], [1], [0, 0, 1, 1], [], []>} : vector<16x32xbf16>, vector<32x128xbf16>, vector<16x128xf32> -> vector<16x128xf32>
    %c1_236 = arith.constant 1 : index
    %c0_237 = arith.constant 0 : index
    %c0_238 = arith.constant 0 : index
    %414 = vector.load %arg15[%c1_236, %c0_237, %c0_238] : memref<2x1x128xf32, #tpu.memory_space<vmem>>, vector<1x1x128xf32>
    %415 = vector.shape_cast %414 : vector<1x1x128xf32> to vector<1x128xf32>
    %416 = vector.broadcast %415 : vector<1x128xf32> to vector<16x128xf32>
    %417 = arith.addf %413, %416 : vector<16x128xf32>
    %cst_239 = arith.constant 0.636619746 : f32
    %418 = math.sqrt %cst_239 : f32
    %cst_240 = arith.constant 5.000000e-01 : f32
    %419 = vector.broadcast %cst_240 : f32 to vector<16x128xf32>
    %420 = arith.mulf %419, %417 : vector<16x128xf32>
    %421 = arith.mulf %417, %417 : vector<16x128xf32>
    %422 = arith.mulf %417, %421 : vector<16x128xf32>
    %cst_241 = arith.constant 4.471500e-02 : f32
    %423 = vector.broadcast %cst_241 : f32 to vector<16x128xf32>
    %424 = arith.mulf %423, %422 : vector<16x128xf32>
    %425 = arith.addf %417, %424 : vector<16x128xf32>
    %426 = vector.broadcast %418 : f32 to vector<16x128xf32>
    %427 = arith.mulf %426, %425 : vector<16x128xf32>
    %428 = math.tanh %427 : vector<16x128xf32>
    %cst_242 = arith.constant 1.000000e+00 : f32
    %429 = vector.broadcast %cst_242 : f32 to vector<16x128xf32>
    %430 = arith.addf %429, %428 : vector<16x128xf32>
    %431 = arith.mulf %420, %430 : vector<16x128xf32>
    %432 = arith.truncf %431 : vector<16x128xf32> to vector<16x128xbf16>
    %c1_243 = arith.constant 1 : index
    %c0_244 = arith.constant 0 : index
    %c0_245 = arith.constant 0 : index
    %433 = vector.load %arg16[%c1_243, %c0_244, %c0_245] : memref<2x128x32xbf16, #tpu.memory_space<vmem>>, vector<1x128x32xbf16>
    %434 = vector.shape_cast %433 : vector<1x128x32xbf16> to vector<128x32xbf16>
    %cst_246 = arith.constant dense<0.000000e+00> : vector<16x32xf32>
    %435 = tpu.matmul %432, %434, %cst_246 {dimension_numbers = #tpu.dot_dimension_numbers<[1], [0], [0], [1], [0, 0, 1, 1], [], []>} : vector<16x128xbf16>, vector<128x32xbf16>, vector<16x32xf32> -> vector<16x32xf32>
    %c1_247 = arith.constant 1 : index
    %c0_248 = arith.constant 0 : index
    %c0_249 = arith.constant 0 : index
    %436 = vector.load %arg17[%c1_247, %c0_248, %c0_249] : memref<2x1x32xf32, #tpu.memory_space<vmem>>, vector<1x1x32xf32>
    %437 = vector.shape_cast %436 : vector<1x1x32xf32> to vector<1x32xf32>
    %438 = vector.broadcast %437 : vector<1x32xf32> to vector<16x32xf32>
    %439 = arith.addf %435, %438 : vector<16x32xf32>
    %440 = arith.addf %383, %439 : vector<16x32xf32>
    %c0_250 = arith.constant 0 : index
    %c0_251 = arith.constant 0 : index
    %441 = vector.load %arg18[%c0_250, %c0_251] : memref<1x32xf32, #tpu.memory_space<vmem>>, vector<1x32xf32>
    %c0_252 = arith.constant 0 : index
    %c0_253 = arith.constant 0 : index
    %442 = vector.load %arg19[%c0_252, %c0_253] : memref<1x32xf32, #tpu.memory_space<vmem>>, vector<1x32xf32>
    %cst_254 = arith.constant dense<0.000000e+00> : vector<16xf32>
    %443 = vector.multi_reduction <add>, %440, %cst_254 [1] : vector<16x32xf32> to vector<16xf32>
    %444 = vector.shape_cast %443 : vector<16xf32> to vector<16x1xf32>
    %cst_255 = arith.constant 3.200000e+01 : f32
    %445 = vector.broadcast %cst_255 : f32 to vector<16x1xf32>
    %446 = arith.divf %444, %445 : vector<16x1xf32>
    %447 = vector.broadcast %446 : vector<16x1xf32> to vector<16x32xf32>
    %448 = arith.subf %440, %447 : vector<16x32xf32>
    %449 = arith.mulf %448, %448 : vector<16x32xf32>
    %cst_256 = arith.constant dense<0.000000e+00> : vector<16xf32>
    %450 = vector.multi_reduction <add>, %449, %cst_256 [1] : vector<16x32xf32> to vector<16xf32>
    %451 = vector.shape_cast %450 : vector<16xf32> to vector<16x1xf32>
    %cst_257 = arith.constant 3.200000e+01 : f32
    %452 = vector.broadcast %cst_257 : f32 to vector<16x1xf32>
    %453 = arith.divf %451, %452 : vector<16x1xf32>
    %454 = vector.broadcast %446 : vector<16x1xf32> to vector<16x32xf32>
    %455 = arith.subf %440, %454 : vector<16x32xf32>
    %456 = vector.broadcast %441 : vector<1x32xf32> to vector<16x32xf32>
    %457 = arith.mulf %456, %455 : vector<16x32xf32>
    %cst_258 = arith.constant 9.99999974E-6 : f32
    %458 = vector.broadcast %cst_258 : f32 to vector<16x1xf32>
    %459 = arith.addf %453, %458 : vector<16x1xf32>
    %460 = math.sqrt %459 : vector<16x1xf32>
    %461 = vector.broadcast %460 : vector<16x1xf32> to vector<16x32xf32>
    %462 = arith.divf %457, %461 : vector<16x32xf32>
    %463 = vector.broadcast %442 : vector<1x32xf32> to vector<16x32xf32>
    %464 = arith.addf %462, %463 : vector<16x32xf32>
    %465 = arith.truncf %464 : vector<16x32xf32> to vector<16x32xbf16>
    %c0_259 = arith.constant 0 : index
    %c0_260 = arith.constant 0 : index
    %466 = vector.load %arg20[%c0_259, %c0_260] : memref<32x256xbf16, #tpu.memory_space<vmem>>, vector<32x256xbf16>
    %cst_261 = arith.constant dense<0.000000e+00> : vector<16x256xf32>
    %467 = tpu.matmul %465, %466, %cst_261 {dimension_numbers = #tpu.dot_dimension_numbers<[1], [0], [0], [1], [0, 0, 1, 1], [], []>} : vector<16x32xbf16>, vector<32x256xbf16>, vector<16x256xf32> -> vector<16x256xf32>
    %c0_262 = arith.constant 0 : index
    %c0_263 = arith.constant 0 : index
    %468 = vector.load %arg21[%c0_262, %c0_263] : memref<16x256xf32, #tpu.memory_space<vmem>>, vector<16x256xf32>
    tpu.vector_store %arg21[%c0_262, %c0_263], %467 {strides = array<i32>} : memref<16x256xf32, #tpu.memory_space<vmem>>, vector<16x256xf32>,
    return
  }
  func.func @transform_0(%arg0: i32) -> (i32, i32) {
    %c0_i32 = arith.constant 0 : i32
    %c0_i32_0 = arith.constant 0 : i32
    %c0_i32_1 = arith.constant 0 : i32
    return %c0_i32, %c0_i32_0 : i32, i32
  }
  func.func @transform_1(%arg0: i32) -> (i32, i32) {
    %c0_i32 = arith.constant 0 : i32
    %c0_i32_0 = arith.constant 0 : i32
    %c0_i32_1 = arith.constant 0 : i32
    return %c0_i32, %c0_i32_0 : i32, i32
  }
  func.func @transform_2(%arg0: i32) -> (i32, i32) {
    %c0_i32 = arith.constant 0 : i32
    %c0_i32_0 = arith.constant 0 : i32
    %c0_i32_1 = arith.constant 0 : i32
    return %c0_i32, %c0_i32_0 : i32, i32
  }
  func.func @transform_3(%arg0: i32) -> (i32, i32) {
    %c0_i32 = arith.constant 0 : i32
    %c0_i32_0 = arith.constant 0 : i32
    %c0_i32_1 = arith.constant 0 : i32
    return %c0_i32, %c0_i32_0 : i32, i32
  }
  func.func @transform_4(%arg0: i32) -> (i32, i32, i32) {
    %c0_i32 = arith.constant 0 : i32
    %c0_i32_0 = arith.constant 0 : i32
    %c0_i32_1 = arith.constant 0 : i32
    %c0_i32_2 = arith.constant 0 : i32
    return %c0_i32, %c0_i32_0, %c0_i32_1 : i32, i32, i32
  }
  func.func @transform_5(%arg0: i32) -> (i32, i32, i32) {
    %c0_i32 = arith.constant 0 : i32
    %c0_i32_0 = arith.constant 0 : i32
    %c0_i32_1 = arith.constant 0 : i32
    %c0_i32_2 = arith.constant 0 : i32
    return %c0_i32, %c0_i32_0, %c0_i32_1 : i32, i32, i32
  }
  func.func @transform_6(%arg0: i32) -> (i32, i32, i32) {
    %c0_i32 = arith.constant 0 : i32
    %c0_i32_0 = arith.constant 0 : i32
    %c0_i32_1 = arith.constant 0 : i32
    %c0_i32_2 = arith.constant 0 : i32
    return %c0_i32, %c0_i32_0, %c0_i32_1 : i32, i32, i32
  }
  func.func @transform_7(%arg0: i32) -> (i32, i32, i32) {
    %c0_i32 = arith.constant 0 : i32
    %c0_i32_0 = arith.constant 0 : i32
    %c0_i32_1 = arith.constant 0 : i32
    %c0_i32_2 = arith.constant 0 : i32
    return %c0_i32, %c0_i32_0, %c0_i32_1 : i32, i32, i32
  }
  func.func @transform_8(%arg0: i32) -> (i32, i32, i32) {
    %c0_i32 = arith.constant 0 : i32
    %c0_i32_0 = arith.constant 0 : i32
    %c0_i32_1 = arith.constant 0 : i32
    %c0_i32_2 = arith.constant 0 : i32
    return %c0_i32, %c0_i32_0, %c0_i32_1 : i32, i32, i32
  }
  func.func @transform_9(%arg0: i32) -> (i32, i32, i32) {
    %c0_i32 = arith.constant 0 : i32
    %c0_i32_0 = arith.constant 0 : i32
    %c0_i32_1 = arith.constant 0 : i32
    %c0_i32_2 = arith.constant 0 : i32
    return %c0_i32, %c0_i32_0, %c0_i32_1 : i32, i32, i32
  }
  func.func @transform_10(%arg0: i32) -> (i32, i32, i32) {
    %c0_i32 = arith.constant 0 : i32
    %c0_i32_0 = arith.constant 0 : i32
    %c0_i32_1 = arith.constant 0 : i32
    %c0_i32_2 = arith.constant 0 : i32
    return %c0_i32, %c0_i32_0, %c0_i32_1 : i32, i32, i32
  }
  func.func @transform_11(%arg0: i32) -> (i32, i32, i32) {
    %c0_i32 = arith.constant 0 : i32
    %c0_i32_0 = arith.constant 0 : i32
    %c0_i32_1 = arith.constant 0 : i32
    %c0_i32_2 = arith.constant 0 : i32
    return %c0_i32, %c0_i32_0, %c0_i32_1 : i32, i32, i32
  }
  func.func @transform_12(%arg0: i32) -> (i32, i32, i32) {
    %c0_i32 = arith.constant 0 : i32
    %c0_i32_0 = arith.constant 0 : i32
    %c0_i32_1 = arith.constant 0 : i32
    %c0_i32_2 = arith.constant 0 : i32
    return %c0_i32, %c0_i32_0, %c0_i32_1 : i32, i32, i32
  }
  func.func @transform_13(%arg0: i32) -> (i32, i32, i32) {
    %c0_i32 = arith.constant 0 : i32
    %c0_i32_0 = arith.constant 0 : i32
    %c0_i32_1 = arith.constant 0 : i32
    %c0_i32_2 = arith.constant 0 : i32
    return %c0_i32, %c0_i32_0, %c0_i32_1 : i32, i32, i32
  }
  func.func @transform_14(%arg0: i32) -> (i32, i32, i32) {
    %c0_i32 = arith.constant 0 : i32
    %c0_i32_0 = arith.constant 0 : i32
    %c0_i32_1 = arith.constant 0 : i32
    %c0_i32_2 = arith.constant 0 : i32
    return %c0_i32, %c0_i32_0, %c0_i32_1 : i32, i32, i32
  }
  func.func @transform_15(%arg0: i32) -> (i32, i32, i32) {
    %c0_i32 = arith.constant 0 : i32
    %c0_i32_0 = arith.constant 0 : i32
    %c0_i32_1 = arith.constant 0 : i32
    %c0_i32_2 = arith.constant 0 : i32
    return %c0_i32, %c0_i32_0, %c0_i32_1 : i32, i32, i32
  }
  func.func @transform_16(%arg0: i32) -> (i32, i32, i32) {
    %c0_i32 = arith.constant 0 : i32
    %c0_i32_0 = arith.constant 0 : i32
    %c0_i32_1 = arith.constant 0 : i32
    %c0_i32_2 = arith.constant 0 : i32
    return %c0_i32, %c0_i32_0, %c0_i32_1 : i32, i32, i32
  }
  func.func @transform_17(%arg0: i32) -> (i32, i32) {
    %c0_i32 = arith.constant 0 : i32
    %c0_i32_0 = arith.constant 0 : i32
    %c0_i32_1 = arith.constant 0 : i32
    return %c0_i32, %c0_i32_0 : i32, i32
  }
  func.func @transform_18(%arg0: i32) -> (i32, i32) {
    %c0_i32 = arith.constant 0 : i32
    %c0_i32_0 = arith.constant 0 : i32
    %c0_i32_1 = arith.constant 0 : i32
    return %c0_i32, %c0_i32_0 : i32, i32
  }
  func.func @transform_19(%arg0: i32) -> (i32, i32) {
    %c0_i32 = arith.constant 0 : i32
    %c0_i32_0 = arith.constant 0 : i32
    %c0_i32_1 = arith.constant 0 : i32
    return %c0_i32, %c0_i32_0 : i32, i32
  }
  func.func @transform_20(%arg0: i32) -> (i32, i32) {
    %c0_i32 = arith.constant 0 : i32
    %c0_i32_0 = arith.constant 0 : i32
    %c0_i32_1 = arith.constant 0 : i32
    return %c0_i32, %c0_i32_0 : i32, i32
  }
}

</mosaic_0001>

<bundles_post_ra>
// kernel: tpu_custom_call.1
= control target key start
LH: loop header
LB: loop body
LE: loop exit
PB: predicated region body
PF: predicated region fallthrough
CT: control target
= control target key end

     0   :  { %s5804_s0 = inlined_call_operand.vmem [shape: s32[16,1], index: 0, kind: input, shape index: {}]   ;;  %s5805_s1 = inlined_call_operand.vmem [shape: f32[256,32], index: 1, kind: input, shape index: {}]   ;;  %s5806_s2 = inlined_call_operand.vmem [shape: f32[8,32], index: 2, kind: input, shape index: {}]   ;;  %s5807_s3 = inlined_call_operand.vmem [shape: f32[16,16], index: 3, kind: input, shape index: {}]   ;;  %s5808_s4 = inlined_call_operand.vmem [shape: f32[2,1,32], index: 4, kind: input, shape index: {}]   ;;  %s5809_s5 = inlined_call_operand.vmem [shape: f32[2,1,32], index: 5, kind: input, shape index: {}]   ;;  %s5810_s6 = inlined_call_operand.vmem [shape: bf16[8,32,8], index: 6, kind: input, shape index: {}]   ;;  %s5811_s7 = inlined_call_operand.vmem [shape: bf16[8,32,8], index: 7, kind: input, shape index: {}]   ;;  %s5812_s8 = inlined_call_operand.vmem [shape: bf16[8,32,8], index: 8, kind: input, shape index: {}]   ;;  %s5813_s9 = inlined_call_operand.vmem [shape: bf16[8,8,32], index: 9, kind: input, shape index: {}]   ;;  %s5814_s10 = inlined_call_operand.vmem [shape: f32[2,1,32], index: 10, kind: input, shape index: {}]   ;;  %s5815_s11 = inlined_call_operand.vmem [shape: f32[2,1,32], index: 11, kind: input, shape index: {}]   ;;  %s5816_s12 = inlined_call_operand.vmem [shape: f32[2,1,32], index: 12, kind: input, shape index: {}]   ;;  %s5817_s13 = inlined_call_operand.vmem [shape: bf16[2,32,128], index: 13, kind: input, shape index: {}]   ;;  %s5818_s14 = inlined_call_operand.vmem [shape: f32[2,1,128], index: 14, kind: input, shape index: {}]   ;;  %s5819_s15 = inlined_call_operand.vmem [shape: bf16[2,128,32], index: 15, kind: input, shape index: {}]   ;;  %s5820_s16 = inlined_call_operand.vmem [shape: f32[2,1,32], index: 16, kind: input, shape index: {}]   ;;  %s5821_s17 = inlined_call_operand.vmem [shape: f32[1,32], index: 17, kind: input, shape index: {}]   ;;  %s5822_s18 = inlined_call_operand.vmem [shape: f32[1,32], index: 18, kind: input, shape index: {}]   ;;  %s5823_s19 = inlined_call_operand.vmem [shape: bf16[32,256], index: 19, kind: input, shape index: {}]   ;;  %s5824_s20 = inlined_call_operand.hbm [shape: f32[16,256], index: 20, kind: output, shape index: {}]  }
   0x1   :  { %5830 = sst [smem:[#allocation5_spill]] %s5804_s0 }
   0x2   :  { %5831 = sst [smem:[#allocation6_spill]] %s5805_s1 }
   0x3   :  { %5832 = sst [smem:[#allocation7_spill]] %s5806_s2 }
   0x4   :  { %5833 = sst [smem:[#allocation8_spill]] %s5807_s3 }
   0x5   :  { %5834 = sst [smem:[#allocation9_spill]] %s5808_s4 }
   0x6   :  { %5835 = sst [smem:[#allocation10_spill]] %s5818_s14 }
   0x7   :  { %s5836_s23 = sld [smem:[#allocation5_spill]]  ;;  %s5837_s14 = sld [smem:[#allocation6_spill]]  ;;  %v4842_v2 = vmov 0  }
   0x8   :  { %4629 = vset.pattern.permute.xlu0 %v4842_v2 }
   0xd   :  { %v67_v0 = vld [vmem:[%s5836_s23] sm:$0xff]  ;;  %v68_v3 = vld [vmem:[%s5836_s23 + $0x8] sm:$0xff]  ;;  %v104_v9 = vld [vmem:[%s5837_s14 + $0x90] sm:$0xff] }
   0xe   :  { %v102_v1 = vld [vmem:[%s5837_s14 + $0x80] sm:$0xff]  ;;  %v103_v4 = vld [vmem:[%s5837_s14 + $0x88] sm:$0xff]  ;;  %73 = vperm.xlu0 %4629, %v67_v0   ;;  %v105_v10 = vld [vmem:[%s5837_s14 + $0x98] sm:$0xff] }
   0xf   :  { %v86_v5 = vld [vmem:[%s5837_s14] sm:$0xff]  ;;  %v87_v6 = vld [vmem:[%s5837_s14 + $0x8] sm:$0xff]  ;;  %v4590_v7 = vpack.c.bf16 %v103_v4, %v102_v1  ;;  %v88_v11 = vld [vmem:[%s5837_s14 + $0x10] sm:$0xff]  ;;  %v4594_v12 = vpack.c.bf16 %v105_v10, %v104_v9 }
  0x10   :  { %v4592_v8 = vpack.c.bf16 %v87_v6, %v86_v5  ;;  %v89_v13 = vld [vmem:[%s5837_s14 + $0x18] sm:$0xff]  ;;  %v106_v14 = vld [vmem:[%s5837_s14 + $0xa0] sm:$0xff]  ;;  %v107_v15 = vld [vmem:[%s5837_s14 + $0xa8] sm:$0xff] }
  0x11   :  { %4591 = vmatprep.subr.bf16.mxu0 %v4590_v7  ;;  %v4596_v16 = vpack.c.bf16 %v89_v13, %v88_v11  ;;  %v4598_v17 = vpack.c.bf16 %v107_v15, %v106_v14  ;;  %v90_v18 = vld [vmem:[%s5837_s14 + $0x20] sm:$0xff]  ;;  %v91_v19 = vld [vmem:[%s5837_s14 + $0x28] sm:$0xff]  ;;  %v108_v20 = vld [vmem:[%s5837_s14 + $0xb0] sm:$0xff] }
  0x12   :  { %4593 = vmatpush3.bf16.msra.mxu0 %v4592_v8  ;;  %76 = vperm.xlu0 %4629, %v68_v3   ;;  %v109_v21 = vld [vmem:[%s5837_s14 + $0xb8] sm:$0xff]  ;;  %v4600_v22 = vpack.c.bf16 %v91_v19, %v90_v18  ;;  %v92_v24 = vld [vmem:[%s5837_s14 + $0x30] sm:$0xff]  ;;  %v110_v26 = vld [vmem:[%s5837_s14 + $0xc0] sm:$0xff] }
  0x13   :  { %4595 = vmatprep.subr.bf16.mxu0 %v4594_v12  ;;  %v4602_v23 = vpack.c.bf16 %v109_v21, %v108_v20  ;;  %v93_v25 = vld [vmem:[%s5837_s14 + $0x38] sm:$0xff]  ;;  %v111_v27 = vld [vmem:[%s5837_s14 + $0xc8] sm:$0xff]  ;;  %v94_v28 = vld [vmem:[%s5837_s14 + $0x40] sm:$0xff] }
  0x14   :  { %v95_v29 = vld [vmem:[%s5837_s14 + $0x48] sm:$0xff]  ;;  %v4604_v30 = vpack.c.bf16 %v93_v25, %v92_v24  ;;  %v112_v31 = vld [vmem:[%s5837_s14 + $0xd0] sm:$0xff]  ;;  %v113_v32 = vld [vmem:[%s5837_s14 + $0xd8] sm:$0xff]  ;;  %v4606_v33 = vpack.c.bf16 %v111_v27, %v110_v26 }
  0x15   :  { %v96_v34 = vld [vmem:[%s5837_s14 + $0x50] sm:$0xff]  ;;  %v97_v35 = vld [vmem:[%s5837_s14 + $0x58] sm:$0xff]  ;;  %v4608_v36 = vpack.c.bf16 %v95_v29, %v94_v28  ;;  %v114_v37 = vld [vmem:[%s5837_s14 + $0xe0] sm:$0xff]  ;;  %v4610_v39 = vpack.c.bf16 %v113_v32, %v112_v31 }
  0x16   :  { %4597 = vmatpush3.bf16.msra.mxu0 %v4596_v16  ;;  %v115_v38 = vld [vmem:[%s5837_s14 + $0xe8] sm:$0xff]  ;;  %v98_v40 = vld [vmem:[%s5837_s14 + $0x60] sm:$0xff]  ;;  %v4612_v42 = vpack.c.bf16 %v97_v35, %v96_v34  ;;  %v116_v43 = vld [vmem:[%s5837_s14 + $0xf0] sm:$0xff] }
  0x17   :  { %4599 = vmatprep.subr.bf16.mxu0 %v4598_v17  ;;  %v99_v41 = vld [vmem:[%s5837_s14 + $0x68] sm:$0xff]  ;;  %v117_v44 = vld [vmem:[%s5837_s14 + $0xf8] sm:$0xff]  ;;  %v4614_v45 = vpack.c.bf16 %v115_v38, %v114_v37  ;;  %v100_v46 = vld [vmem:[%s5837_s14 + $0x70] sm:$0xff] }
  0x18   :  { %v101_v47 = vld [vmem:[%s5837_s14 + $0x78] sm:$0xff]  ;;  %v4616_v48 = vpack.c.bf16 %v99_v41, %v98_v40  ;;  %v4618_v49 = vpack.c.bf16 %v117_v44, %v116_v43 }
  0x19   :  { %v4620_v50 = vpack.c.bf16 %v101_v47, %v100_v46 }
  0x1a   :  { %4601 = vmatpush3.bf16.msra.mxu0 %v4600_v22 }
  0x1b   :  { %4603 = vmatprep.subr.bf16.mxu0 %v4602_v23 }
  0x1e   :  { %4605 = vmatpush3.bf16.msra.mxu0 %v4604_v30 }
  0x1f   :  { %4607 = vmatprep.subr.bf16.mxu0 %v4606_v33 }
  0x22   :  { %4609 = vmatpush3.bf16.msra.mxu0 %v4608_v36 }
  0x23   :  { %4611 = vmatprep.subr.bf16.mxu0 %v4610_v39 }
  0x26   :  { %4613 = vmatpush3.bf16.msra.mxu0 %v4612_v42 }
  0x27   :  { %4615 = vmatprep.subr.bf16.mxu0 %v4614_v45 }
  0x2a   :  { %4617 = vmatpush3.bf16.msra.mxu0 %v4616_v48 }
  0x2b   :  { %4619 = vmatprep.subr.bf16.mxu0 %v4618_v49 }
  0x2e   :  { %4621 = vmatpush3.bf16.msra.mxu0 %v4620_v50 }
  0x2f   :  { %25 = vsyncpa [#allocation3], 0  ;;  %v69_v51 = vlaneseq  ;;  %v4843_v55 = vmov 1.0   ;;  %s5838_s4 = sld [smem:[#allocation7_spill]]  ;;  %vm198_vm4 = vcmask 261120   ;;  %v4630_v15 = vld [vmem:[%s5810_s6] sm:$0xff]  }
  0x30   :  { %v4631_v16 = vld [vmem:[%s5811_s7 + $0x10] sm:$0xff]   ;;  %v4844_v17 = vmov 0.0   ;;  %v4632_v18 = vld [vmem:[%s5810_s6 + $0x8] sm:$0xff]   ;;  %v4633_v19 = vld [vmem:[%s5811_s7 + $0x18] sm:$0xff]   ;;  %vm4845_vm5 = vmmov 0   ;;  %s5839_s3 = sld [smem:[#allocation9_spill]] }
  0x31   :  { %v70_v52 = vand.u32 127, %v69_v51  ;;  %4198 = vmatprep.subr.bf16.mxu1 %v4844_v17  ;;  %4242 = vmatprep.subr.bf16.mxu0 %v4844_v17  ;;  %v3760_v42 = vld [vmem:[%s5809_s5] ss:$0 sm:$0xff]  ;;  %v4635_v48 = vld [vmem:[%s5811_s7 + $0x8] sm:$0xff]   ;;  %vm433_vm10 = vcmask 64512   ;;  %s5840_s24 = sld [smem:[#allocation8_spill]] }
  0x32   :  { %4199 = vmatpush3.bf16.msra.mxu1 %v4630_v15  ;;  %4202 = vmatprep.mubr.msk.bf16.mxu1 %vm4845_vm5, %v4844_v17  ;;  %v4634_v46 = vld [vmem:[%s5811_s7] sm:$0xff]   ;;  %v4637_v50 = vld [vmem:[%s5812_s8 + $0x8] sm:$0xff]   ;;  %vm481_vm11 = vcmask 130048   ;;  %vm849_vm12 = vcmask 1043456   ;;  %s5841_s2 = sld [smem:[#allocation10_spill]] }
  0x33   :  { %v71_v53 = vadd.s32 128, %v70_v52  ;;  %4200 = vmatprep.subr.bf16.mxu1 %v4844_v17  ;;  %v4636_v49 = vld [vmem:[%s5812_s8] sm:$0xff]  }
  0x35   :  { %v118_v58 = vld [vmem:[%s5838_s4] sm:$0xff] }
  0x36   :  { %4201 = vmatpush3.bf16.msra.mxu1 %v4632_v18  ;;  %v3759_v36 = vld [vmem:[%s5839_s3] ss:$0 sm:$0xff] }
  0x37   :  { %4206 = vmatprep.subr.bf16.mxu1 %v4844_v17 }
  0x8d   :  { %v74_v54 = vpop.permute.xlu0 %73 }
  0x8e   :  { %vm78_vm0 = vcmp.eq.s32.totalorder %v74_v54, %v70_v52  ;;  %vm79_vm1 = vcmp.eq.s32.totalorder %v74_v54, %v71_v53 }
  0x8f   :  { %3755 = vmatprep.mubr.msk.f32.mxu0 %vm79_vm1, %v4843_v55 }
  0x90   :  { %3756 = vmatmul.mubr.msk.f32.vlgmr.msra.gmra.mrb[0].mxu0 %vm78_vm0, %v4843_v55 }
  0x91   :  { %v77_v56 = vpop.permute.xlu0 %76  ;;  %4243 = vmatpush3.bf16.msra.mxu0 %v4631_v16 }
  0x92   :  { %vm80_vm2 = vcmp.eq.s32.totalorder %v77_v56, %v70_v52  ;;  %vm81_vm3 = vcmp.eq.s32.totalorder %v77_v56, %v71_v53  ;;  %4244 = vmatprep.subr.bf16.mxu0 %v4844_v17 }
  0x93   :  { %3757 = vmatprep.mubr.msk.f32.mxu0 %vm81_vm3, %v4843_v55 }
  0x94   :  { %3758 = vmatmul.mubr.msk.f32.gmra.mrb[2].mxu0 %vm80_vm2, %v4843_v55 }
  0x95   :  { %4245 = vmatpush3.bf16.msra.mxu0 %v4633_v19  ;;  %4246 = vmatprep.mubr.msk.bf16.mxu0 %vm4845_vm5, %v4844_v17 }
  0x96   :  { %4258 = vmatprep.subr.bf16.mxu0 %v4844_v17 }
 0x163   :  { %v4048_v57 = vpop.f32.mrb[0].mxu0 }
 0x164   :  { %v4049_v59 = vpop.f32.mrb[1].mxu0 }
 0x165   :  { %v4050_v60 = vadd.f32 %v4049_v59, %v4048_v57 }
 0x167   :  { %v5060_v61 = vadd.f32 %v4050_v60, %v118_v58  ;;  %v4051_v62 = vpop.f32.mrb[2].mxu0 }
 0x168   :  { %v4052_v63 = vpop.f32.mrb[3].mxu0 }
 0x169   :  { %v4053_v0 = vadd.f32 %v4052_v63, %v4051_v62  ;;  %v199_v1 = vsel %vm198_vm4, %v5060_v61, 0.0 }
 0x16a   :  { %200 = vadd.xlane.f32.xlu1 %v199_v1 }
 0x16b   :  { %v5064_v3 = vadd.f32 %v4053_v0, %v118_v58 }
 0x16d   :  { %v202_v4 = vsel %vm198_vm4, %v5064_v3, 0.0 }
 0x16e   :  { %203 = vadd.xlane.f32.xlu1 %v202_v4 }
 0x1f7   :  { %v201_v5 = vpop.xlane.xlu1 %200 }
 0x1f8   :  { %v206_v6 = vmul.f32 0.03125, %v201_v5 }
 0x1fa   :  { %v208_v7 = vsub.f32 %v5060_v61, %v206_v6 }
 0x1fb   :  { %v204_v8 = vpop.xlane.xlu1 %203 }
 0x1fc   :  { %v207_v9 = vmul.f32 0.03125, %v204_v8  ;;  %v210_v10 = vmul.f32 %v208_v7, %v208_v7  ;;  %v226_v38 = vmul.f32 %v3759_v36, %v208_v7 }
 0x1fe   :  { %v209_v11 = vsub.f32 %v5064_v3, %v207_v9  ;;  %v212_v12 = vsel %vm198_vm4, %v210_v10, 0.0 }
 0x1ff   :  { %213 = vadd.xlane.f32.xlu0 %v212_v12  ;;  %v5145_v12 = vld [vmem:[%s5840_s24] sm:$0xff] }
 0x200   :  { %v211_v13 = vmul.f32 %v209_v11, %v209_v11  ;;  %v227_v39 = vmul.f32 %v3759_v36, %v209_v11 }
 0x202   :  { %v215_v14 = vsel %vm198_vm4, %v211_v13, 0.0 }
 0x203   :  { %216 = vadd.xlane.f32.xlu1 %v215_v14  ;;  %v5150_v14 = vld [vmem:[%s5840_s24 + $0x8] sm:$0xff] }
 0x28c   :  { %v214_v20 = vpop.xlane.xlu0 %213 }
 0x28d   :  { %v218_v21 = vmul.f32 0.03125, %v214_v20 }
 0x28f   :  { %v228_v22 = vadd.f32 1e-05, %v218_v21 }
 0x290   :  { %v217_v23 = vpop.xlane.xlu1 %216 }
 0x291   :  { %4704 = vrsqrt.f32 %v228_v22  ;;  %v219_v24 = vmul.f32 0.03125, %v217_v23  ;;  %vm232_vm6 = vcmp.eq.f32.partialorder %v228_v22, inf  ;;  %v235_v28 = vand.u32 2147483648, %v228_v22 }
 0x292   :  { %vm234_vm7 = vcmp.eq.f32.partialorder %v228_v22, 0.0 }
 0x293   :  { %v229_v25 = vadd.f32 1e-05, %v219_v24 }
 0x295   :  { %4706 = vrsqrt.f32 %v229_v25  ;;  %vm239_vm8 = vcmp.eq.f32.partialorder %v229_v25, inf  ;;  %v242_v33 = vand.u32 2147483648, %v229_v25  ;;  %vm241_vm9 = vcmp.eq.f32.partialorder %v229_v25, 0.0 }
 0x29b   :  { %v4705_v26 = vpop.eup %4704 }
 0x29c   :  { %v231_v27 = vmul.f32 %v4705_v26, %v228_v22 }
 0x29e   :  { %v233_v29 = vsel %vm232_vm6, %v228_v22, %v231_v27 }
 0x29f   :  { %v236_v30 = vsel %vm234_vm7, %v235_v28, %v233_v29  ;;  %v4707_v31 = vpop.eup %4706 }
 0x2a0   :  { %4708 = vrcp.f32 %v236_v30  ;;  %v238_v32 = vmul.f32 %v4707_v31, %v229_v25 }
 0x2a2   :  { %v240_v34 = vsel %vm239_vm8, %v229_v25, %v238_v32 }
 0x2a3   :  { %v243_v35 = vsel %vm241_vm9, %v242_v33, %v240_v34 }
 0x2a4   :  { %4710 = vrcp.f32 %v243_v35 }
 0x2aa   :  { %v4709_v37 = vpop.eup %4708 }
 0x2ab   :  { %v245_v40 = vmul.f32 %v4709_v37, %v226_v38 }
 0x2ad   :  { %v254_v44 = vadd.f32 %v3760_v42, %v245_v40 }
 0x2ae   :  { %v4711_v41 = vpop.eup %4710 }
 0x2af   :  { %v247_v43 = vmul.f32 %v4711_v41, %v227_v39  ;;  %v4638_v39 = vld [vmem:[%s5810_s6 + $0x10] sm:$0xff]   ;;  %v4639_v41 = vld [vmem:[%s5810_s6 + $0x18] sm:$0xff]  }
 0x2b1   :  { %v255_v45 = vadd.f32 %v3760_v42, %v247_v43  ;;  %v4640_v42 = vld [vmem:[%s5812_s8 + $0x10] sm:$0xff]   ;;  %v4641_v43 = vld [vmem:[%s5812_s8 + $0x18] sm:$0xff]  }
 0x2b3   :  { %v5103_v47 = vpack.c.bf16 %v255_v45, %v254_v44 }
 0x2b5   :  { %4203 = vmatmul.mubr.msk.bf16.vlgmr.msra.gmra.mrb[0].mxu1 %vm198_vm4, %v5103_v47  ;;  %4247 = vmatmul.mubr.msk.bf16.vlgmr.msra.gmra.mrb[4].mxu0 %vm198_vm4, %v5103_v47 }
 0x2b6   :  { %4207 = vmatpush3.bf16.msra.mxu1 %v4634_v46  ;;  %4210 = vmatprep.mubr.msk.bf16.mxu1 %vm4845_vm5, %v4844_v17 }
 0x2b7   :  { %4208 = vmatprep.subr.bf16.mxu1 %v4844_v17  ;;  %4260 = vmatprep.mubr.msk.bf16.mxu0 %vm4845_vm5, %v4844_v17 }
 0x2ba   :  { %4209 = vmatpush3.bf16.msra.mxu1 %v4635_v48 }
 0x2bb   :  { %4214 = vmatprep.subr.bf16.mxu1 %v4844_v17 }
 0x2bd   :  { %4211 = vmatmul.mubr.msk.bf16.vlgmr.msra.gmra.mrb[4].mxu1 %vm198_vm4, %v5103_v47 }
 0x2be   :  { %4215 = vmatpush3.bf16.msra.mxu1 %v4636_v49  ;;  %4218 = vmatprep.mubr.msk.bf16.mxu1 %vm4845_vm5, %v4844_v17 }
 0x2bf   :  { %4216 = vmatprep.subr.bf16.mxu1 %v4844_v17 }
 0x2c2   :  { %4217 = vmatpush3.bf16.msra.mxu1 %v4637_v50 }
 0x2c3   :  { %4222 = vmatprep.subr.bf16.mxu1 %v4844_v17 }
 0x2c5   :  { %4219 = vmatmul.mubr.msk.bf16.vlgmr.msra.gmra.mrb[8].mxu1 %vm198_vm4, %v5103_v47 }
 0x2c6   :  { %4224 = vmatprep.mubr.msk.bf16.mxu1 %vm4845_vm5, %v4844_v17 }
 0x388   :  { %v310_v51 = vpop.f32.mrb[0].mxu1  ;;  %v661_v52 = vpop.f32.mrb[4].mxu0 }
 0x389   :  { %v4204_v53 = vpop.f32.mrb[1].mxu1  ;;  %v4248_v54 = vpop.f32.mrb[5].mxu0 }
 0x38a   :  { %v313_v55 = vpop.f32.mrb[2].mxu1  ;;  %v664_v56 = vpop.f32.mrb[6].mxu0 }
 0x38b   :  { %v431_v57 = vpack.c.bf16 %v313_v55, %v310_v51  ;;  %v727_v58 = vpack.c.bf16 %v664_v56, %v661_v52  ;;  %v4205_v59 = vpop.f32.mrb[3].mxu1  ;;  %v4249_v60 = vpop.f32.mrb[7].mxu0 }
 0x38d   :  { %v732_v62 = vsel %vm433_vm10, %v727_v58, 0 }
 0x38e   :  { %4259 = vmatpush3.bf16.xpose.msra.mxu0 %v732_v62 }
 0x38f   :  { %4270 = vmatprep.subr.bf16.mxu0 %v4844_v17 }
 0x390   :  { %v367_v63 = vpop.f32.mrb[4].mxu1 }
 0x391   :  { %v4212_v0 = vpop.f32.mrb[5].mxu1 }
 0x392   :  { %v370_v1 = vpop.f32.mrb[6].mxu1 }
 0x393   :  { %v432_v4 = vpack.c.bf16 %v370_v1, %v367_v63  ;;  %v4213_v5 = vpop.f32.mrb[7].mxu1 }
 0x395   :  { %v438_v6 = vsel %vm433_vm10, %v432_v4, 0 }
 0x396   :  { %4223 = vmatpush3.bf16.xpose.msra.mxu1 %v438_v6 }
 0x397   :  { %4228 = vmatprep.subr.bf16.mxu1 %v4844_v17 }
 0x398   :  { %v424_v7 = vpop.f32.mrb[8].mxu1 }
 0x399   :  { %v4220_v8 = vpop.f32.mrb[9].mxu1 }
 0x39a   :  { %v427_v9 = vpop.f32.mrb[10].mxu1 }
 0x39b   :  { %v505_v10 = vpack.c.bf16 %v427_v9, %v424_v7  ;;  %v4221_v11 = vpop.f32.mrb[11].mxu1 }
 0x39d   :  { %4225 = vmatmul.mubr.msk.bf16.vlgmr.msra.gmra.mrb[12].mxu1 %vm433_vm10, %v431_v57 }
 0x39e   :  { %4229 = vmatpush3.bf16.msra.mxu1 %v505_v10  ;;  %4230 = vmatprep.mubr.msk.bf16.mxu1 %vm4845_vm5, %v4844_v17 }
 0x39f   :  { %4234 = vmatprep.subr.bf16.mxu1 %v4844_v17 }
 0x470   :  { %v474_v13 = vpop.f32.mrb[12].mxu1 }
 0x471   :  { %v475_v15 = vadd.f32 %v474_v13, %v5145_v12  ;;  %v4226_v16 = vpop.f32.mrb[13].mxu1 }
 0x472   :  { %v477_v18 = vpop.f32.mrb[14].mxu1 }
 0x473   :  { %v478_v19 = vadd.f32 %v477_v18, %v5150_v14  ;;  %v4227_v20 = vpop.f32.mrb[15].mxu1  ;;  %v482_v21 = vsel %vm481_vm11, %v475_v15, -inf }
 0x474   :  { %483 = vmax.xlane.f32.xlu1 %v482_v21  ;;  %v3795_v20 = vld [vmem:[%s5813_s9 + $0x4] sm:$0xf] }
 0x475   :  { %v485_v22 = vsel %vm481_vm11, %v478_v19, -inf  ;;  %v851_v21 = vsel %vm849_vm12, %v3795_v20, 0 }
 0x478   :  { %486 = vmax.xlane.f32.xlu1 %v485_v22 }
 0x501   :  { %v484_v23 = vpop.xlane.xlu1 %483 }
 0x502   :  { %v488_v24 = vsub.f32 %v475_v15, %v484_v23 }
 0x504   :  { %v490_v25 = vmul.f32 1.442695, %v488_v24 }
 0x505   :  { %v487_v26 = vpop.xlane.xlu1 %486 }
 0x506   :  { %4712 = vpow2.f32 %v490_v25  ;;  %v489_v27 = vsub.f32 %v478_v19, %v487_v26  ;;  %v551_v26 = vld [vmem:[%s5813_s9] sm:$0xf] }
 0x508   :  { %v492_v28 = vmul.f32 1.442695, %v489_v27 }
 0x50a   :  { %4714 = vpow2.f32 %v492_v28 }
 0x510   :  { %v4713_v29 = vpop.eup %4712 }
 0x511   :  { %v494_v30 = vsel %vm481_vm11, %v4713_v29, 0.0 }
 0x512   :  { %495 = vadd.xlane.f32.xlu1 %v494_v30  ;;  %v898_v30 = vsel %vm849_vm12, %v551_v26, 0 }
 0x514   :  { %v4715_v31 = vpop.eup %4714 }
 0x515   :  { %v497_v32 = vsel %vm481_vm11, %v4715_v31, 0.0 }
 0x516   :  { %498 = vadd.xlane.f32.xlu1 %v497_v32  ;;  %v4643_v32 = vld [vmem:[%s5811_s7 + $0x28] sm:$0xff]  }
 0x59f   :  { %v496_v33 = vpop.xlane.xlu1 %495 }
 0x5a0   :  { %4716 = vrcp.f32 %v496_v33 }
 0x5a3   :  { %v499_v34 = vpop.xlane.xlu1 %498 }
 0x5a4   :  { %4718 = vrcp.f32 %v499_v34 }
 0x5aa   :  { %v4717_v35 = vpop.eup %4716 }
 0x5ab   :  { %v502_v37 = vmul.f32 %v4717_v35, %v4713_v29 }
 0x5ae   :  { %v4719_v36 = vpop.eup %4718 }
 0x5af   :  { %v503_v38 = vmul.f32 %v4719_v36, %v4715_v31  ;;  %v4642_v31 = vld [vmem:[%s5811_s7 + $0x20] sm:$0xff]  }
 0x5b0   :  { %v4644_v36 = vld [vmem:[%s5810_s6 + $0x20] sm:$0xff]  }
 0x5b1   :  { %v504_v40 = vpack.c.bf16 %v503_v38, %v502_v37 }
 0x5b3   :  { %4231 = vmatmul.mubr.msk.bf16.vlgmr.msra.gmra.mrb[16].mxu1 %vm481_vm11, %v504_v40 }
 0x5b4   :  { %4235 = vmatpush3.bf16.msra.mxu1 %v4638_v39  ;;  %4238 = vmatprep.mubr.msk.bf16.mxu1 %vm4845_vm5, %v4844_v17  ;;  %v4645_v39 = vld [vmem:[%s5810_s6 + $0x28] sm:$0xff]  }
 0x5b5   :  { %4236 = vmatprep.subr.bf16.mxu1 %v4844_v17 }
 0x5b8   :  { %4237 = vmatpush3.bf16.msra.mxu1 %v4639_v41 }
 0x5b9   :  { %4250 = vmatprep.subr.bf16.mxu1 %v4844_v17 }
 0x5bb   :  { %4239 = vmatmul.mubr.msk.bf16.vlgmr.msra.gmra.mrb[20].mxu1 %vm198_vm4, %v5103_v47 }
 0x5bc   :  { %4251 = vmatpush3.bf16.msra.mxu1 %v4640_v42  ;;  %4254 = vmatprep.mubr.msk.bf16.mxu1 %vm4845_vm5, %v4844_v17 }
 0x5bd   :  { %4252 = vmatprep.subr.bf16.mxu1 %v4844_v17 }
 0x5c0   :  { %4253 = vmatpush3.bf16.msra.mxu1 %v4641_v43  ;;  %v4646_v43 = vld [vmem:[%s5812_s8 + $0x20] sm:$0xff]  }
 0x5c1   :  { %4264 = vmatprep.subr.bf16.mxu1 %v4844_v17 }
 0x5c3   :  { %4255 = vmatmul.mubr.msk.bf16.vlgmr.msra.gmra.mrb[24].mxu1 %vm198_vm4, %v5103_v47 }
 0x5c4   :  { %4266 = vmatprep.mubr.msk.bf16.mxu1 %vm4845_vm5, %v4844_v17 }
 0x686   :  { %v5185_v44 = vpop.f32.mrb[16].mxu1 }
 0x687   :  { %v4232_v45 = vpop.f32.mrb[17].mxu1 }
 0x688   :  { %v5187_v46 = vpop.f32.mrb[18].mxu1  ;;  %v4647_v45 = vld [vmem:[%s5812_s8 + $0x28] sm:$0xff]  }
 0x689   :  { %v550_v48 = vpack.c.bf16 %v5187_v46, %v5185_v44  ;;  %v4233_v49 = vpop.f32.mrb[19].mxu1 }
 0x68e   :  { %v603_v50 = vpop.f32.mrb[20].mxu1 }
 0x68f   :  { %v4240_v51 = vpop.f32.mrb[21].mxu1 }
 0x690   :  { %v606_v52 = vpop.f32.mrb[22].mxu1 }
 0x691   :  { %v726_v53 = vpack.c.bf16 %v606_v52, %v603_v50  ;;  %v4241_v54 = vpop.f32.mrb[23].mxu1 }
 0x693   :  { %4261 = vmatmul.mubr.msk.bf16.vlgmr.msra.gmra.mrb[8].mxu0 %vm433_vm10, %v726_v53 }
 0x694   :  { %4272 = vmatprep.mubr.msk.bf16.mxu0 %vm4845_vm5, %v4844_v17  ;;  %4271 = vmatpush3.bf16.msra.mxu0 %v851_v21 }
 0x695   :  { %4282 = vmatprep.subr.bf16.mxu0 %v4844_v17 }
 0x696   :  { %v719_v55 = vpop.f32.mrb[24].mxu1 }
 0x697   :  { %v4256_v56 = vpop.f32.mrb[25].mxu1 }
 0x698   :  { %v722_v57 = vpop.f32.mrb[26].mxu1 }
 0x699   :  { %v798_v58 = vpack.c.bf16 %v722_v57, %v719_v55  ;;  %v4257_v59 = vpop.f32.mrb[27].mxu1 }
 0x69b   :  { %4265 = vmatpush3.bf16.msra.mxu1 %v798_v58 }
 0x69c   :  { %4276 = vmatprep.subr.bf16.mxu1 %v4844_v17 }
 0x766   :  { %v768_v60 = vpop.f32.mrb[8].mxu0 }
 0x767   :  { %v769_v62 = vadd.f32 %v768_v60, %v5145_v12  ;;  %v4262_v63 = vpop.f32.mrb[9].mxu0 }
 0x768   :  { %v771_v0 = vpop.f32.mrb[10].mxu0 }
 0x769   :  { %v772_v1 = vadd.f32 %v771_v0, %v5150_v14  ;;  %v4263_v4 = vpop.f32.mrb[11].mxu0  ;;  %v775_v5 = vsel %vm481_vm11, %v769_v62, -inf }
 0x76a   :  { %776 = vmax.xlane.f32.xlu1 %v775_v5 }
 0x76b   :  { %v778_v6 = vsel %vm481_vm11, %v772_v1, -inf }
 0x76e   :  { %779 = vmax.xlane.f32.xlu1 %v778_v6 }
 0x7f7   :  { %v777_v7 = vpop.xlane.xlu1 %776 }
 0x7f8   :  { %v781_v8 = vsub.f32 %v769_v62, %v777_v7 }
 0x7fa   :  { %v783_v9 = vmul.f32 1.442695, %v781_v8 }
 0x7fb   :  { %v780_v10 = vpop.xlane.xlu1 %779 }
 0x7fc   :  { %4720 = vpow2.f32 %v783_v9  ;;  %v782_v11 = vsub.f32 %v772_v1, %v780_v10 }
 0x7fe   :  { %v785_v13 = vmul.f32 1.442695, %v782_v11 }
 0x800   :  { %4722 = vpow2.f32 %v785_v13 }
 0x806   :  { %v4721_v15 = vpop.eup %4720 }
 0x807   :  { %v787_v16 = vsel %vm481_vm11, %v4721_v15, 0.0 }
 0x808   :  { %788 = vadd.xlane.f32.xlu1 %v787_v16 }
 0x80a   :  { %v4723_v18 = vpop.eup %4722 }
 0x80b   :  { %v790_v19 = vsel %vm481_vm11, %v4723_v18, 0.0 }
 0x80c   :  { %791 = vadd.xlane.f32.xlu0 %v790_v19 }
 0x895   :  { %v789_v22 = vpop.xlane.xlu1 %788 }
 0x896   :  { %4724 = vrcp.f32 %v789_v22 }
 0x899   :  { %v792_v23 = vpop.xlane.xlu0 %791 }
 0x89a   :  { %4726 = vrcp.f32 %v792_v23 }
 0x8a0   :  { %v4725_v24 = vpop.eup %4724 }
 0x8a1   :  { %v795_v27 = vmul.f32 %v4725_v24, %v4721_v15 }
 0x8a4   :  { %v4727_v25 = vpop.eup %4726 }
 0x8a5   :  { %v796_v28 = vmul.f32 %v4727_v25, %v4723_v18 }
 0x8a7   :  { %v797_v29 = vpack.c.bf16 %v796_v28, %v795_v27 }
 0x8a9   :  { %4267 = vmatmul.mubr.msk.bf16.vlgmr.msra.gmra.mrb[28].mxu1 %vm481_vm11, %v797_v29  ;;  %v3821_v29 = vld [vmem:[%s5813_s9 + $0x8] sm:$0xf] }
 0x8aa   :  { %4277 = vmatpush3.bf16.msra.mxu1 %v898_v30  ;;  %4278 = vmatprep.mubr.msk.bf16.mxu1 %vm4845_vm5, %v4844_v17  ;;  %v1239_v30 = vsel %vm849_vm12, %v3821_v29, 0  ;;  %v3846_v29 = vld [vmem:[%s5813_s9 + $0xc] sm:$0xf] }
 0x8ab   :  { %4290 = vmatprep.subr.bf16.mxu1 %v4844_v17 }
 0x8b1   :  { %4279 = vmatmul.mubr.msk.bf16.vlgmr.msra.gmra.mrb[32].mxu1 %vm433_vm10, %v550_v48 }
 0x8b2   :  { %4291 = vmatpush3.bf16.msra.mxu1 %v4642_v31  ;;  %4294 = vmatprep.mubr.msk.bf16.mxu1 %vm4845_vm5, %v4844_v17 }
 0x8b3   :  { %4292 = vmatprep.subr.bf16.mxu1 %v4844_v17 }
 0x8b6   :  { %4293 = vmatpush3.bf16.msra.mxu1 %v4643_v32 }
 0x8b7   :  { %4306 = vmatprep.subr.bf16.mxu1 %v4844_v17 }
 0x8b9   :  { %4295 = vmatmul.mubr.msk.bf16.vlgmr.msra.gmra.mrb[36].mxu1 %vm198_vm4, %v5103_v47 }
 0x8ba   :  { %4308 = vmatprep.mubr.msk.bf16.mxu1 %vm4845_vm5, %v4844_v17 }
 0x97c   :  { %v836_v33 = vpop.f32.mrb[28].mxu1 }
 0x97d   :  { %v4268_v34 = vpop.f32.mrb[29].mxu1 }
 0x97e   :  { %v839_v35 = vpop.f32.mrb[30].mxu1 }
 0x97f   :  { %v843_v37 = vpack.c.bf16 %v839_v35, %v836_v33  ;;  %v4269_v38 = vpop.f32.mrb[31].mxu1 }
 0x981   :  { %4273 = vmatmul.mubr.msk.bf16.vlgmr.msra.gmra.mrb[12].mxu0 %vm433_vm10, %v843_v37  ;;  %v4648_v37 = vld [vmem:[%s5810_s6 + $0x30] sm:$0xff]  }
 0x982   :  { %4283 = vmatpush3.bf16.msra.mxu0 %v4644_v36  ;;  %4286 = vmatprep.mubr.msk.bf16.mxu0 %vm4845_vm5, %v4844_v17 }
 0x983   :  { %4284 = vmatprep.subr.bf16.mxu0 %v4844_v17 }
 0x984   :  { %v934_v40 = vpop.f32.mrb[32].mxu1 }
 0x985   :  { %v4280_v41 = vpop.f32.mrb[33].mxu1 }
 0x986   :  { %v937_v42 = vpop.f32.mrb[34].mxu1  ;;  %4285 = vmatpush3.bf16.msra.mxu0 %v4645_v39  ;;  %v4649_v39 = vld [vmem:[%s5810_s6 + $0x38] sm:$0xff]  }
 0x987   :  { %v4281_v44 = vpop.f32.mrb[35].mxu1  ;;  %4298 = vmatprep.subr.bf16.mxu0 %v4844_v17  ;;  %v4651_v41 = vld [vmem:[%s5812_s8 + $0x38] sm:$0xff]  }
 0x989   :  { %4287 = vmatmul.mubr.msk.bf16.vlgmr.msra.gmra.mrb[16].mxu0 %vm198_vm4, %v5103_v47 }
 0x98a   :  { %4299 = vmatpush3.bf16.msra.mxu0 %v4646_v43  ;;  %4302 = vmatprep.mubr.msk.bf16.mxu0 %vm4845_vm5, %v4844_v17 }
 0x98b   :  { %4300 = vmatprep.subr.bf16.mxu0 %v4844_v17 }
 0x98c   :  { %v1050_v46 = vpop.f32.mrb[36].mxu1 }
 0x98d   :  { %v4296_v48 = vpop.f32.mrb[37].mxu1 }
 0x98e   :  { %v1053_v49 = vpop.f32.mrb[38].mxu1  ;;  %4301 = vmatpush3.bf16.msra.mxu0 %v4647_v45  ;;  %v4652_v45 = vld [vmem:[%s5811_s7 + $0x30] sm:$0xff]  }
 0x98f   :  { %v1116_v50 = vpack.c.bf16 %v1053_v49, %v1050_v46  ;;  %v4297_v51 = vpop.f32.mrb[39].mxu1  ;;  %4312 = vmatprep.subr.bf16.mxu0 %v4844_v17  ;;  %v4653_v49 = vld [vmem:[%s5811_s7 + $0x38] sm:$0xff]  }
 0x991   :  { %v1121_v52 = vsel %vm433_vm10, %v1116_v50, 0  ;;  %4303 = vmatmul.mubr.msk.bf16.vlgmr.msra.gmra.mrb[20].mxu0 %vm198_vm4, %v5103_v47 }
 0x992   :  { %4307 = vmatpush3.bf16.xpose.msra.mxu1 %v1121_v52  ;;  %4314 = vmatprep.mubr.msk.bf16.mxu0 %vm4845_vm5, %v4844_v17 }
 0x993   :  { %4318 = vmatprep.subr.bf16.mxu1 %v4844_v17 }
 0xa54   :  { %v887_v53 = vpop.f32.mrb[12].mxu0 }
 0xa55   :  { %v5258_v54 = vadd.f32 %v934_v40, %v887_v53  ;;  %v4274_v55 = vpop.f32.mrb[13].mxu0  ;;  %v4650_v40 = vld [vmem:[%s5812_s8 + $0x30] sm:$0xff]  }
 0xa56   :  { %v890_v56 = vpop.f32.mrb[14].mxu0 }
 0xa57   :  { %v5260_v57 = vadd.f32 %v937_v42, %v890_v56  ;;  %v4275_v58 = vpop.f32.mrb[15].mxu0 }
 0xa5c   :  { %v992_v59 = vpop.f32.mrb[16].mxu0 }
 0xa5d   :  { %v4288_v60 = vpop.f32.mrb[17].mxu0 }
 0xa5e   :  { %v995_v62 = vpop.f32.mrb[18].mxu0 }
 0xa5f   :  { %v1115_v63 = vpack.c.bf16 %v995_v62, %v992_v59  ;;  %v4289_v0 = vpop.f32.mrb[19].mxu0 }
 0xa61   :  { %4309 = vmatmul.mubr.msk.bf16.vlgmr.msra.gmra.mrb[40].mxu1 %vm433_vm10, %v1115_v63 }
 0xa62   :  { %4320 = vmatprep.mubr.msk.bf16.mxu1 %vm4845_vm5, %v4844_v17  ;;  %4319 = vmatpush3.bf16.msra.mxu1 %v1239_v30  ;;  %v1582_v30 = vsel %vm849_vm12, %v3846_v29, 0 }
 0xa63   :  { %4332 = vmatprep.subr.bf16.mxu1 %v4844_v17 }
 0xa64   :  { %v1108_v1 = vpop.f32.mrb[20].mxu0 }
 0xa65   :  { %v4304_v4 = vpop.f32.mrb[21].mxu0 }
 0xa66   :  { %v1111_v5 = vpop.f32.mrb[22].mxu0 }
 0xa67   :  { %v1187_v6 = vpack.c.bf16 %v1111_v5, %v1108_v1  ;;  %v4305_v7 = vpop.f32.mrb[23].mxu0 }
 0xa69   :  { %4313 = vmatpush3.bf16.msra.mxu0 %v1187_v6 }
 0xa6a   :  { %4324 = vmatprep.subr.bf16.mxu0 %v4844_v17 }
 0xb34   :  { %v1157_v8 = vpop.f32.mrb[40].mxu1 }
 0xb35   :  { %v1158_v9 = vadd.f32 %v1157_v8, %v5145_v12  ;;  %v4310_v10 = vpop.f32.mrb[41].mxu1 }
 0xb36   :  { %v1160_v11 = vpop.f32.mrb[42].mxu1 }
 0xb37   :  { %v1161_v13 = vadd.f32 %v1160_v11, %v5150_v14  ;;  %v4311_v15 = vpop.f32.mrb[43].mxu1  ;;  %v1164_v16 = vsel %vm481_vm11, %v1158_v9, -inf }
 0xb38   :  { %1165 = vmax.xlane.f32.xlu1 %v1164_v16 }
 0xb39   :  { %v1167_v18 = vsel %vm481_vm11, %v1161_v13, -inf }
 0xb3a   :  { %1168 = vmax.xlane.f32.xlu0 %v1167_v18 }
 0xbc5   :  { %v1166_v19 = vpop.xlane.xlu1 %1165 }
 0xbc6   :  { %v1170_v20 = vsub.f32 %v1158_v9, %v1166_v19 }
 0xbc7   :  { %v1169_v21 = vpop.xlane.xlu0 %1168 }
 0xbc8   :  { %v1172_v22 = vmul.f32 1.442695, %v1170_v20  ;;  %v1171_v23 = vsub.f32 %v1161_v13, %v1169_v21 }
 0xbca   :  { %4728 = vpow2.f32 %v1172_v22  ;;  %v1174_v24 = vmul.f32 1.442695, %v1171_v23 }
 0xbcc   :  { %4730 = vpow2.f32 %v1174_v24 }
 0xbd4   :  { %v4729_v25 = vpop.eup %4728 }
 0xbd5   :  { %v1176_v26 = vsel %vm481_vm11, %v4729_v25, 0.0 }
 0xbd6   :  { %v4731_v27 = vpop.eup %4730  ;;  %1177 = vadd.xlane.f32.xlu1 %v1176_v26 }
 0xbd7   :  { %v1179_v28 = vsel %vm481_vm11, %v4731_v27, 0.0 }
 0xbd8   :  { %1180 = vadd.xlane.f32.xlu0 %v1179_v28 }
 0xc63   :  { %v1178_v31 = vpop.xlane.xlu1 %1177 }
 0xc64   :  { %4732 = vrcp.f32 %v1178_v31 }
 0xc65   :  { %v1181_v32 = vpop.xlane.xlu0 %1180 }
 0xc66   :  { %4734 = vrcp.f32 %v1181_v32 }
 0xc6e   :  { %v4733_v33 = vpop.eup %4732 }
 0xc6f   :  { %v1184_v35 = vmul.f32 %v4733_v33, %v4729_v25 }
 0xc70   :  { %v4735_v34 = vpop.eup %4734 }
 0xc71   :  { %v1185_v36 = vmul.f32 %v4735_v34, %v4731_v27 }
 0xc73   :  { %v1186_v38 = vpack.c.bf16 %v1185_v36, %v1184_v35 }
 0xc75   :  { %4315 = vmatmul.mubr.msk.bf16.vlgmr.msra.gmra.mrb[24].mxu0 %vm481_vm11, %v1186_v38 }
 0xc76   :  { %4325 = vmatpush3.bf16.msra.mxu0 %v4648_v37  ;;  %4328 = vmatprep.mubr.msk.bf16.mxu0 %vm4845_vm5, %v4844_v17 }
 0xc77   :  { %4326 = vmatprep.subr.bf16.mxu0 %v4844_v17 }
 0xc7a   :  { %4327 = vmatpush3.bf16.msra.mxu0 %v4649_v39 }
 0xc7b   :  { %4340 = vmatprep.subr.bf16.mxu0 %v4844_v17 }
 0xc7d   :  { %4329 = vmatmul.mubr.msk.bf16.vlgmr.msra.gmra.mrb[28].mxu0 %vm198_vm4, %v5103_v47 }
 0xc7e   :  { %4341 = vmatpush3.bf16.msra.mxu0 %v4650_v40  ;;  %4344 = vmatprep.mubr.msk.bf16.mxu0 %vm4845_vm5, %v4844_v17 }
 0xc7f   :  { %4342 = vmatprep.subr.bf16.mxu0 %v4844_v17 }
 0xc82   :  { %4343 = vmatpush3.bf16.msra.mxu0 %v4651_v41 }
 0xc83   :  { %4354 = vmatprep.subr.bf16.mxu0 %v4844_v17 }
 0xc85   :  { %4345 = vmatmul.mubr.msk.bf16.vlgmr.msra.gmra.mrb[32].mxu0 %vm198_vm4, %v5103_v47 }
 0xc86   :  { %4356 = vmatprep.mubr.msk.bf16.mxu0 %vm4845_vm5, %v4844_v17 }
 0xd48   :  { %v1225_v42 = vpop.f32.mrb[24].mxu0 }
 0xd49   :  { %v4316_v43 = vpop.f32.mrb[25].mxu0 }
 0xd4a   :  { %v1228_v44 = vpop.f32.mrb[26].mxu0 }
 0xd4b   :  { %v1232_v46 = vpack.c.bf16 %v1228_v44, %v1225_v42  ;;  %v4317_v48 = vpop.f32.mrb[27].mxu0 }
 0xd4d   :  { %4321 = vmatmul.mubr.msk.bf16.vlgmr.msra.gmra.mrb[44].mxu1 %vm433_vm10, %v1232_v46  ;;  %v3848_v46 = vld [vmem:[%s5814_s10] ss:$0 sm:$0xff] }
 0xd4e   :  { %4333 = vmatpush3.bf16.msra.mxu1 %v4652_v45  ;;  %4336 = vmatprep.mubr.msk.bf16.mxu1 %vm4845_vm5, %v4844_v17 }
 0xd4f   :  { %4334 = vmatprep.subr.bf16.mxu1 %v4844_v17 }
 0xd50   :  { %v1335_v50 = vpop.f32.mrb[28].mxu0 }
 0xd51   :  { %v4330_v51 = vpop.f32.mrb[29].mxu0 }
 0xd52   :  { %v1338_v52 = vpop.f32.mrb[30].mxu0  ;;  %4335 = vmatpush3.bf16.msra.mxu1 %v4653_v49 }
 0xd53   :  { %v1458_v53 = vpack.c.bf16 %v1338_v52, %v1335_v50  ;;  %v4331_v55 = vpop.f32.mrb[31].mxu0  ;;  %4348 = vmatprep.subr.bf16.mxu1 %v4844_v17 }
 0xd55   :  { %4337 = vmatmul.mubr.msk.bf16.vlgmr.msra.gmra.mrb[48].mxu1 %vm198_vm4, %v5103_v47 }
 0xd56   :  { %4350 = vmatprep.mubr.msk.bf16.mxu1 %vm4845_vm5, %v4844_v17 }
 0xd58   :  { %v1451_v56 = vpop.f32.mrb[32].mxu0 }
 0xd59   :  { %v4346_v58 = vpop.f32.mrb[33].mxu0 }
 0xd5a   :  { %v1454_v59 = vpop.f32.mrb[34].mxu0 }
 0xd5b   :  { %v1530_v60 = vpack.c.bf16 %v1454_v59, %v1451_v56  ;;  %v4347_v62 = vpop.f32.mrb[35].mxu0 }
 0xd5d   :  { %4355 = vmatpush3.bf16.msra.mxu0 %v1530_v60 }
 0xd5e   :  { %4366 = vmatprep.subr.bf16.mxu0 %v4844_v17 }
 0xe20   :  { %v1275_v63 = vpop.f32.mrb[44].mxu1 }
 0xe21   :  { %v1282_v0 = vadd.f32 %v1275_v63, %v5258_v54  ;;  %v4322_v1 = vpop.f32.mrb[45].mxu1 }
 0xe22   :  { %v1278_v4 = vpop.f32.mrb[46].mxu1 }
 0xe23   :  { %v5322_v5 = vadd.f32 %v1278_v4, %v5260_v57  ;;  %v4323_v47 = vpop.f32.mrb[47].mxu1 }
 0xe24   :  { %v4654_v47 = vld [vmem:[%s5817_s13] sm:$0xff]  }
 0xe28   :  { %v1393_v6 = vpop.f32.mrb[48].mxu1 }
 0xe29   :  { %v4338_v7 = vpop.f32.mrb[49].mxu1 }
 0xe2a   :  { %v1396_v8 = vpop.f32.mrb[50].mxu1 }
 0xe2b   :  { %v1459_v9 = vpack.c.bf16 %v1396_v8, %v1393_v6  ;;  %v4339_v10 = vpop.f32.mrb[51].mxu1  ;;  %v4655_v6 = vld [vmem:[%s5817_s13 + $0x8] sm:$0xff]  }
 0xe2d   :  { %v1464_v11 = vsel %vm433_vm10, %v1459_v9, 0 }
 0xe2e   :  { %4349 = vmatpush3.bf16.xpose.msra.mxu1 %v1464_v11 }
 0xe2f   :  { %4360 = vmatprep.subr.bf16.mxu1 %v4844_v17 }
 0xe35   :  { %4351 = vmatmul.mubr.msk.bf16.vlgmr.msra.gmra.mrb[52].mxu1 %vm433_vm10, %v1458_v53 }
 0xe36   :  { %4362 = vmatprep.mubr.msk.bf16.mxu1 %vm4845_vm5, %v4844_v17  ;;  %4361 = vmatpush3.bf16.msra.mxu1 %v1582_v30 }
 0xe37   :  { %4374 = vmatprep.subr.bf16.mxu1 %v4844_v17 }
 0xf08   :  { %v1500_v54 = vpop.f32.mrb[52].mxu1 }
 0xf09   :  { %v1501_v57 = vadd.f32 %v1500_v54, %v5145_v12  ;;  %v4352_v13 = vpop.f32.mrb[53].mxu1 }
 0xf0a   :  { %v1503_v15 = vpop.f32.mrb[54].mxu1 }
 0xf0b   :  { %v1504_v16 = vadd.f32 %v1503_v15, %v5150_v14  ;;  %v4353_v18 = vpop.f32.mrb[55].mxu1  ;;  %v1507_v19 = vsel %vm481_vm11, %v1501_v57, -inf }
 0xf0c   :  { %1508 = vmax.xlane.f32.xlu1 %v1507_v19 }
 0xf0d   :  { %v1510_v20 = vsel %vm481_vm11, %v1504_v16, -inf }
 0xf0e   :  { %1511 = vmax.xlane.f32.xlu0 %v1510_v20 }
 0xf99   :  { %v1509_v21 = vpop.xlane.xlu1 %1508 }
 0xf9a   :  { %v1513_v22 = vsub.f32 %v1501_v57, %v1509_v21 }
 0xf9b   :  { %v1512_v23 = vpop.xlane.xlu0 %1511 }
 0xf9c   :  { %v1515_v24 = vmul.f32 1.442695, %v1513_v22  ;;  %v1514_v25 = vsub.f32 %v1504_v16, %v1512_v23 }
 0xf9e   :  { %4736 = vpow2.f32 %v1515_v24  ;;  %v1517_v26 = vmul.f32 1.442695, %v1514_v25  ;;  %v3849_v24 = vld [vmem:[%s5815_s11] ss:$0 sm:$0xff] }
 0xfa0   :  { %4738 = vpow2.f32 %v1517_v26 }
 0xfa8   :  { %v4737_v12 = vpop.eup %4736 }
 0xfa9   :  { %v1519_v27 = vsel %vm481_vm11, %v4737_v12, 0.0 }
 0xfaa   :  { %v4739_v28 = vpop.eup %4738  ;;  %1520 = vadd.xlane.f32.xlu1 %v1519_v27 }
 0xfab   :  { %v1522_v14 = vsel %vm481_vm11, %v4739_v28, 0.0 }
 0xfac   :  { %1523 = vadd.xlane.f32.xlu0 %v1522_v14  ;;  %v3850_v14 = vld [vmem:[%s5816_s12] ss:$0 sm:$0xff] }
0x1037   :  { %v1521_v31 = vpop.xlane.xlu1 %1520 }
0x1038   :  { %4740 = vrcp.f32 %v1521_v31 }
0x1039   :  { %v1524_v32 = vpop.xlane.xlu0 %1523 }
0x103a   :  { %4742 = vrcp.f32 %v1524_v32 }
0x1042   :  { %v4741_v33 = vpop.eup %4740 }
0x1043   :  { %v1527_v35 = vmul.f32 %v4741_v33, %v4737_v12  ;;  %v4656_v33 = vld [vmem:[%s5819_s15] sm:$0xff]  }
0x1044   :  { %v4743_v34 = vpop.eup %4742 }
0x1045   :  { %v1528_v36 = vmul.f32 %v4743_v34, %v4739_v28  ;;  %v4657_v34 = vld [vmem:[%s5819_s15 + $0x8] sm:$0xff]  }
0x1047   :  { %v1529_v37 = vpack.c.bf16 %v1528_v36, %v1527_v35  ;;  %v4658_v35 = vld [vmem:[%s5819_s15 + $0x10] sm:$0xff]   ;;  %v4659_v36 = vld [vmem:[%s5819_s15 + $0x18] sm:$0xff]  }
0x1049   :  { %4357 = vmatmul.mubr.msk.bf16.vlgmr.msra.gmra.mrb[36].mxu0 %vm481_vm11, %v1529_v37  ;;  %v4660_v37 = vld [vmem:[%s5819_s15 + $0x20] sm:$0xff]  }
0x104a   :  { %4370 = vmatprep.mubr.msk.bf16.mxu0 %vm4845_vm5, %v4844_v17  ;;  %4367 = vmatpush3.bf16.msra.mxu0 %v4654_v47 }
0x104b   :  { %4368 = vmatprep.subr.bf16.mxu0 %v4844_v17 }
0x104e   :  { %4369 = vmatpush3.bf16.msra.mxu0 %v4655_v6 }
0x104f   :  { %4394 = vmatprep.subr.bf16.mxu0 %v4844_v17 }
0x111c   :  { %v1568_v38 = vpop.f32.mrb[36].mxu0 }
0x111d   :  { %v4358_v39 = vpop.f32.mrb[37].mxu0 }
0x111e   :  { %v1571_v40 = vpop.f32.mrb[38].mxu0  ;;  %v4662_v39 = vld [vmem:[%s5819_s15 + $0x30] sm:$0xff]  }
0x111f   :  { %v1575_v41 = vpack.c.bf16 %v1571_v40, %v1568_v38  ;;  %v4359_v42 = vpop.f32.mrb[39].mxu0  ;;  %v4661_v38 = vld [vmem:[%s5819_s15 + $0x28] sm:$0xff]   ;;  %v4663_v40 = vld [vmem:[%s5819_s15 + $0x38] sm:$0xff]  }
0x1121   :  { %4363 = vmatmul.mubr.msk.bf16.vlgmr.msra.gmra.mrb[56].mxu1 %vm433_vm10, %v1575_v41  ;;  %v3851_v41 = vld [vmem:[%s5841_s2] ss:$0 sm:$0xff] }
0x1122   :  { %4390 = vmatprep.mubr.msk.bf16.mxu1 %vm4845_vm5, %v4844_v17  ;;  %4375 = vmatpush3.bf16.msra.mxu1 %v4656_v33 }
0x1123   :  { %4376 = vmatprep.subr.bf16.mxu1 %v4844_v17 }
0x1126   :  { %4377 = vmatpush3.bf16.msra.mxu1 %v4657_v34 }
0x1127   :  { %4378 = vmatprep.subr.bf16.mxu1 %v4844_v17 }
0x112a   :  { %4379 = vmatpush3.bf16.msra.mxu1 %v4658_v35 }
0x112b   :  { %4380 = vmatprep.subr.bf16.mxu1 %v4844_v17 }
0x112e   :  { %4381 = vmatpush3.bf16.msra.mxu1 %v4659_v36 }
0x112f   :  { %4382 = vmatprep.subr.bf16.mxu1 %v4844_v17 }
0x1132   :  { %4383 = vmatpush3.bf16.msra.mxu1 %v4660_v37 }
0x1133   :  { %4384 = vmatprep.subr.bf16.mxu1 %v4844_v17 }
0x1136   :  { %4385 = vmatpush3.bf16.msra.mxu1 %v4661_v38 }
0x1137   :  { %4386 = vmatprep.subr.bf16.mxu1 %v4844_v17 }
0x113a   :  { %4387 = vmatpush3.bf16.msra.mxu1 %v4662_v39 }
0x113b   :  { %4388 = vmatprep.subr.bf16.mxu1 %v4844_v17 }
0x113e   :  { %4389 = vmatpush3.bf16.msra.mxu1 %v4663_v40 }
0x113f   :  { %4424 = vmatprep.subr.bf16.mxu1 %v4844_v17 }
0x11f4   :  { %v1618_v43 = vpop.f32.mrb[56].mxu1 }
0x11f5   :  { %v1625_v44 = vadd.f32 %v1618_v43, %v1282_v0  ;;  %v4364_v45 = vpop.f32.mrb[57].mxu1 }
0x11f6   :  { %v1621_v48 = vpop.f32.mrb[58].mxu1 }
0x11f7   :  { %v1627_v49 = vadd.f32 %v1625_v44, %v5060_v61  ;;  %v1626_v50 = vadd.f32 %v1621_v48, %v5322_v5  ;;  %v4365_v51 = vpop.f32.mrb[59].mxu1 }
0x11f9   :  { %v5351_v52 = vadd.f32 %v3848_v46, %v1627_v49  ;;  %v1628_v53 = vadd.f32 %v1626_v50, %v5064_v3 }
0x11fb   :  { %v5354_v55 = vadd.f32 %v3848_v46, %v1628_v53  ;;  %v1640_v56 = vsel %vm198_vm4, %v5351_v52, 0.0 }
0x11fc   :  { %1641 = vadd.xlane.f32.xlu1 %v1640_v56 }
0x11fd   :  { %v1643_v58 = vsel %vm198_vm4, %v5354_v55, 0.0 }
0x11fe   :  { %1644 = vadd.xlane.f32.xlu0 %v1643_v58 }
0x1289   :  { %v1642_v59 = vpop.xlane.xlu1 %1641 }
0x128a   :  { %v1646_v60 = vmul.f32 0.03125, %v1642_v59 }
0x128b   :  { %v1645_v61 = vpop.xlane.xlu0 %1644 }
0x128c   :  { %v1648_v62 = vsub.f32 %v5351_v52, %v1646_v60  ;;  %v1647_v63 = vmul.f32 0.03125, %v1645_v61 }
0x128e   :  { %v1649_v0 = vsub.f32 %v5354_v55, %v1647_v63  ;;  %v1650_v1 = vmul.f32 %v1648_v62, %v1648_v62  ;;  %v1666_v26 = vmul.f32 %v3849_v24, %v1648_v62 }
0x1290   :  { %v1652_v3 = vsel %vm198_vm4, %v1650_v1, 0.0  ;;  %v1651_v4 = vmul.f32 %v1649_v0, %v1649_v0  ;;  %v1667_v12 = vmul.f32 %v3849_v24, %v1649_v0 }
0x1291   :  { %1653 = vadd.xlane.f32.xlu1 %v1652_v3 }
0x1292   :  { %v1655_v5 = vsel %vm198_vm4, %v1651_v4, 0.0 }
0x1293   :  { %1656 = vadd.xlane.f32.xlu0 %v1655_v5 }
0x131e   :  { %v1654_v7 = vpop.xlane.xlu1 %1653 }
0x131f   :  { %v1658_v8 = vmul.f32 0.03125, %v1654_v7 }
0x1320   :  { %v1657_v9 = vpop.xlane.xlu0 %1656 }
0x1321   :  { %v1668_v10 = vadd.f32 1e-05, %v1658_v8  ;;  %v1659_v11 = vmul.f32 0.03125, %v1657_v9  ;;  %v3855_v8 = vld [vmem:[%s5820_s16] ss:$0 sm:$0xff] }
0x1323   :  { %4744 = vrsqrt.f32 %v1668_v10  ;;  %v1669_v54 = vadd.f32 1e-05, %v1659_v11  ;;  %vm1672_vm13 = vcmp.eq.f32.partialorder %v1668_v10, inf  ;;  %v1675_v15 = vand.u32 2147483648, %v1668_v10 }
0x1324   :  { %vm1674_vm14 = vcmp.eq.f32.partialorder %v1668_v10, 0.0 }
0x1325   :  { %4746 = vrsqrt.f32 %v1669_v54  ;;  %vm1679_vm15 = vcmp.eq.f32.partialorder %v1669_v54, inf  ;;  %v1682_v21 = vand.u32 2147483648, %v1669_v54  ;;  %vm1681_vm0 = vcmp.eq.f32.partialorder %v1669_v54, 0.0 }
0x132d   :  { %v4745_v57 = vpop.eup %4744 }
0x132e   :  { %v1671_v13 = vmul.f32 %v4745_v57, %v1668_v10 }
0x132f   :  { %v4747_v16 = vpop.eup %4746 }
0x1330   :  { %v1673_v18 = vsel %vm1672_vm13, %v1668_v10, %v1671_v13  ;;  %v1678_v20 = vmul.f32 %v4747_v16, %v1669_v54 }
0x1331   :  { %v1676_v19 = vsel %vm1674_vm14, %v1675_v15, %v1673_v18 }
0x1332   :  { %4748 = vrcp.f32 %v1676_v19  ;;  %v1680_v22 = vsel %vm1679_vm15, %v1669_v54, %v1678_v20 }
0x1333   :  { %v1683_v23 = vsel %vm1681_vm0, %v1682_v21, %v1680_v22 }
0x1334   :  { %4750 = vrcp.f32 %v1683_v23 }
0x133c   :  { %v4749_v25 = vpop.eup %4748 }
0x133d   :  { %v1685_v27 = vmul.f32 %v4749_v25, %v1666_v26 }
0x133e   :  { %v4751_v28 = vpop.eup %4750 }
0x133f   :  { %v1687_v29 = vmul.f32 %v4751_v28, %v1667_v12  ;;  %v1694_v30 = vadd.f32 %v3850_v14, %v1685_v27  ;;  %v4664_v27 = vld [vmem:[%s5810_s6 + $0x40] sm:$0xff]   ;;  %v4665_v28 = vld [vmem:[%s5810_s6 + $0x48] sm:$0xff]  }
0x1341   :  { %v1695_v31 = vadd.f32 %v3850_v14, %v1687_v29 }
0x1343   :  { %v1696_v32 = vpack.c.bf16 %v1695_v31, %v1694_v30 }
0x1345   :  { %4371 = vmatmul.mubr.msk.bf16.vlgmr.msra.gmra.mrb[40].mxu0 %vm198_vm4, %v1696_v32 }
0x1346   :  { %4398 = vmatprep.mubr.msk.bf16.mxu0 %vm4845_vm5, %v4844_v17  ;;  %4395 = vmatpush3.bf16.msra.mxu0 %v4664_v27 }
0x1347   :  { %4396 = vmatprep.subr.bf16.mxu0 %v4844_v17 }
0x134a   :  { %4397 = vmatpush3.bf16.msra.mxu0 %v4665_v28 }
0x134b   :  { %4402 = vmatprep.subr.bf16.mxu0 %v4844_v17 }
0x1418   :  { %v1757_v42 = vpop.f32.mrb[40].mxu0 }
0x1419   :  { %v1758_v43 = vadd.f32 %v3851_v41, %v1757_v42  ;;  %v4372_v44 = vpop.f32.mrb[41].mxu0 }
0x141a   :  { %v1760_v45 = vpop.f32.mrb[42].mxu0  ;;  %v3866_v44 = vld [vmem:[%s5839_s3 + $0x1] ss:$0 sm:$0xff] }
0x141b   :  { %v1766_v46 = vmul.f32 %v1758_v43, %v1758_v43  ;;  %v1761_v48 = vadd.f32 %v3851_v41, %v1760_v45  ;;  %v4373_v49 = vpop.f32.mrb[43].mxu0  ;;  %v1764_v3 = vmul.f32 0.5, %v1758_v43 }
0x141d   :  { %v1768_v50 = vmul.f32 %v1766_v46, %v1758_v43  ;;  %v1767_v51 = vmul.f32 %v1761_v48, %v1761_v48  ;;  %v1765_v4 = vmul.f32 0.5, %v1761_v48 }
0x141f   :  { %v1770_v53 = vmul.f32 0.044715, %v1768_v50  ;;  %v1769_v56 = vmul.f32 %v1767_v51, %v1761_v48  ;;  %v3867_v51 = vld [vmem:[%s5809_s5 + $0x1] ss:$0 sm:$0xff] }
0x1421   :  { %v1772_v58 = vadd.f32 %v1770_v53, %v1758_v43  ;;  %v1771_v59 = vmul.f32 0.044715, %v1769_v56 }
0x1423   :  { %v1774_v60 = vmul.f32 0.7978845, %v1772_v58  ;;  %v1773_v61 = vadd.f32 %v1771_v59, %v1761_v48  ;;  %v4666_v59 = vld [vmem:[%s5811_s7 + $0x40] sm:$0xff]  }
0x1425   :  { %4752 = vtanh.f32 %v1774_v60  ;;  %v1775_v62 = vmul.f32 0.7978845, %v1773_v61  ;;  %v4667_v61 = vld [vmem:[%s5811_s7 + $0x48] sm:$0xff]  }
0x1427   :  { %4754 = vtanh.f32 %v1775_v62  ;;  %v4668_v62 = vld [vmem:[%s5812_s8 + $0x40] sm:$0xff]  }
0x142f   :  { %v4753_v63 = vpop.eup %4752 }
0x1430   :  { %v1778_v0 = vadd.f32 1.0, %v4753_v63  ;;  %v4669_v63 = vld [vmem:[%s5812_s8 + $0x48] sm:$0xff]  }
0x1431   :  { %v4755_v1 = vpop.eup %4754 }
0x1432   :  { %v1779_v5 = vadd.f32 1.0, %v4755_v1  ;;  %v1780_v47 = vmul.f32 %v1778_v0, %v1764_v3 }
0x1434   :  { %v1781_v6 = vmul.f32 %v1779_v5, %v1765_v4 }
0x1436   :  { %v1782_v7 = vpack.c.bf16 %v1781_v6, %v1780_v47 }
0x1438   :  { %4391 = vmatmul.mubr.bf16.vlgmr.msra.gmra.mrb[60].mxu1 %v1782_v7 }
0x1439   :  { %4426 = vmatprep.mubr.msk.bf16.mxu1 %vm4845_vm5, %v4844_v17 }
0x150b   :  { %v1888_v9 = vpop.f32.mrb[60].mxu1 }
0x150c   :  { %v1889_v10 = vadd.f32 %v3855_v8, %v1888_v9  ;;  %v4392_v11 = vpop.f32.mrb[61].mxu1 }
0x150d   :  { %v1891_v54 = vpop.f32.mrb[62].mxu1 }
0x150e   :  { %v5422_v57 = vadd.f32 %v1889_v10, %v5351_v52  ;;  %v1892_v13 = vadd.f32 %v3855_v8, %v1891_v54  ;;  %v4393_v15 = vpop.f32.mrb[63].mxu1 }
0x150f   :  { %v4670_v15 = vld [vmem:[%s5810_s6 + $0x50] sm:$0xff]  }
0x1510   :  { %v5425_v16 = vadd.f32 %v1892_v13, %v5354_v55  ;;  %v1901_v18 = vsel %vm198_vm4, %v5422_v57, 0.0 }
0x1511   :  { %1902 = vadd.xlane.f32.xlu1 %v1901_v18 }
0x1512   :  { %v1904_v19 = vsel %vm198_vm4, %v5425_v16, 0.0 }
0x1513   :  { %1905 = vadd.xlane.f32.xlu0 %v1904_v19 }
0x159e   :  { %v1903_v20 = vpop.xlane.xlu1 %1902 }
0x159f   :  { %v1907_v21 = vmul.f32 0.03125, %v1903_v20  ;;  %v4671_v20 = vld [vmem:[%s5810_s6 + $0x58] sm:$0xff]  }
0x15a0   :  { %v1906_v22 = vpop.xlane.xlu0 %1905 }
0x15a1   :  { %v1909_v23 = vsub.f32 %v5422_v57, %v1907_v21  ;;  %v1908_v52 = vmul.f32 0.03125, %v1906_v22  ;;  %v4672_v21 = vld [vmem:[%s5812_s8 + $0x50] sm:$0xff]   ;;  %v4673_v22 = vld [vmem:[%s5812_s8 + $0x58] sm:$0xff]  }
0x15a3   :  { %v1910_v24 = vsub.f32 %v5425_v16, %v1908_v52  ;;  %v1911_v25 = vmul.f32 %v1909_v23, %v1909_v23  ;;  %v1927_v46 = vmul.f32 %v3866_v44, %v1909_v23  ;;  %v5512_v52 = vld [vmem:[%s5840_s24] sm:$0xff] }
0x15a5   :  { %v1913_v55 = vsel %vm198_vm4, %v1911_v25, 0.0  ;;  %v1912_v26 = vmul.f32 %v1910_v24, %v1910_v24  ;;  %v1928_v48 = vmul.f32 %v3866_v44, %v1910_v24 }
0x15a6   :  { %1914 = vadd.xlane.f32.xlu1 %v1913_v55 }
0x15a7   :  { %v1916_v12 = vsel %vm198_vm4, %v1912_v26, 0.0  ;;  %v5518_v26 = vld [vmem:[%s5840_s24 + $0x8] sm:$0xff] }
0x15a8   :  { %1917 = vadd.xlane.f32.xlu0 %v1916_v12 }
0x1633   :  { %v1915_v14 = vpop.xlane.xlu1 %1914 }
0x1634   :  { %v1919_v29 = vmul.f32 0.03125, %v1915_v14 }
0x1635   :  { %v1918_v30 = vpop.xlane.xlu0 %1917 }
0x1636   :  { %v1929_v31 = vadd.f32 1e-05, %v1919_v29  ;;  %v1920_v32 = vmul.f32 0.03125, %v1918_v30 }
0x1638   :  { %4756 = vrsqrt.f32 %v1929_v31  ;;  %v1930_v33 = vadd.f32 1e-05, %v1920_v32  ;;  %vm1933_vm1 = vcmp.eq.f32.partialorder %v1929_v31, inf  ;;  %v1936_v36 = vand.u32 2147483648, %v1929_v31 }
0x1639   :  { %vm1935_vm2 = vcmp.eq.f32.partialorder %v1929_v31, 0.0 }
0x163a   :  { %4758 = vrsqrt.f32 %v1930_v33  ;;  %vm1940_vm3 = vcmp.eq.f32.partialorder %v1930_v33, inf  ;;  %v1943_v41 = vand.u32 2147483648, %v1930_v33  ;;  %vm1942_vm6 = vcmp.eq.f32.partialorder %v1930_v33, 0.0 }
0x1642   :  { %v4757_v34 = vpop.eup %4756 }
0x1643   :  { %v1932_v35 = vmul.f32 %v4757_v34, %v1929_v31 }
0x1644   :  { %v4759_v37 = vpop.eup %4758 }
0x1645   :  { %v1934_v38 = vsel %vm1933_vm1, %v1929_v31, %v1932_v35  ;;  %v1939_v40 = vmul.f32 %v4759_v37, %v1930_v33 }
0x1646   :  { %v1937_v39 = vsel %vm1935_vm2, %v1936_v36, %v1934_v38 }
0x1647   :  { %4760 = vrcp.f32 %v1937_v39  ;;  %v1941_v42 = vsel %vm1940_vm3, %v1930_v33, %v1939_v40 }
0x1648   :  { %v1944_v43 = vsel %vm1942_vm6, %v1943_v41, %v1941_v42 }
0x1649   :  { %4762 = vrcp.f32 %v1944_v43 }
0x1651   :  { %v4761_v45 = vpop.eup %4760 }
0x1652   :  { %v1946_v49 = vmul.f32 %v4761_v45, %v1927_v46 }
0x1653   :  { %v4763_v50 = vpop.eup %4762 }
0x1654   :  { %v1948_v53 = vmul.f32 %v4763_v50, %v1928_v48  ;;  %v1955_v56 = vadd.f32 %v3867_v51, %v1946_v49 }
0x1656   :  { %v1956_v58 = vadd.f32 %v3867_v51, %v1948_v53 }
0x1658   :  { %v5452_v60 = vpack.c.bf16 %v1956_v58, %v1955_v56 }
0x165a   :  { %4399 = vmatmul.mubr.msk.bf16.vlgmr.msra.gmra.mrb[44].mxu0 %vm198_vm4, %v5452_v60 }
0x165b   :  { %4403 = vmatpush3.bf16.msra.mxu0 %v4666_v59  ;;  %4406 = vmatprep.mubr.msk.bf16.mxu0 %vm4845_vm5, %v4844_v17 }
0x165c   :  { %4404 = vmatprep.subr.bf16.mxu0 %v4844_v17 }
0x165f   :  { %4405 = vmatpush3.bf16.msra.mxu0 %v4667_v61  ;;  %v4674_v61 = vld [vmem:[%s5811_s7 + $0x50] sm:$0xff]  }
0x1660   :  { %4410 = vmatprep.subr.bf16.mxu0 %v4844_v17 }
0x1662   :  { %4407 = vmatmul.mubr.msk.bf16.vlgmr.msra.gmra.mrb[48].mxu0 %vm198_vm4, %v5452_v60 }
0x1663   :  { %4411 = vmatpush3.bf16.msra.mxu0 %v4668_v62  ;;  %4414 = vmatprep.mubr.msk.bf16.mxu0 %vm4845_vm5, %v4844_v17 }
0x1664   :  { %4412 = vmatprep.subr.bf16.mxu0 %v4844_v17 }
0x1667   :  { %4413 = vmatpush3.bf16.msra.mxu0 %v4669_v63  ;;  %v4675_v63 = vld [vmem:[%s5811_s7 + $0x58] sm:$0xff]  }
0x1668   :  { %4418 = vmatprep.subr.bf16.mxu0 %v4844_v17 }
0x166a   :  { %4415 = vmatmul.mubr.msk.bf16.vlgmr.msra.gmra.mrb[52].mxu0 %vm198_vm4, %v5452_v60 }
0x166b   :  { %4420 = vmatprep.mubr.msk.bf16.mxu0 %vm4845_vm5, %v4844_v17 }
0x172d   :  { %v2012_v0 = vpop.f32.mrb[44].mxu0 }
0x172e   :  { %v4400_v1 = vpop.f32.mrb[45].mxu0 }
0x172f   :  { %v2015_v3 = vpop.f32.mrb[46].mxu0 }
0x1730   :  { %v2135_v4 = vpack.c.bf16 %v2015_v3, %v2012_v0  ;;  %v4401_v5 = vpop.f32.mrb[47].mxu0 }
0x1735   :  { %v2070_v47 = vpop.f32.mrb[48].mxu0 }
0x1736   :  { %v4408_v6 = vpop.f32.mrb[49].mxu0 }
0x1737   :  { %v2073_v7 = vpop.f32.mrb[50].mxu0 }
0x1738   :  { %v2136_v8 = vpack.c.bf16 %v2073_v7, %v2070_v47  ;;  %v4409_v9 = vpop.f32.mrb[51].mxu0 }
0x173a   :  { %v2141_v10 = vsel %vm433_vm10, %v2136_v8, 0 }
0x173b   :  { %4419 = vmatpush3.bf16.xpose.msra.mxu0 %v2141_v10 }
0x173c   :  { %4430 = vmatprep.subr.bf16.mxu0 %v4844_v17 }
0x173d   :  { %v2128_v11 = vpop.f32.mrb[52].mxu0 }
0x173e   :  { %v4416_v54 = vpop.f32.mrb[53].mxu0 }
0x173f   :  { %v2131_v13 = vpop.f32.mrb[54].mxu0 }
0x1740   :  { %v2207_v18 = vpack.c.bf16 %v2131_v13, %v2128_v11  ;;  %v4417_v19 = vpop.f32.mrb[55].mxu0 }
0x1742   :  { %4421 = vmatmul.mubr.msk.bf16.vlgmr.msra.gmra.mrb[56].mxu0 %vm433_vm10, %v2135_v4  ;;  %4425 = vmatpush3.bf16.msra.mxu1 %v2207_v18 }
0x1743   :  { %4431 = vmatpush3.bf16.msra.mxu0 %v4670_v15  ;;  %4434 = vmatprep.mubr.msk.bf16.mxu0 %vm4845_vm5, %v4844_v17 }
0x1744   :  { %4432 = vmatprep.subr.bf16.mxu0 %v4844_v17  ;;  %4438 = vmatprep.subr.bf16.mxu1 %v4844_v17 }
0x1747   :  { %4433 = vmatpush3.bf16.msra.mxu0 %v4671_v20 }
0x1748   :  { %4446 = vmatprep.subr.bf16.mxu0 %v4844_v17 }
0x174a   :  { %4435 = vmatmul.mubr.msk.bf16.vlgmr.msra.gmra.mrb[60].mxu0 %vm198_vm4, %v5452_v60 }
0x174b   :  { %4447 = vmatpush3.bf16.msra.mxu0 %v4672_v21  ;;  %4450 = vmatprep.mubr.msk.bf16.mxu0 %vm4845_vm5, %v4844_v17 }
0x174c   :  { %4448 = vmatprep.subr.bf16.mxu0 %v4844_v17 }
0x174f   :  { %4449 = vmatpush3.bf16.msra.mxu0 %v4673_v22 }
0x1750   :  { %4460 = vmatprep.subr.bf16.mxu0 %v4844_v17 }
0x1752   :  { %4451 = vmatmul.mubr.msk.bf16.vlgmr.msra.gmra.mrb[64].mxu0 %vm198_vm4, %v5452_v60 }
0x1753   :  { %4462 = vmatprep.mubr.msk.bf16.mxu0 %vm4845_vm5, %v4844_v17 }
0x1815   :  { %v2177_v23 = vpop.f32.mrb[56].mxu0 }
0x1816   :  { %v2178_v24 = vadd.f32 %v5512_v52, %v2177_v23  ;;  %v4422_v25 = vpop.f32.mrb[57].mxu0 }
0x1817   :  { %v2180_v55 = vpop.f32.mrb[58].mxu0 }
0x1818   :  { %v2181_v12 = vadd.f32 %v5518_v26, %v2180_v55  ;;  %v4423_v27 = vpop.f32.mrb[59].mxu0  ;;  %v2184_v28 = vsel %vm481_vm11, %v2178_v24, -inf }
0x1819   :  { %2185 = vmax.xlane.f32.xlu1 %v2184_v28 }
0x181a   :  { %v2187_v14 = vsel %vm481_vm11, %v2181_v12, -inf }
0x181b   :  { %2188 = vmax.xlane.f32.xlu0 %v2187_v14 }
0x181d   :  { %v2306_v29 = vpop.f32.mrb[60].mxu0 }
0x181e   :  { %v4436_v30 = vpop.f32.mrb[61].mxu0 }
0x181f   :  { %v2309_v31 = vpop.f32.mrb[62].mxu0  ;;  %v3915_v30 = vld [vmem:[%s5813_s9 + $0x14] sm:$0xf] }
0x1820   :  { %v2429_v32 = vpack.c.bf16 %v2309_v31, %v2306_v29  ;;  %v4437_v33 = vpop.f32.mrb[63].mxu0  ;;  %v2553_v31 = vsel %vm849_vm12, %v3915_v30, 0 }
0x1825   :  { %v2422_v34 = vpop.f32.mrb[64].mxu0 }
0x1826   :  { %v4452_v35 = vpop.f32.mrb[65].mxu0 }
0x1827   :  { %v2425_v36 = vpop.f32.mrb[66].mxu0 }
0x1828   :  { %v2501_v37 = vpack.c.bf16 %v2425_v36, %v2422_v34  ;;  %v4453_v38 = vpop.f32.mrb[67].mxu0  ;;  %v3891_v36 = vld [vmem:[%s5813_s9 + $0x10] sm:$0xf] }
0x182a   :  { %4461 = vmatpush3.bf16.msra.mxu0 %v2501_v37 }
0x182b   :  { %4472 = vmatprep.subr.bf16.mxu0 %v4844_v17 }
0x18a6   :  { %v2186_v39 = vpop.xlane.xlu1 %2185 }
0x18a7   :  { %v2190_v40 = vsub.f32 %v2178_v24, %v2186_v39 }
0x18a8   :  { %v2189_v41 = vpop.xlane.xlu0 %2188 }
0x18a9   :  { %v2192_v42 = vmul.f32 1.442695, %v2190_v40  ;;  %v2191_v43 = vsub.f32 %v2181_v12, %v2189_v41  ;;  %v2600_v40 = vsel %vm849_vm12, %v3891_v36, 0  ;;  %v4676_v41 = vld [vmem:[%s5811_s7 + $0x60] sm:$0xff]  }
0x18ab   :  { %4764 = vpow2.f32 %v2192_v42  ;;  %v2194_v44 = vmul.f32 1.442695, %v2191_v43  ;;  %v4677_v42 = vld [vmem:[%s5811_s7 + $0x68] sm:$0xff]  }
0x18ad   :  { %4766 = vpow2.f32 %v2194_v44 }
0x18b5   :  { %v4765_v45 = vpop.eup %4764 }
0x18b6   :  { %v2196_v46 = vsel %vm481_vm11, %v4765_v45, 0.0 }
0x18b7   :  { %v4767_v48 = vpop.eup %4766  ;;  %2197 = vadd.xlane.f32.xlu1 %v2196_v46  ;;  %v4678_v46 = vld [vmem:[%s5810_s6 + $0x60] sm:$0xff]  }
0x18b8   :  { %v2199_v49 = vsel %vm481_vm11, %v4767_v48, 0.0 }
0x18b9   :  { %2200 = vadd.xlane.f32.xlu0 %v2199_v49 }
0x1944   :  { %v2198_v50 = vpop.xlane.xlu1 %2197 }
0x1945   :  { %4768 = vrcp.f32 %v2198_v50  ;;  %v4679_v50 = vld [vmem:[%s5810_s6 + $0x68] sm:$0xff]  }
0x1946   :  { %v2201_v51 = vpop.xlane.xlu0 %2200 }
0x1947   :  { %4770 = vrcp.f32 %v2201_v51 }
0x194f   :  { %v4769_v53 = vpop.eup %4768 }
0x1950   :  { %v2204_v58 = vmul.f32 %v4769_v53, %v4765_v45 }
0x1951   :  { %v4771_v56 = vpop.eup %4770 }
0x1952   :  { %v2205_v59 = vmul.f32 %v4771_v56, %v4767_v48 }
0x1954   :  { %v2206_v62 = vpack.c.bf16 %v2205_v59, %v2204_v58  ;;  %v4680_v58 = vld [vmem:[%s5812_s8 + $0x60] sm:$0xff]  }
0x1956   :  { %4427 = vmatmul.mubr.msk.bf16.vlgmr.msra.gmra.mrb[64].mxu1 %vm481_vm11, %v2206_v62 }
0x1957   :  { %4439 = vmatpush3.bf16.msra.mxu1 %v4674_v61  ;;  %4442 = vmatprep.mubr.msk.bf16.mxu1 %vm4845_vm5, %v4844_v17  ;;  %v4681_v61 = vld [vmem:[%s5812_s8 + $0x68] sm:$0xff]  }
0x1958   :  { %4440 = vmatprep.subr.bf16.mxu1 %v4844_v17 }
0x195b   :  { %4441 = vmatpush3.bf16.msra.mxu1 %v4675_v63 }
0x195c   :  { %4454 = vmatprep.subr.bf16.mxu1 %v4844_v17 }
0x195e   :  { %4443 = vmatmul.mubr.msk.bf16.vlgmr.msra.gmra.mrb[68].mxu1 %vm198_vm4, %v5452_v60 }
0x195f   :  { %4456 = vmatprep.mubr.msk.bf16.mxu1 %vm4845_vm5, %v4844_v17 }
0x1a29   :  { %v2245_v0 = vpop.f32.mrb[64].mxu1 }
0x1a2a   :  { %v4428_v1 = vpop.f32.mrb[65].mxu1 }
0x1a2b   :  { %v2248_v3 = vpop.f32.mrb[66].mxu1 }
0x1a2c   :  { %v2252_v4 = vpack.c.bf16 %v2248_v3, %v2245_v0  ;;  %v4429_v5 = vpop.f32.mrb[67].mxu1 }
0x1a31   :  { %v2364_v47 = vpop.f32.mrb[68].mxu1 }
0x1a32   :  { %v4444_v6 = vpop.f32.mrb[69].mxu1 }
0x1a33   :  { %v2367_v7 = vpop.f32.mrb[70].mxu1 }
0x1a34   :  { %v2430_v8 = vpack.c.bf16 %v2367_v7, %v2364_v47  ;;  %v4445_v9 = vpop.f32.mrb[71].mxu1 }
0x1a36   :  { %v2435_v10 = vsel %vm433_vm10, %v2430_v8, 0 }
0x1a37   :  { %4455 = vmatpush3.bf16.xpose.msra.mxu1 %v2435_v10 }
0x1a38   :  { %4466 = vmatprep.subr.bf16.mxu1 %v4844_v17 }
0x1a3e   :  { %4457 = vmatmul.mubr.msk.bf16.vlgmr.msra.gmra.mrb[72].mxu1 %vm433_vm10, %v2429_v32 }
0x1a3f   :  { %4468 = vmatprep.mubr.msk.bf16.mxu1 %vm4845_vm5, %v4844_v17  ;;  %4467 = vmatpush3.bf16.msra.mxu1 %v2553_v31 }
0x1a40   :  { %4478 = vmatprep.subr.bf16.mxu1 %v4844_v17 }
0x1b11   :  { %v2471_v11 = vpop.f32.mrb[72].mxu1 }
0x1b12   :  { %v2472_v54 = vadd.f32 %v5512_v52, %v2471_v11  ;;  %v4458_v13 = vpop.f32.mrb[73].mxu1 }
0x1b13   :  { %v2474_v15 = vpop.f32.mrb[74].mxu1 }
0x1b14   :  { %v2475_v18 = vadd.f32 %v5518_v26, %v2474_v15  ;;  %v4459_v19 = vpop.f32.mrb[75].mxu1  ;;  %v2478_v20 = vsel %vm481_vm11, %v2472_v54, -inf }
0x1b15   :  { %2479 = vmax.xlane.f32.xlu1 %v2478_v20 }
0x1b16   :  { %v2481_v21 = vsel %vm481_vm11, %v2475_v18, -inf }
0x1b17   :  { %2482 = vmax.xlane.f32.xlu0 %v2481_v21 }
0x1ba2   :  { %v2480_v22 = vpop.xlane.xlu1 %2479 }
0x1ba3   :  { %v2484_v23 = vsub.f32 %v2472_v54, %v2480_v22 }
0x1ba4   :  { %v2483_v24 = vpop.xlane.xlu0 %2482 }
0x1ba5   :  { %v2486_v25 = vmul.f32 1.442695, %v2484_v23  ;;  %v2485_v55 = vsub.f32 %v2475_v18, %v2483_v24 }
0x1ba7   :  { %4772 = vpow2.f32 %v2486_v25  ;;  %v2488_v12 = vmul.f32 1.442695, %v2485_v55 }
0x1ba9   :  { %4774 = vpow2.f32 %v2488_v12 }
0x1bb1   :  { %v4773_v27 = vpop.eup %4772 }
0x1bb2   :  { %v2490_v28 = vsel %vm481_vm11, %v4773_v27, 0.0 }
0x1bb3   :  { %v4775_v14 = vpop.eup %4774  ;;  %2491 = vadd.xlane.f32.xlu1 %v2490_v28 }
0x1bb4   :  { %v2493_v29 = vsel %vm481_vm11, %v4775_v14, 0.0 }
0x1bb5   :  { %2494 = vadd.xlane.f32.xlu0 %v2493_v29 }
0x1c40   :  { %v2492_v32 = vpop.xlane.xlu1 %2491 }
0x1c41   :  { %4776 = vrcp.f32 %v2492_v32 }
0x1c42   :  { %v2495_v33 = vpop.xlane.xlu0 %2494 }
0x1c43   :  { %4778 = vrcp.f32 %v2495_v33 }
0x1c4b   :  { %v4777_v34 = vpop.eup %4776 }
0x1c4c   :  { %v2498_v37 = vmul.f32 %v4777_v34, %v4773_v27 }
0x1c4d   :  { %v4779_v35 = vpop.eup %4778 }
0x1c4e   :  { %v2499_v38 = vmul.f32 %v4779_v35, %v4775_v14 }
0x1c50   :  { %v2500_v39 = vpack.c.bf16 %v2499_v38, %v2498_v37 }
0x1c52   :  { %4463 = vmatmul.mubr.msk.bf16.vlgmr.msra.gmra.mrb[68].mxu0 %vm481_vm11, %v2500_v39  ;;  %v3941_v39 = vld [vmem:[%s5813_s9 + $0x18] sm:$0xf] }
0x1c53   :  { %4473 = vmatpush3.bf16.msra.mxu0 %v2600_v40  ;;  %4474 = vmatprep.mubr.msk.bf16.mxu0 %vm4845_vm5, %v4844_v17  ;;  %v2941_v40 = vsel %vm849_vm12, %v3941_v39, 0  ;;  %v3966_v39 = vld [vmem:[%s5813_s9 + $0x1c] sm:$0xf] }
0x1c54   :  { %4486 = vmatprep.subr.bf16.mxu0 %v4844_v17 }
0x1c5a   :  { %4475 = vmatmul.mubr.msk.bf16.vlgmr.msra.gmra.mrb[72].mxu0 %vm433_vm10, %v2252_v4 }
0x1c5b   :  { %4487 = vmatpush3.bf16.msra.mxu0 %v4676_v41  ;;  %4490 = vmatprep.mubr.msk.bf16.mxu0 %vm4845_vm5, %v4844_v17 }
0x1c5c   :  { %4488 = vmatprep.subr.bf16.mxu0 %v4844_v17 }
0x1c5f   :  { %4489 = vmatpush3.bf16.msra.mxu0 %v4677_v42 }
0x1c60   :  { %4502 = vmatprep.subr.bf16.mxu0 %v4844_v17 }
0x1c62   :  { %4491 = vmatmul.mubr.msk.bf16.vlgmr.msra.gmra.mrb[76].mxu0 %vm198_vm4, %v5452_v60 }
0x1c63   :  { %4504 = vmatprep.mubr.msk.bf16.mxu0 %vm4845_vm5, %v4844_v17 }
0x1d25   :  { %v2539_v43 = vpop.f32.mrb[68].mxu0 }
0x1d26   :  { %v4464_v44 = vpop.f32.mrb[69].mxu0 }
0x1d27   :  { %v2542_v45 = vpop.f32.mrb[70].mxu0 }
0x1d28   :  { %v2546_v48 = vpack.c.bf16 %v2542_v45, %v2539_v43  ;;  %v4465_v49 = vpop.f32.mrb[71].mxu0 }
0x1d2a   :  { %4469 = vmatmul.mubr.msk.bf16.vlgmr.msra.gmra.mrb[76].mxu1 %vm433_vm10, %v2546_v48  ;;  %v4682_v48 = vld [vmem:[%s5810_s6 + $0x70] sm:$0xff]  }
0x1d2b   :  { %4479 = vmatpush3.bf16.msra.mxu1 %v4678_v46  ;;  %4482 = vmatprep.mubr.msk.bf16.mxu1 %vm4845_vm5, %v4844_v17 }
0x1d2c   :  { %4480 = vmatprep.subr.bf16.mxu1 %v4844_v17 }
0x1d2d   :  { %v2636_v51 = vpop.f32.mrb[72].mxu0 }
0x1d2e   :  { %v4476_v53 = vpop.f32.mrb[73].mxu0 }
0x1d2f   :  { %v2639_v56 = vpop.f32.mrb[74].mxu0  ;;  %4481 = vmatpush3.bf16.msra.mxu1 %v4679_v50  ;;  %v4683_v50 = vld [vmem:[%s5810_s6 + $0x78] sm:$0xff]  }
0x1d30   :  { %v4477_v59 = vpop.f32.mrb[75].mxu0  ;;  %4494 = vmatprep.subr.bf16.mxu1 %v4844_v17  ;;  %v4685_v53 = vld [vmem:[%s5812_s8 + $0x78] sm:$0xff]  }
0x1d32   :  { %4483 = vmatmul.mubr.msk.bf16.vlgmr.msra.gmra.mrb[80].mxu1 %vm198_vm4, %v5452_v60 }
0x1d33   :  { %4495 = vmatpush3.bf16.msra.mxu1 %v4680_v58  ;;  %4498 = vmatprep.mubr.msk.bf16.mxu1 %vm4845_vm5, %v4844_v17 }
0x1d34   :  { %4496 = vmatprep.subr.bf16.mxu1 %v4844_v17 }
0x1d35   :  { %v2752_v62 = vpop.f32.mrb[76].mxu0 }
0x1d36   :  { %v4492_v63 = vpop.f32.mrb[77].mxu0 }
0x1d37   :  { %v2755_v0 = vpop.f32.mrb[78].mxu0  ;;  %4497 = vmatpush3.bf16.msra.mxu1 %v4681_v61  ;;  %v4686_v61 = vld [vmem:[%s5811_s7 + $0x70] sm:$0xff]  }
0x1d38   :  { %v2818_v1 = vpack.c.bf16 %v2755_v0, %v2752_v62  ;;  %v4493_v3 = vpop.f32.mrb[79].mxu0  ;;  %4508 = vmatprep.subr.bf16.mxu1 %v4844_v17  ;;  %v4687_v0 = vld [vmem:[%s5811_s7 + $0x78] sm:$0xff]  }
0x1d3a   :  { %v2823_v4 = vsel %vm433_vm10, %v2818_v1, 0  ;;  %4499 = vmatmul.mubr.msk.bf16.vlgmr.msra.gmra.mrb[84].mxu1 %vm198_vm4, %v5452_v60 }
0x1d3b   :  { %4503 = vmatpush3.bf16.xpose.msra.mxu0 %v2823_v4  ;;  %4510 = vmatprep.mubr.msk.bf16.mxu1 %vm4845_vm5, %v4844_v17 }
0x1d3c   :  { %4514 = vmatprep.subr.bf16.mxu0 %v4844_v17 }
0x1dfd   :  { %v2589_v5 = vpop.f32.mrb[76].mxu1 }
0x1dfe   :  { %v5609_v47 = vadd.f32 %v2636_v51, %v2589_v5  ;;  %v4470_v6 = vpop.f32.mrb[77].mxu1  ;;  %v4684_v51 = vld [vmem:[%s5812_s8 + $0x70] sm:$0xff]  }
0x1dff   :  { %v2592_v7 = vpop.f32.mrb[78].mxu1 }
0x1e00   :  { %v5611_v8 = vadd.f32 %v2639_v56, %v2592_v7  ;;  %v4471_v9 = vpop.f32.mrb[79].mxu1 }
0x1e05   :  { %v2694_v10 = vpop.f32.mrb[80].mxu1 }
0x1e06   :  { %v4484_v11 = vpop.f32.mrb[81].mxu1 }
0x1e07   :  { %v2697_v54 = vpop.f32.mrb[82].mxu1 }
0x1e08   :  { %v2817_v13 = vpack.c.bf16 %v2697_v54, %v2694_v10  ;;  %v4485_v15 = vpop.f32.mrb[83].mxu1 }
0x1e0a   :  { %4505 = vmatmul.mubr.msk.bf16.vlgmr.msra.gmra.mrb[80].mxu0 %vm433_vm10, %v2817_v13 }
0x1e0b   :  { %4516 = vmatprep.mubr.msk.bf16.mxu0 %vm4845_vm5, %v4844_v17  ;;  %4515 = vmatpush3.bf16.msra.mxu0 %v2941_v40  ;;  %v3284_v40 = vsel %vm849_vm12, %v3966_v39, 0 }
0x1e0c   :  { %4528 = vmatprep.subr.bf16.mxu0 %v4844_v17 }
0x1e0d   :  { %v2810_v18 = vpop.f32.mrb[84].mxu1 }
0x1e0e   :  { %v4500_v19 = vpop.f32.mrb[85].mxu1 }
0x1e0f   :  { %v2813_v20 = vpop.f32.mrb[86].mxu1 }
0x1e10   :  { %v2889_v21 = vpack.c.bf16 %v2813_v20, %v2810_v18  ;;  %v4501_v22 = vpop.f32.mrb[87].mxu1 }
0x1e12   :  { %4509 = vmatpush3.bf16.msra.mxu1 %v2889_v21 }
0x1e13   :  { %4520 = vmatprep.subr.bf16.mxu1 %v4844_v17 }
0x1edd   :  { %v2859_v23 = vpop.f32.mrb[80].mxu0 }
0x1ede   :  { %v2860_v24 = vadd.f32 %v5512_v52, %v2859_v23  ;;  %v4506_v25 = vpop.f32.mrb[81].mxu0 }
0x1edf   :  { %v2862_v55 = vpop.f32.mrb[82].mxu0 }
0x1ee0   :  { %v2863_v12 = vadd.f32 %v5518_v26, %v2862_v55  ;;  %v4507_v27 = vpop.f32.mrb[83].mxu0  ;;  %v2866_v28 = vsel %vm481_vm11, %v2860_v24, -inf }
0x1ee1   :  { %2867 = vmax.xlane.f32.xlu1 %v2866_v28 }
0x1ee2   :  { %v2869_v14 = vsel %vm481_vm11, %v2863_v12, -inf }
0x1ee3   :  { %2870 = vmax.xlane.f32.xlu0 %v2869_v14 }
0x1f6e   :  { %v2868_v29 = vpop.xlane.xlu1 %2867 }
0x1f6f   :  { %v2872_v30 = vsub.f32 %v2860_v24, %v2868_v29 }
0x1f70   :  { %v2871_v31 = vpop.xlane.xlu0 %2870 }
0x1f71   :  { %v2874_v32 = vmul.f32 1.442695, %v2872_v30  ;;  %v2873_v33 = vsub.f32 %v2863_v12, %v2871_v31 }
0x1f73   :  { %4780 = vpow2.f32 %v2874_v32  ;;  %v2876_v34 = vmul.f32 1.442695, %v2873_v33 }
0x1f75   :  { %4782 = vpow2.f32 %v2876_v34 }
0x1f7d   :  { %v4781_v35 = vpop.eup %4780 }
0x1f7e   :  { %v2878_v36 = vsel %vm481_vm11, %v4781_v35, 0.0 }
0x1f7f   :  { %v4783_v37 = vpop.eup %4782  ;;  %2879 = vadd.xlane.f32.xlu1 %v2878_v36 }
0x1f80   :  { %v2881_v38 = vsel %vm481_vm11, %v4783_v37, 0.0 }
0x1f81   :  { %2882 = vadd.xlane.f32.xlu0 %v2881_v38 }
0x200c   :  { %v2880_v41 = vpop.xlane.xlu1 %2879 }
0x200d   :  { %4784 = vrcp.f32 %v2880_v41 }
0x200e   :  { %v2883_v42 = vpop.xlane.xlu0 %2882 }
0x200f   :  { %4786 = vrcp.f32 %v2883_v42 }
0x2017   :  { %v4785_v43 = vpop.eup %4784 }
0x2018   :  { %v2886_v45 = vmul.f32 %v4785_v43, %v4781_v35 }
0x2019   :  { %v4787_v44 = vpop.eup %4786 }
0x201a   :  { %v2887_v46 = vmul.f32 %v4787_v44, %v4783_v37 }
0x201c   :  { %v2888_v49 = vpack.c.bf16 %v2887_v46, %v2886_v45 }
0x201e   :  { %4511 = vmatmul.mubr.msk.bf16.vlgmr.msra.gmra.mrb[88].mxu1 %vm481_vm11, %v2888_v49 }
0x201f   :  { %4521 = vmatpush3.bf16.msra.mxu1 %v4682_v48  ;;  %4524 = vmatprep.mubr.msk.bf16.mxu1 %vm4845_vm5, %v4844_v17 }
0x2020   :  { %4522 = vmatprep.subr.bf16.mxu1 %v4844_v17 }
0x2023   :  { %4523 = vmatpush3.bf16.msra.mxu1 %v4683_v50 }
0x2024   :  { %4536 = vmatprep.subr.bf16.mxu1 %v4844_v17 }
0x2026   :  { %4525 = vmatmul.mubr.msk.bf16.vlgmr.msra.gmra.mrb[92].mxu1 %vm198_vm4, %v5452_v60 }
0x2027   :  { %4537 = vmatpush3.bf16.msra.mxu1 %v4684_v51  ;;  %4540 = vmatprep.mubr.msk.bf16.mxu1 %vm4845_vm5, %v4844_v17 }
0x2028   :  { %4538 = vmatprep.subr.bf16.mxu1 %v4844_v17 }
0x202b   :  { %4539 = vmatpush3.bf16.msra.mxu1 %v4685_v53 }
0x202c   :  { %4550 = vmatprep.subr.bf16.mxu1 %v4844_v17 }
0x202e   :  { %4541 = vmatmul.mubr.msk.bf16.vlgmr.msra.gmra.mrb[96].mxu1 %vm198_vm4, %v5452_v60 }
0x202f   :  { %4552 = vmatprep.mubr.msk.bf16.mxu1 %vm4845_vm5, %v4844_v17 }
0x20f1   :  { %v2927_v56 = vpop.f32.mrb[88].mxu1 }
0x20f2   :  { %v4512_v58 = vpop.f32.mrb[89].mxu1 }
0x20f3   :  { %v2930_v59 = vpop.f32.mrb[90].mxu1 }
0x20f4   :  { %v2934_v62 = vpack.c.bf16 %v2930_v59, %v2927_v56  ;;  %v4513_v63 = vpop.f32.mrb[91].mxu1 }
0x20f6   :  { %4517 = vmatmul.mubr.msk.bf16.vlgmr.msra.gmra.mrb[84].mxu0 %vm433_vm10, %v2934_v62  ;;  %v3969_v62 = vld [vmem:[%s5814_s10 + $0x1] ss:$0 sm:$0xff] }
0x20f7   :  { %4529 = vmatpush3.bf16.msra.mxu0 %v4686_v61  ;;  %4532 = vmatprep.mubr.msk.bf16.mxu0 %vm4845_vm5, %v4844_v17 }
0x20f8   :  { %4530 = vmatprep.subr.bf16.mxu0 %v4844_v17 }
0x20f9   :  { %v3037_v1 = vpop.f32.mrb[92].mxu1 }
0x20fa   :  { %v4526_v3 = vpop.f32.mrb[93].mxu1 }
0x20fb   :  { %v3040_v4 = vpop.f32.mrb[94].mxu1  ;;  %4531 = vmatpush3.bf16.msra.mxu0 %v4687_v0 }
0x20fc   :  { %v3160_v5 = vpack.c.bf16 %v3040_v4, %v3037_v1  ;;  %v4527_v6 = vpop.f32.mrb[95].mxu1  ;;  %4544 = vmatprep.subr.bf16.mxu0 %v4844_v17 }
0x20fe   :  { %4533 = vmatmul.mubr.msk.bf16.vlgmr.msra.gmra.mrb[88].mxu0 %vm198_vm4, %v5452_v60 }
0x20ff   :  { %4546 = vmatprep.mubr.msk.bf16.mxu0 %vm4845_vm5, %v4844_v17 }
0x2101   :  { %v3153_v7 = vpop.f32.mrb[96].mxu1 }
0x2102   :  { %v4542_v9 = vpop.f32.mrb[97].mxu1 }
0x2103   :  { %v3156_v10 = vpop.f32.mrb[98].mxu1 }
0x2104   :  { %v3232_v11 = vpack.c.bf16 %v3156_v10, %v3153_v7  ;;  %v4543_v54 = vpop.f32.mrb[99].mxu1 }
0x2106   :  { %4551 = vmatpush3.bf16.msra.mxu1 %v3232_v11 }
0x2107   :  { %4562 = vmatprep.subr.bf16.mxu1 %v4844_v17 }
0x21c9   :  { %v2977_v13 = vpop.f32.mrb[84].mxu0 }
0x21ca   :  { %v2984_v15 = vadd.f32 %v2977_v13, %v5609_v47  ;;  %v4518_v18 = vpop.f32.mrb[85].mxu0 }
0x21cb   :  { %v2980_v19 = vpop.f32.mrb[86].mxu0 }
0x21cc   :  { %v5673_v20 = vadd.f32 %v2980_v19, %v5611_v8  ;;  %v4519_v60 = vpop.f32.mrb[87].mxu0 }
0x21cd   :  { %v4688_v60 = vld [vmem:[%s5817_s13 + $0x10] sm:$0xff]  }
0x21d1   :  { %v3095_v21 = vpop.f32.mrb[88].mxu0 }
0x21d2   :  { %v4534_v22 = vpop.f32.mrb[89].mxu0 }
0x21d3   :  { %v3098_v23 = vpop.f32.mrb[90].mxu0 }
0x21d4   :  { %v3161_v24 = vpack.c.bf16 %v3098_v23, %v3095_v21  ;;  %v4535_v25 = vpop.f32.mrb[91].mxu0  ;;  %v4689_v21 = vld [vmem:[%s5817_s13 + $0x18] sm:$0xff]  }
0x21d6   :  { %v3166_v55 = vsel %vm433_vm10, %v3161_v24, 0 }
0x21d7   :  { %4545 = vmatpush3.bf16.xpose.msra.mxu0 %v3166_v55 }
0x21d8   :  { %4556 = vmatprep.subr.bf16.mxu0 %v4844_v17 }
0x21de   :  { %4547 = vmatmul.mubr.msk.bf16.vlgmr.msra.gmra.mrb[92].mxu0 %vm433_vm10, %v3160_v5 }
0x21df   :  { %4558 = vmatprep.mubr.msk.bf16.mxu0 %vm4845_vm5, %v4844_v17  ;;  %4557 = vmatpush3.bf16.msra.mxu0 %v3284_v40 }
0x21e0   :  { %4570 = vmatprep.subr.bf16.mxu0 %v4844_v17 }
0x22b1   :  { %v3202_v47 = vpop.f32.mrb[92].mxu0 }
0x22b2   :  { %v3203_v8 = vadd.f32 %v5512_v52, %v3202_v47  ;;  %v4548_v12 = vpop.f32.mrb[93].mxu0 }
0x22b3   :  { %v3205_v27 = vpop.f32.mrb[94].mxu0 }
0x22b4   :  { %v3206_v28 = vadd.f32 %v5518_v26, %v3205_v27  ;;  %v4549_v14 = vpop.f32.mrb[95].mxu0  ;;  %v3209_v29 = vsel %vm481_vm11, %v3203_v8, -inf }
0x22b5   :  { %3210 = vmax.xlane.f32.xlu1 %v3209_v29 }
0x22b6   :  { %v3212_v30 = vsel %vm481_vm11, %v3206_v28, -inf }
0x22b7   :  { %3213 = vmax.xlane.f32.xlu0 %v3212_v30 }
0x2342   :  { %v3211_v31 = vpop.xlane.xlu1 %3210 }
0x2343   :  { %v3215_v32 = vsub.f32 %v3203_v8, %v3211_v31 }
0x2344   :  { %v3214_v33 = vpop.xlane.xlu0 %3213 }
0x2345   :  { %v3217_v34 = vmul.f32 1.442695, %v3215_v32  ;;  %v3216_v35 = vsub.f32 %v3206_v28, %v3214_v33 }
0x2347   :  { %4788 = vpow2.f32 %v3217_v34  ;;  %v3219_v36 = vmul.f32 1.442695, %v3216_v35  ;;  %v3972_v34 = vld [vmem:[%s5815_s11 + $0x1] ss:$0 sm:$0xff] }
0x2349   :  { %4790 = vpow2.f32 %v3219_v36 }
0x2351   :  { %v4789_v52 = vpop.eup %4788 }
0x2352   :  { %v3221_v37 = vsel %vm481_vm11, %v4789_v52, 0.0 }
0x2353   :  { %v4791_v38 = vpop.eup %4790  ;;  %3222 = vadd.xlane.f32.xlu1 %v3221_v37 }
0x2354   :  { %v3224_v26 = vsel %vm481_vm11, %v4791_v38, 0.0 }
0x2355   :  { %3225 = vadd.xlane.f32.xlu0 %v3224_v26  ;;  %v3973_v26 = vld [vmem:[%s5816_s12 + $0x1] ss:$0 sm:$0xff]  ;;  %s4846_s12 = smov [#allocation2]  }
0x2356   :  { %s3744_s1 = sshll.u32 %s4846_s12, 4  ;;  %s3745_s1 = int_to_ptr.vmem [resolvable:$true] %s3744_s1 }
0x2357   :  { %p4823_p1 = scmp.lt.s32.totalorder %s3745_s1, %s3745_s1 }
0x23e0   :  { %v3223_v41 = vpop.xlane.xlu1 %3222 }
0x23e1   :  { %4792 = vrcp.f32 %v3223_v41 }
0x23e2   :  { %v3226_v42 = vpop.xlane.xlu0 %3225 }
0x23e3   :  { %4794 = vrcp.f32 %v3226_v42 }
0x23eb   :  { %v4793_v43 = vpop.eup %4792 }
0x23ec   :  { %v3229_v45 = vmul.f32 %v4793_v43, %v4789_v52  ;;  %v4690_v43 = vld [vmem:[%s5819_s15 + $0x40] sm:$0xff]  }
0x23ed   :  { %v4795_v44 = vpop.eup %4794 }
0x23ee   :  { %v3230_v46 = vmul.f32 %v4795_v44, %v4791_v38  ;;  %v4691_v44 = vld [vmem:[%s5819_s15 + $0x48] sm:$0xff]  }
0x23f0   :  { %v3231_v48 = vpack.c.bf16 %v3230_v46, %v3229_v45  ;;  %v4692_v45 = vld [vmem:[%s5819_s15 + $0x50] sm:$0xff]   ;;  %v4694_v46 = vld [vmem:[%s5819_s15 + $0x60] sm:$0xff]  }
0x23f2   :  { %4553 = vmatmul.mubr.msk.bf16.vlgmr.msra.gmra.mrb[100].mxu1 %vm481_vm11, %v3231_v48  ;;  %v4695_v48 = vld [vmem:[%s5819_s15 + $0x68] sm:$0xff]  }
0x23f3   :  { %4566 = vmatprep.mubr.msk.bf16.mxu1 %vm4845_vm5, %v4844_v17  ;;  %4563 = vmatpush3.bf16.msra.mxu1 %v4688_v60 }
0x23f4   :  { %4564 = vmatprep.subr.bf16.mxu1 %v4844_v17 }
0x23f7   :  { %4565 = vmatpush3.bf16.msra.mxu1 %v4689_v21  ;;  %v4000_v21 = vld [vmem:[%s5820_s16 + $0x1] ss:$0 sm:$0xff] }
0x24c5   :  { %v3270_v49 = vpop.f32.mrb[100].mxu1 }
0x24c6   :  { %v4554_v50 = vpop.f32.mrb[101].mxu1 }
0x24c7   :  { %v3273_v51 = vpop.f32.mrb[102].mxu1  ;;  %v4697_v50 = vld [vmem:[%s5819_s15 + $0x78] sm:$0xff]  }
0x24c8   :  { %v3277_v53 = vpack.c.bf16 %v3273_v51, %v3270_v49  ;;  %v4555_v56 = vpop.f32.mrb[103].mxu1  ;;  %v4696_v49 = vld [vmem:[%s5819_s15 + $0x70] sm:$0xff]   ;;  %v3979_v51 = vld [vmem:[%s5841_s2 + $0x1] ss:$0 sm:$0xff] }
0x24ca   :  { %4559 = vmatmul.mubr.msk.bf16.vlgmr.msra.gmra.mrb[96].mxu0 %vm433_vm10, %v3277_v53 }
0x24cb   :  { %4586 = vmatprep.mubr.msk.bf16.mxu0 %vm4845_vm5, %v4844_v17  ;;  %4571 = vmatpush3.bf16.msra.mxu0 %v4690_v43 }
0x24cc   :  { %4572 = vmatprep.subr.bf16.mxu0 %v4844_v17 }
0x24cf   :  { %4573 = vmatpush3.bf16.msra.mxu0 %v4691_v44 }
0x24d0   :  { %4574 = vmatprep.subr.bf16.mxu0 %v4844_v17 }
0x24d3   :  { %4575 = vmatpush3.bf16.msra.mxu0 %v4692_v45 }
0x24d4   :  { %4576 = vmatprep.subr.bf16.mxu0 %v4844_v17 }
0x259d   :  { %v3320_v58 = vpop.f32.mrb[96].mxu0 }
0x259e   :  { %v3327_v59 = vadd.f32 %v3320_v58, %v2984_v15  ;;  %v4560_v61 = vpop.f32.mrb[97].mxu0 }
0x259f   :  { %v3323_v63 = vpop.f32.mrb[98].mxu0 }
0x25a0   :  { %v3329_v0 = vadd.f32 %v3327_v59, %v5422_v57  ;;  %v3328_v1 = vadd.f32 %v3323_v63, %v5673_v20  ;;  %v4561_v3 = vpop.f32.mrb[99].mxu0 }
0x25a2   :  { %v5702_v4 = vadd.f32 %v3969_v62, %v3329_v0  ;;  %v3330_v5 = vadd.f32 %v3328_v1, %v5425_v16 }
0x25a4   :  { %v5705_v6 = vadd.f32 %v3969_v62, %v3330_v5  ;;  %v3345_v7 = vsel %vm198_vm4, %v5702_v4, 0.0 }
0x25a5   :  { %3346 = vadd.xlane.f32.xlu1 %v3345_v7 }
0x25a6   :  { %v3348_v9 = vsel %vm198_vm4, %v5705_v6, 0.0 }
0x25a7   :  { %3349 = vadd.xlane.f32.xlu0 %v3348_v9 }
0x2632   :  { %v3347_v10 = vpop.xlane.xlu1 %3346 }
0x2633   :  { %v3351_v11 = vmul.f32 0.03125, %v3347_v10 }
0x2634   :  { %v3350_v57 = vpop.xlane.xlu0 %3349 }
0x2635   :  { %v3353_v54 = vsub.f32 %v5702_v4, %v3351_v11  ;;  %v3352_v13 = vmul.f32 0.03125, %v3350_v57 }
0x2637   :  { %v3354_v15 = vsub.f32 %v5705_v6, %v3352_v13  ;;  %v3355_v18 = vmul.f32 %v3353_v54, %v3353_v54  ;;  %v3371_v36 = vmul.f32 %v3972_v34, %v3353_v54 }
0x2639   :  { %v3357_v16 = vsel %vm198_vm4, %v3355_v18, 0.0  ;;  %v3356_v19 = vmul.f32 %v3354_v15, %v3354_v15  ;;  %v3372_v52 = vmul.f32 %v3972_v34, %v3354_v15 }
0x263a   :  { %3358 = vadd.xlane.f32.xlu1 %v3357_v16 }
0x263b   :  { %v3360_v20 = vsel %vm198_vm4, %v3356_v19, 0.0 }
0x263c   :  { %3361 = vadd.xlane.f32.xlu0 %v3360_v20 }
0x26c7   :  { %v3359_v22 = vpop.xlane.xlu1 %3358 }
0x26c8   :  { %v3363_v23 = vmul.f32 0.03125, %v3359_v22 }
0x26c9   :  { %v3362_v24 = vpop.xlane.xlu0 %3361 }
0x26ca   :  { %v3373_v25 = vadd.f32 1e-05, %v3363_v23  ;;  %v3364_v55 = vmul.f32 0.03125, %v3362_v24 }
0x26cc   :  { %4796 = vrsqrt.f32 %v3373_v25  ;;  %v3374_v47 = vadd.f32 1e-05, %v3364_v55  ;;  %vm3377_vm5 = vcmp.eq.f32.partialorder %v3373_v25, inf  ;;  %v3380_v27 = vand.u32 2147483648, %v3373_v25 }
0x26cd   :  { %vm3379_vm7 = vcmp.eq.f32.partialorder %v3373_v25, 0.0 }
0x26ce   :  { %4798 = vrsqrt.f32 %v3374_v47  ;;  %vm3384_vm8 = vcmp.eq.f32.partialorder %v3374_v47, inf  ;;  %v3387_v31 = vand.u32 2147483648, %v3374_v47  ;;  %vm3386_vm9 = vcmp.eq.f32.partialorder %v3374_v47, 0.0 }
0x26d6   :  { %v4797_v8 = vpop.eup %4796 }
0x26d7   :  { %v3376_v12 = vmul.f32 %v4797_v8, %v3373_v25 }
0x26d8   :  { %v4799_v28 = vpop.eup %4798 }
0x26d9   :  { %v3378_v14 = vsel %vm3377_vm5, %v3373_v25, %v3376_v12  ;;  %v3383_v30 = vmul.f32 %v4799_v28, %v3374_v47 }
0x26da   :  { %v3381_v29 = vsel %vm3379_vm7, %v3380_v27, %v3378_v14 }
0x26db   :  { %4800 = vrcp.f32 %v3381_v29  ;;  %v3385_v32 = vsel %vm3384_vm8, %v3374_v47, %v3383_v30 }
0x26dc   :  { %v3388_v33 = vsel %vm3386_vm9, %v3387_v31, %v3385_v32 }
0x26dd   :  { %4802 = vrcp.f32 %v3388_v33 }
0x26e5   :  { %v4801_v35 = vpop.eup %4800 }
0x26e6   :  { %v3390_v37 = vmul.f32 %v4801_v35, %v3371_v36 }
0x26e7   :  { %v4803_v38 = vpop.eup %4802 }
0x26e8   :  { %v3392_v39 = vmul.f32 %v4803_v38, %v3372_v52  ;;  %v3399_v40 = vadd.f32 %v3973_v26, %v3390_v37  ;;  %v4700_v52 = vld [vmem:[%s5823_s19 + $0x4] ss:$8 sps:$4 sm:$0xff]   ;;  %v4703_v37 = vld [vmem:[%s5823_s19 + $0x14] ss:$8 sps:$4 sm:$0xff]   ;;  %v4701_v38 = vld [vmem:[%s5823_s19 + $0x10] ss:$8 sps:$4 sm:$0xff]  }
0x26e9   :  { %3692 = vmatprep.subr.bf16.mxu1 %v4700_v52 }
0x26ea   :  { %v3400_v41 = vadd.f32 %v3973_v26, %v3392_v39 }
0x26ec   :  { %v3401_v42 = vpack.c.bf16 %v3400_v41, %v3399_v40 }
0x26ee   :  { %4567 = vmatmul.mubr.msk.bf16.vlgmr.msra.gmra.mrb[104].mxu1 %vm198_vm4, %v3401_v42 }
0x26ef   :  { %3724 = vmatprep.mubr.bf16.mxu1 %v4842_v2  ;;  %v4693_v2 = vld [vmem:[%s5819_s15 + $0x58] sm:$0xff]  }
0x26f0   :  { %4577 = vmatpush3.bf16.msra.mxu0 %v4693_v2 }
0x26f1   :  { %4578 = vmatprep.subr.bf16.mxu0 %v4844_v17 }
0x26f4   :  { %4579 = vmatpush3.bf16.msra.mxu0 %v4694_v46 }
0x26f5   :  { %4580 = vmatprep.subr.bf16.mxu0 %v4844_v17 }
0x26f8   :  { %4581 = vmatpush3.bf16.msra.mxu0 %v4695_v48 }
0x26f9   :  { %4582 = vmatprep.subr.bf16.mxu0 %v4844_v17 }
0x26fc   :  { %4583 = vmatpush3.bf16.msra.mxu0 %v4696_v49 }
0x26fd   :  { %4584 = vmatprep.subr.bf16.mxu0 %v4844_v17 }
0x2700   :  { %4585 = vmatpush3.bf16.msra.mxu0 %v4697_v50 }
0x27c1   :  { %v3464_v53 = vpop.f32.mrb[104].mxu1 }
0x27c2   :  { %v3465_v56 = vadd.f32 %v3979_v51, %v3464_v53  ;;  %v4568_v58 = vpop.f32.mrb[105].mxu1 }
0x27c3   :  { %v3467_v59 = vpop.f32.mrb[106].mxu1  ;;  %v4009_v58 = vld [vmem:[%s5821_s17] ss:$0 sm:$0xff]  ;;  %s4818_s17 = scalar_lea.vmem %s3745_s1, 512 }
0x27c4   :  { %v3473_v61 = vmul.f32 %v3465_v56, %v3465_v56  ;;  %v3468_v62 = vadd.f32 %v3979_v51, %v3467_v59  ;;  %v4569_v63 = vpop.f32.mrb[107].mxu1  ;;  %v3471_v15 = vmul.f32 0.5, %v3465_v56  ;;  %p4819_p0 = scmp.ne.s32.totalorder %s3745_s1, %s4818_s17  ;;  %p4824_p2 = scmp.lt.s32.totalorder %s4818_s17, %s4818_s17 }
0x27c6   :  { %v3475_v0 = vmul.f32 %v3473_v61, %v3465_v56  ;;  %v3474_v1 = vmul.f32 %v3468_v62, %v3468_v62  ;;  %v3472_v18 = vmul.f32 0.5, %v3468_v62  ;;  %p4825_p3 = por %p4824_p2, %p4823_p1 }
0x27c8   :  { %v3477_v3 = vmul.f32 0.044715, %v3475_v0  ;;  %v3476_v5 = vmul.f32 %v3474_v1, %v3468_v62  ;;  %v4010_v1 = vld [vmem:[%s5822_s18] ss:$0 sm:$0xff]  ;;  %p4826_p4 = pnand %p4825_p3, %p4819_p0 }
0x27ca   :  { %v3479_v7 = vadd.f32 %v3477_v3, %v3465_v56  ;;  %v3478_v9 = vmul.f32 0.044715, %v3476_v5 }
0x27cc   :  { %v3481_v10 = vmul.f32 0.7978845, %v3479_v7  ;;  %v3480_v17 = vadd.f32 %v3478_v9, %v3468_v62 }
0x27ce   :  { %4804 = vtanh.f32 %v3481_v10  ;;  %v3482_v11 = vmul.f32 0.7978845, %v3480_v17 }
0x27d0   :  { %4806 = vtanh.f32 %v3482_v11 }
0x27d8   :  { %v4805_v57 = vpop.eup %4804 }
0x27d9   :  { %v3485_v54 = vadd.f32 1.0, %v4805_v57 }
0x27da   :  { %v4807_v13 = vpop.eup %4806 }
0x27db   :  { %v3486_v16 = vadd.f32 1.0, %v4807_v13  ;;  %v3487_v19 = vmul.f32 %v3485_v54, %v3471_v15 }
0x27dd   :  { %v3488_v20 = vmul.f32 %v3486_v16, %v3472_v18 }
0x27df   :  { %v3489_v60 = vpack.c.bf16 %v3488_v20, %v3487_v19 }
0x27e1   :  { %4587 = vmatmul.mubr.bf16.vlgmr.msra.gmra.mrb[100].mxu0 %v3489_v60 }
0x28b4   :  { %v3597_v22 = vpop.f32.mrb[100].mxu0 }
0x28b5   :  { %v3598_v23 = vadd.f32 %v4000_v21, %v3597_v22  ;;  %v4588_v24 = vpop.f32.mrb[101].mxu0 }
0x28b6   :  { %v3600_v25 = vpop.f32.mrb[102].mxu0 }
0x28b7   :  { %v3601_v55 = vadd.f32 %v4000_v21, %v3600_v25  ;;  %v4589_v47 = vpop.f32.mrb[103].mxu0  ;;  %v3604_v8 = vadd.f32 %v3598_v23, %v5702_v4 }
0x28b9   :  { %v3608_v12 = vsel %vm198_vm4, %v3604_v8, 0.0  ;;  %v3605_v27 = vadd.f32 %v3601_v55, %v5705_v6  ;;  %v4698_v6 = vld [vmem:[%s5823_s19] ss:$8 sps:$4 sm:$0xff]  }
0x28ba   :  { %3609 = vadd.xlane.f32.xlu1 %v3608_v12  ;;  %3693 = vmatpush1.bf16.msra.mxu1 %v4698_v6 }
0x28bb   :  { %v3611_v28 = vsel %vm198_vm4, %v3605_v27, 0.0  ;;  %3694 = vmatprep.subr.bf16.mxu1 %v4703_v37 }
0x28bc   :  { %3612 = vadd.xlane.f32.xlu0 %v3611_v28 }
0x28be   :  { %3695 = vmatpush1.bf16.msra.mxu1 %v4701_v38 }
0x2947   :  { %v3610_v14 = vpop.xlane.xlu1 %3609 }
0x2948   :  { %v3614_v29 = vmul.f32 0.03125, %v3610_v14 }
0x2949   :  { %v3613_v30 = vpop.xlane.xlu0 %3612 }
0x294a   :  { %v3616_v31 = vsub.f32 %v3604_v8, %v3614_v29  ;;  %v3615_v32 = vmul.f32 0.03125, %v3613_v30 }
0x294c   :  { %v3617_v33 = vsub.f32 %v3605_v27, %v3615_v32  ;;  %v3618_v34 = vmul.f32 %v3616_v31, %v3616_v31  ;;  %v3634_v61 = vmul.f32 %v4009_v58, %v3616_v31 }
0x294e   :  { %v3620_v35 = vsel %vm198_vm4, %v3618_v34, 0.0  ;;  %v3619_v36 = vmul.f32 %v3617_v33, %v3617_v33  ;;  %v3635_v62 = vmul.f32 %v4009_v58, %v3617_v33 }
0x294f   :  { %3621 = vadd.xlane.f32.xlu1 %v3620_v35 }
0x2950   :  { %v3623_v4 = vsel %vm198_vm4, %v3619_v36, 0.0 }
0x2951   :  { %3624 = vadd.xlane.f32.xlu0 %v3623_v4 }
0x29dc   :  { %v3622_v26 = vpop.xlane.xlu1 %3621 }
0x29dd   :  { %v3626_v39 = vmul.f32 0.03125, %v3622_v26 }
0x29de   :  { %v3625_v40 = vpop.xlane.xlu0 %3624 }
0x29df   :  { %v3636_v41 = vadd.f32 1e-05, %v3626_v39  ;;  %v3627_v42 = vmul.f32 0.03125, %v3625_v40 }
0x29e1   :  { %4808 = vrsqrt.f32 %v3636_v41  ;;  %v3637_v43 = vadd.f32 1e-05, %v3627_v42  ;;  %vm3640_vm10 = vcmp.eq.f32.partialorder %v3636_v41, inf  ;;  %v3643_v2 = vand.u32 2147483648, %v3636_v41 }
0x29e2   :  { %vm3642_vm11 = vcmp.eq.f32.partialorder %v3636_v41, 0.0 }
0x29e3   :  { %4810 = vrsqrt.f32 %v3637_v43  ;;  %vm3647_vm12 = vcmp.eq.f32.partialorder %v3637_v43, inf  ;;  %v3650_v51 = vand.u32 2147483648, %v3637_v43  ;;  %vm3649_vm13 = vcmp.eq.f32.partialorder %v3637_v43, 0.0 }
0x29eb   :  { %v4809_v44 = vpop.eup %4808 }
0x29ec   :  { %v3639_v45 = vmul.f32 %v4809_v44, %v3636_v41 }
0x29ed   :  { %v4811_v46 = vpop.eup %4810 }
0x29ee   :  { %v3641_v48 = vsel %vm3640_vm10, %v3636_v41, %v3639_v45  ;;  %v3646_v50 = vmul.f32 %v4811_v46, %v3637_v43 }
0x29ef   :  { %v3644_v49 = vsel %vm3642_vm11, %v3643_v2, %v3641_v48 }
0x29f0   :  { %4812 = vrcp.f32 %v3644_v49  ;;  %v3648_v53 = vsel %vm3647_vm12, %v3637_v43, %v3646_v50 }
0x29f1   :  { %v3651_v56 = vsel %vm3649_vm13, %v3650_v51, %v3648_v53 }
0x29f2   :  { %4814 = vrcp.f32 %v3651_v56 }
0x29fa   :  { %v4813_v59 = vpop.eup %4812 }
0x29fb   :  { %v3653_v63 = vmul.f32 %v4813_v59, %v3634_v61 }
0x29fc   :  { %v4815_v0 = vpop.eup %4814 }
0x29fd   :  { %v3655_v3 = vmul.f32 %v4815_v0, %v3635_v62  ;;  %v3662_v5 = vadd.f32 %v4010_v1, %v3653_v63 }
0x29ff   :  { %v3663_v7 = vadd.f32 %v4010_v1, %v3655_v3 }
0x2a01   :  { %v3664_v9 = vpack.c.bf16 %v3663_v7, %v3662_v5 }
0x2a03   :  { %4015 = vmatmul.mubr.msk.bf16.vlgmr.msra.gmra.mrb[108].mxu1 %vm198_vm4, %v3664_v9 }
0x2ad6   :  { %v3726_v10 = vpop.f32.mrb[108].mxu1 }
0x2ad7   :  { %3735 = vst [vmem:[#allocation2] sm:$0xff] %v3726_v10  ;;  %v3728_v17 = vpop.f32.mrb[109].mxu1 }
0x2ad8   :  { %3736 = vst [vmem:[#allocation2 + $0x8] sm:$0xff] %v3728_v17  ;;  %v3730_v11 = vpop.f32.mrb[110].mxu1 }
0x2ad9   :  { %3737 = vst [vmem:[#allocation2 + $0x10] sm:$0xff] %v3730_v11  ;;  %v3732_v57 = vpop.f32.mrb[111].mxu1 }
0x2ada   :  { %3738 = vst [vmem:[#allocation2 + $0x18] sm:$0xff] %v3732_v57 }
0x2adb   :  { %4829 = shalt.err (!%p4826_p4)
}
0x2adc   :  { %s4830_s3 = scalar_lea.hbm %s5824_s20, 512 }
0x2add   :  { %p4831_p5 = scmp.ne.s32.totalorder %s5824_s20, %s4830_s3  ;;  %p4834_p6 = scmp.lt.u32.totalorder %s4830_s3, %s5824_s20 }
0x2adf   :  { %p4836_p7 = pnand %p4834_p6, %p4831_p5 }
0x2ae1   :  { %4839 = shalt.err (!%p4836_p7)
}
0x2ae2   :  { %s4847_s7 = smov 256   ;;  %s4848_s24 = smov 16  }
0x2ae3   :  { %3750 = dma.vmem_to_hbm [thread:$0]  %s3745_s1, 512, %s5824_s20, [#allocation3], %s4847_s7, %s4847_s7, %s4848_s24  }
0x2ae4   :  { %4840 = dma.done.wait [#allocation3], 512  }
0x2ae5   :  { %4841 = vsyncadd [#allocation3], 4294966784 }
0x2ae6   :  { %3754 = vsyncpa [#allocation3], 1 }

</bundles_post_ra>
